<compile_context>
chip_gen: v5e
topology: v5e:2x2
jax: 0.10.0
libtpu: 0.0.40
codegen_flags: <defaults>
</compile_context>

<pallas_src>
import functools

import jax
import jax.numpy as jnp
import numpy as np
from jax import lax
from jax.experimental import pallas as pl
from jax.experimental.pallas import tpu as pltpu


def _ssh_kernel(x_ref, mask_ref, dw_ref, gb_ref, pw_ref, o_ref,
                *, N, H, W, eps, cins, couts, dils, pw_offs):
    HW = H * W
    NHW = N * HW
    Cmax = dw_ref.shape[1]

    def dw_bn_relu(xin, blk):
        """Depthwise 3x3 (dilation d, padding d) -> BatchNorm2d (batch stats) -> ReLU.

        xin: (Cb, N*HW) lane-dense; returns the same shape.
        """
        cb, d = cins[blk], dils[blk]
        didx = 0 if d == 1 else 1

        def tap_w(tap):
            w = dw_ref[blk * 9 + tap]          # (Cmax, 1) leading-axis index (cheap)
            return w if cb == Cmax else w[:cb]

        # Center tap: no shift, no mask.
        acc = xin * tap_w(4)
        for tap in range(9):
            if tap == 4:
                continue
            dy = (tap // 3 - 1) * d
            dx = (tap % 3 - 1) * d
            s = dy * W + dx
            # result[..., p] = xin[..., (p + s) mod NHW]  (XLU lane rotation)
            src = pltpu.roll(xin, shift=(-s) % NHW, axis=1)
            # Hoisted 0/1 boundary mask (also kills every cross-image lane).
            src = src * mask_ref[didx * 9 + tap]           # (1, NHW) broadcast
            acc = acc + src * tap_w(tap)

        # BatchNorm2d, training-mode batch statistics (biased variance),
        # single pass: per-channel sum + sum-of-squares over the lane axis.
        inv_cnt = 1.0 / float(NHW)
        s1 = jnp.sum(acc, axis=1, keepdims=True)           # (Cb, 1)
        s2 = jnp.sum(acc * acc, axis=1, keepdims=True)     # (Cb, 1)
        mean = s1 * inv_cnt
        var = jnp.maximum(s2 * inv_cnt - mean * mean, 0.0)  # clamp cancellation
        gamma = gb_ref[2 * blk]
        beta = gb_ref[2 * blk + 1]
        if cb != Cmax:
            gamma, beta = gamma[:cb], beta[:cb]
        scale = gamma * lax.rsqrt(var + eps)
        shift = beta - mean * scale
        return jnp.maximum(acc * scale + shift, 0.0)        # Mobilenetv1 ReLU

    def pw_relu(y, blk):
        """1x1 pointwise conv (single MXU dot) + outer F.relu: (Cin,NHW)->(Cout,NHW)."""
        cb, co = cins[blk], couts[blk]
        off = pw_offs[blk]
        wT = pw_ref[off:off + co, :]                         # (Cout, Cmax)
        if cb != Cmax:
            wT = wT[:, :cb]
        z = jnp.dot(wT, y, preferred_element_type=jnp.float32)
        return jnp.maximum(z, 0.0)

    x = x_ref[...]                                           # (Cin, N*HW)

    y1 = dw_bn_relu(x, 0)            # conv1   (d=1), pre-pointwise
    y2 = dw_bn_relu(x, 1)            # conv2   (d=2)
    x2 = pw_relu(y2, 1)              # x2   = relu(conv2(x))     (never leaves VMEM)
    y21 = dw_bn_relu(x2, 2)          # conv2_1 (d=1)
    y22 = dw_bn_relu(x2, 3)          # conv2_2 (d=2)
    x22 = pw_relu(y22, 3)            # x2_2 = relu(conv2_2(x2))  (never leaves VMEM)
    y221 = dw_bn_relu(x22, 4)        # conv2_2_1 (d=1)

    # torch.cat(dim=1): write each branch straight into its channel slice
    # (no intermediate concatenated copy before the store).
    c1, c21, c221 = couts[0], couts[2], couts[4]
    o_ref[0:c1, :] = pw_relu(y1, 0)                          # x1
    o_ref[c1:c1 + c21, :] = pw_relu(y21, 2)                  # x2_1
    o_ref[c1 + c21:c1 + c21 + c221, :] = pw_relu(y221, 4)    # relu(conv2_2_1(x2_2))


def ssh_context_my(x_nchw, params):
    """SSHContext_my forward. x: (N, C, H, W) NCHW; returns (N, 2*xc, H, W)."""
    N, Cin, H, W = x_nchw.shape
    HW, NHW = H * W, N * H * W
    names = ('conv1', 'conv2', 'conv2_1', 'conv2_2', 'conv2_2_1')
    dils = (1, 2, 1, 2, 1)
    cins = tuple(int(params[n][0].shape[1]) for n in names)
    couts = tuple(int(params[n][3].shape[1]) for n in names)
    Cmax = max(cins)
    Ctot = couts[0] + couts[2] + couts[4]

    # ---- consolidated parameter slabs: 3 DMAs instead of ~20 tiny ones ----
    # (offsets / channel counts are multiples of 8 for this configuration,
    #  so every in-kernel sublane slice stays tile-aligned.)
    dw_rows, gb_rows, pw_rows, pw_offs = [], [], [], [0]
    for b, n in enumerate(names):
        wdw, gamma, beta, wpw = params[n]            # (9,Cb), (1,Cb), (1,Cb), (Cb,Cout)
        padc = Cmax - cins[b]
        dw_rows.append(jnp.pad(wdw, ((0, 0), (0, padc)))[:, :, None])        # (9,Cmax,1)
        gb_rows.append(jnp.pad(gamma.reshape(-1), (0, padc))[None, :, None])  # (1,Cmax,1)
        gb_rows.append(jnp.pad(beta.reshape(-1), (0, padc))[None, :, None])
        pw_rows.append(jnp.pad(jnp.transpose(wpw), ((0, 0), (0, padc))))      # (Cout,Cmax)
        pw_offs.append(pw_offs[-1] + couts[b])
    dw_slab = jnp.concatenate(dw_rows, axis=0)       # (45, Cmax, 1): channel -> sublane
    gb_slab = jnp.concatenate(gb_rows, axis=0)       # (10, Cmax, 1): gamma/beta pairs
    pw_slab = jnp.concatenate(pw_rows, axis=0)       # (sum Cout, Cmax)

    # ---- boundary masks, hoisted to trace time (18 distinct (dilation,tap) masks) ----
    p = np.arange(NHW, dtype=np.int64)
    hh, ww = (p % HW) // W, (p % HW) % W
    mrows = []
    for d in (1, 2):
        for ky in range(3):
            for kx in range(3):
                dy, dx = (ky - 1) * d, (kx - 1) * d
                ok = (hh + dy >= 0) & (hh + dy < H) & (ww + dx >= 0) & (ww + dx < W)
                mrows.append(ok.astype(np.float32))
    masks = jnp.asarray(np.stack(mrows, axis=0)).reshape(18, 1, NHW)

    # NCHW -> lane-dense (C, N*H*W): one tiny wrapper transpose (16 KB here).
    x = jnp.transpose(x_nchw, (1, 0, 2, 3)).reshape(Cin, NHW)

    kern = functools.partial(_ssh_kernel, N=N, H=H, W=W, eps=1e-5,
                             cins=cins, couts=couts, dils=dils,
                             pw_offs=tuple(pw_offs))
    vspec = pl.BlockSpec(memory_space=pltpu.MemorySpace.VMEM)
    out = pl.pallas_call(
        kern,
        out_shape=jax.ShapeDtypeStruct((Ctot, NHW), jnp.float32),
        in_specs=[vspec] * 5,
        out_specs=vspec,
    )(x, masks, dw_slab, gb_slab, pw_slab)
    return jnp.transpose(out.reshape(Ctot, N, H, W), (1, 0, 2, 3))


# ---------------- pure-JAX reference (for correctness check) ----------------
def _ref_block(x, wdw, gamma, beta, wpw, dil):
    Cin = x.shape[-1]
    k = wdw.reshape(3, 3, Cin)[:, :, None, :]            # HWIO, I = Cin/groups = 1
    y = lax.conv_general_dilated(
        x, k, window_strides=(1, 1), padding=[(dil, dil), (dil, dil)],
        rhs_dilation=(dil, dil),
        dimension_numbers=('NHWC', 'HWIO', 'NHWC'), feature_group_count=Cin)
    mean = jnp.mean(y, axis=(0, 1, 2), keepdims=True)
    var = jnp.mean((y - mean) ** 2, axis=(0, 1, 2), keepdims=True)
    y = (y - mean) * lax.rsqrt(var + 1e-5)
    y = y * gamma.reshape(1, 1, 1, -1) + beta.reshape(1, 1, 1, -1)
    y = jnp.maximum(y, 0.0)
    y = jnp.einsum('nhwc,cd->nhwd', y, wpw)
    return jnp.maximum(y, 0.0)


def _ref_ssh(x_nchw, params):
    x = jnp.transpose(x_nchw, (0, 2, 3, 1))
    x1 = _ref_block(x, *params['conv1'], dil=1)
    x2 = _ref_block(x, *params['conv2'], dil=2)
    x2_1 = _ref_block(x2, *params['conv2_1'], dil=1)
    x2_2 = _ref_block(x2, *params['conv2_2'], dil=2)
    x2_2 = _ref_block(x2_2, *params['conv2_2_1'], dil=1)
    out = jnp.concatenate([x1, x2_1, x2_2], axis=-1)
    return jnp.transpose(out, (0, 3, 1, 2))


def _init_block(key, cin, cout):
    k1, k2, k3, k4 = jax.random.split(key, 4)
    wdw = 0.1 * jax.random.normal(k1, (9, cin), jnp.float32)       # depthwise 3x3, groups=cin
    gamma = 1.0 + 0.1 * jax.random.normal(k2, (1, cin), jnp.float32)
    beta = 0.1 * jax.random.normal(k3, (1, cin), jnp.float32)
    wpw = 0.1 * jax.random.normal(k4, (cin, cout), jnp.float32)    # pointwise 1x1
    return (wdw, gamma, beta, wpw)


if __name__ == "__main__":
    key = jax.random.PRNGKey(0)
    N, C, H, W = 2, 8, 16, 16        # input:  (N, channels, H, W)
    xc = 16                          # xchannels -> output has xc + xc//2 + xc//2 = 2*xc channels

    kx, k1, k2, k3, k4, k5 = jax.random.split(key, 6)
    x = jax.random.normal(kx, (N, C, H, W), jnp.float32)
    params = {
        'conv1':     _init_block(k1, C, xc),
        'conv2':     _init_block(k2, C, xc // 2),
        'conv2_1':   _init_block(k3, xc // 2, xc // 2),
        'conv2_2':   _init_block(k4, xc // 2, xc // 2),
        'conv2_2_1': _init_block(k5, xc // 2, xc // 2),
    }

    out = jax.block_until_ready(jax.jit(ssh_context_my)(x, params))
    assert out.shape == (N, 2 * xc, H, W), out.shape

    ref = jax.block_until_ready(jax.jit(_ref_ssh)(x, params))
    np.testing.assert_allclose(np.asarray(out), np.asarray(ref), rtol=1e-3, atol=1e-3)

    print("KERNEL_OK")
</pallas_src>

<mosaic_0001>
module attributes {stable_mosaic.version = 11 : i64} {
  func.func @_ssh_kernel(%arg0: memref<8x512xf32, #tpu.memory_space<vmem>>, %arg1: memref<18x1x512xf32, #tpu.memory_space<vmem>>, %arg2: memref<45x8x1xf32, #tpu.memory_space<vmem>>, %arg3: memref<10x8x1xf32, #tpu.memory_space<vmem>>, %arg4: memref<48x8xf32, #tpu.memory_space<vmem>>, %arg5: memref<32x512xf32, #tpu.memory_space<vmem>>) attributes {dimension_semantics = [], scalar_prefetch = 0 : i64, scratch_operands = 0 : i64, tpu.core_type = #tpu.core_type<tc>} {
    %c0 = arith.constant 0 : index
    %c0_0 = arith.constant 0 : index
    %0 = vector.load %arg0[%c0, %c0_0] : memref<8x512xf32, #tpu.memory_space<vmem>>, vector<8x512xf32>
    %c4 = arith.constant 4 : index
    %c0_1 = arith.constant 0 : index
    %c0_2 = arith.constant 0 : index
    %1 = vector.load %arg2[%c4, %c0_1, %c0_2] : memref<45x8x1xf32, #tpu.memory_space<vmem>>, vector<1x8x1xf32>
    %2 = vector.shape_cast %1 : vector<1x8x1xf32> to vector<8x1xf32>
    %3 = vector.broadcast %2 : vector<8x1xf32> to vector<8x512xf32>
    %4 = arith.mulf %0, %3 : vector<8x512xf32>
    %c17_i32 = arith.constant 17 : i32
    %5 = tpu.dynamic_rotate %0 by %c17_i32 dim 1 : vector<8x512xf32>, i32 -> vector<8x512xf32>
    %c0_3 = arith.constant 0 : index
    %c0_4 = arith.constant 0 : index
    %c0_5 = arith.constant 0 : index
    %6 = vector.load %arg1[%c0_3, %c0_4, %c0_5] : memref<18x1x512xf32, #tpu.memory_space<vmem>>, vector<1x1x512xf32>
    %7 = vector.shape_cast %6 : vector<1x1x512xf32> to vector<1x512xf32>
    %8 = vector.broadcast %7 : vector<1x512xf32> to vector<8x512xf32>
    %9 = arith.mulf %5, %8 : vector<8x512xf32>
    %c0_6 = arith.constant 0 : index
    %c0_7 = arith.constant 0 : index
    %c0_8 = arith.constant 0 : index
    %10 = vector.load %arg2[%c0_6, %c0_7, %c0_8] : memref<45x8x1xf32, #tpu.memory_space<vmem>>, vector<1x8x1xf32>
    %11 = vector.shape_cast %10 : vector<1x8x1xf32> to vector<8x1xf32>
    %12 = vector.broadcast %11 : vector<8x1xf32> to vector<8x512xf32>
    %13 = arith.mulf %9, %12 : vector<8x512xf32>
    %14 = arith.addf %4, %13 : vector<8x512xf32>
    %c16_i32 = arith.constant 16 : i32
    %15 = tpu.dynamic_rotate %0 by %c16_i32 dim 1 : vector<8x512xf32>, i32 -> vector<8x512xf32>
    %c1 = arith.constant 1 : index
    %c0_9 = arith.constant 0 : index
    %c0_10 = arith.constant 0 : index
    %16 = vector.load %arg1[%c1, %c0_9, %c0_10] : memref<18x1x512xf32, #tpu.memory_space<vmem>>, vector<1x1x512xf32>
    %17 = vector.shape_cast %16 : vector<1x1x512xf32> to vector<1x512xf32>
    %18 = vector.broadcast %17 : vector<1x512xf32> to vector<8x512xf32>
    %19 = arith.mulf %15, %18 : vector<8x512xf32>
    %c1_11 = arith.constant 1 : index
    %c0_12 = arith.constant 0 : index
    %c0_13 = arith.constant 0 : index
    %20 = vector.load %arg2[%c1_11, %c0_12, %c0_13] : memref<45x8x1xf32, #tpu.memory_space<vmem>>, vector<1x8x1xf32>
    %21 = vector.shape_cast %20 : vector<1x8x1xf32> to vector<8x1xf32>
    %22 = vector.broadcast %21 : vector<8x1xf32> to vector<8x512xf32>
    %23 = arith.mulf %19, %22 : vector<8x512xf32>
    %24 = arith.addf %14, %23 : vector<8x512xf32>
    %c15_i32 = arith.constant 15 : i32
    %25 = tpu.dynamic_rotate %0 by %c15_i32 dim 1 : vector<8x512xf32>, i32 -> vector<8x512xf32>
    %c2 = arith.constant 2 : index
    %c0_14 = arith.constant 0 : index
    %c0_15 = arith.constant 0 : index
    %26 = vector.load %arg1[%c2, %c0_14, %c0_15] : memref<18x1x512xf32, #tpu.memory_space<vmem>>, vector<1x1x512xf32>
    %27 = vector.shape_cast %26 : vector<1x1x512xf32> to vector<1x512xf32>
    %28 = vector.broadcast %27 : vector<1x512xf32> to vector<8x512xf32>
    %29 = arith.mulf %25, %28 : vector<8x512xf32>
    %c2_16 = arith.constant 2 : index
    %c0_17 = arith.constant 0 : index
    %c0_18 = arith.constant 0 : index
    %30 = vector.load %arg2[%c2_16, %c0_17, %c0_18] : memref<45x8x1xf32, #tpu.memory_space<vmem>>, vector<1x8x1xf32>
    %31 = vector.shape_cast %30 : vector<1x8x1xf32> to vector<8x1xf32>
    %32 = vector.broadcast %31 : vector<8x1xf32> to vector<8x512xf32>
    %33 = arith.mulf %29, %32 : vector<8x512xf32>
    %34 = arith.addf %24, %33 : vector<8x512xf32>
    %c1_i32 = arith.constant 1 : i32
    %35 = tpu.dynamic_rotate %0 by %c1_i32 dim 1 : vector<8x512xf32>, i32 -> vector<8x512xf32>
    %c3 = arith.constant 3 : index
    %c0_19 = arith.constant 0 : index
    %c0_20 = arith.constant 0 : index
    %36 = vector.load %arg1[%c3, %c0_19, %c0_20] : memref<18x1x512xf32, #tpu.memory_space<vmem>>, vector<1x1x512xf32>
    %37 = vector.shape_cast %36 : vector<1x1x512xf32> to vector<1x512xf32>
    %38 = vector.broadcast %37 : vector<1x512xf32> to vector<8x512xf32>
    %39 = arith.mulf %35, %38 : vector<8x512xf32>
    %c3_21 = arith.constant 3 : index
    %c0_22 = arith.constant 0 : index
    %c0_23 = arith.constant 0 : index
    %40 = vector.load %arg2[%c3_21, %c0_22, %c0_23] : memref<45x8x1xf32, #tpu.memory_space<vmem>>, vector<1x8x1xf32>
    %41 = vector.shape_cast %40 : vector<1x8x1xf32> to vector<8x1xf32>
    %42 = vector.broadcast %41 : vector<8x1xf32> to vector<8x512xf32>
    %43 = arith.mulf %39, %42 : vector<8x512xf32>
    %44 = arith.addf %34, %43 : vector<8x512xf32>
    %c511_i32 = arith.constant 511 : i32
    %45 = tpu.dynamic_rotate %0 by %c511_i32 dim 1 : vector<8x512xf32>, i32 -> vector<8x512xf32>
    %c5 = arith.constant 5 : index
    %c0_24 = arith.constant 0 : index
    %c0_25 = arith.constant 0 : index
    %46 = vector.load %arg1[%c5, %c0_24, %c0_25] : memref<18x1x512xf32, #tpu.memory_space<vmem>>, vector<1x1x512xf32>
    %47 = vector.shape_cast %46 : vector<1x1x512xf32> to vector<1x512xf32>
    %48 = vector.broadcast %47 : vector<1x512xf32> to vector<8x512xf32>
    %49 = arith.mulf %45, %48 : vector<8x512xf32>
    %c5_26 = arith.constant 5 : index
    %c0_27 = arith.constant 0 : index
    %c0_28 = arith.constant 0 : index
    %50 = vector.load %arg2[%c5_26, %c0_27, %c0_28] : memref<45x8x1xf32, #tpu.memory_space<vmem>>, vector<1x8x1xf32>
    %51 = vector.shape_cast %50 : vector<1x8x1xf32> to vector<8x1xf32>
    %52 = vector.broadcast %51 : vector<8x1xf32> to vector<8x512xf32>
    %53 = arith.mulf %49, %52 : vector<8x512xf32>
    %54 = arith.addf %44, %53 : vector<8x512xf32>
    %c497_i32 = arith.constant 497 : i32
    %55 = tpu.dynamic_rotate %0 by %c497_i32 dim 1 : vector<8x512xf32>, i32 -> vector<8x512xf32>
    %c6 = arith.constant 6 : index
    %c0_29 = arith.constant 0 : index
    %c0_30 = arith.constant 0 : index
    %56 = vector.load %arg1[%c6, %c0_29, %c0_30] : memref<18x1x512xf32, #tpu.memory_space<vmem>>, vector<1x1x512xf32>
    %57 = vector.shape_cast %56 : vector<1x1x512xf32> to vector<1x512xf32>
    %58 = vector.broadcast %57 : vector<1x512xf32> to vector<8x512xf32>
    %59 = arith.mulf %55, %58 : vector<8x512xf32>
    %c6_31 = arith.constant 6 : index
    %c0_32 = arith.constant 0 : index
    %c0_33 = arith.constant 0 : index
    %60 = vector.load %arg2[%c6_31, %c0_32, %c0_33] : memref<45x8x1xf32, #tpu.memory_space<vmem>>, vector<1x8x1xf32>
    %61 = vector.shape_cast %60 : vector<1x8x1xf32> to vector<8x1xf32>
    %62 = vector.broadcast %61 : vector<8x1xf32> to vector<8x512xf32>
    %63 = arith.mulf %59, %62 : vector<8x512xf32>
    %64 = arith.addf %54, %63 : vector<8x512xf32>
    %c496_i32 = arith.constant 496 : i32
    %65 = tpu.dynamic_rotate %0 by %c496_i32 dim 1 : vector<8x512xf32>, i32 -> vector<8x512xf32>
    %c7 = arith.constant 7 : index
    %c0_34 = arith.constant 0 : index
    %c0_35 = arith.constant 0 : index
    %66 = vector.load %arg1[%c7, %c0_34, %c0_35] : memref<18x1x512xf32, #tpu.memory_space<vmem>>, vector<1x1x512xf32>
    %67 = vector.shape_cast %66 : vector<1x1x512xf32> to vector<1x512xf32>
    %68 = vector.broadcast %67 : vector<1x512xf32> to vector<8x512xf32>
    %69 = arith.mulf %65, %68 : vector<8x512xf32>
    %c7_36 = arith.constant 7 : index
    %c0_37 = arith.constant 0 : index
    %c0_38 = arith.constant 0 : index
    %70 = vector.load %arg2[%c7_36, %c0_37, %c0_38] : memref<45x8x1xf32, #tpu.memory_space<vmem>>, vector<1x8x1xf32>
    %71 = vector.shape_cast %70 : vector<1x8x1xf32> to vector<8x1xf32>
    %72 = vector.broadcast %71 : vector<8x1xf32> to vector<8x512xf32>
    %73 = arith.mulf %69, %72 : vector<8x512xf32>
    %74 = arith.addf %64, %73 : vector<8x512xf32>
    %c495_i32 = arith.constant 495 : i32
    %75 = tpu.dynamic_rotate %0 by %c495_i32 dim 1 : vector<8x512xf32>, i32 -> vector<8x512xf32>
    %c8 = arith.constant 8 : index
    %c0_39 = arith.constant 0 : index
    %c0_40 = arith.constant 0 : index
    %76 = vector.load %arg1[%c8, %c0_39, %c0_40] : memref<18x1x512xf32, #tpu.memory_space<vmem>>, vector<1x1x512xf32>
    %77 = vector.shape_cast %76 : vector<1x1x512xf32> to vector<1x512xf32>
    %78 = vector.broadcast %77 : vector<1x512xf32> to vector<8x512xf32>
    %79 = arith.mulf %75, %78 : vector<8x512xf32>
    %c8_41 = arith.constant 8 : index
    %c0_42 = arith.constant 0 : index
    %c0_43 = arith.constant 0 : index
    %80 = vector.load %arg2[%c8_41, %c0_42, %c0_43] : memref<45x8x1xf32, #tpu.memory_space<vmem>>, vector<1x8x1xf32>
    %81 = vector.shape_cast %80 : vector<1x8x1xf32> to vector<8x1xf32>
    %82 = vector.broadcast %81 : vector<8x1xf32> to vector<8x512xf32>
    %83 = arith.mulf %79, %82 : vector<8x512xf32>
    %84 = arith.addf %74, %83 : vector<8x512xf32>
    %cst = arith.constant dense<0.000000e+00> : vector<8xf32>
    %85 = vector.multi_reduction <add>, %84, %cst [1] : vector<8x512xf32> to vector<8xf32>
    %86 = vector.shape_cast %85 : vector<8xf32> to vector<8x1xf32>
    %87 = arith.mulf %84, %84 : vector<8x512xf32>
    %cst_44 = arith.constant dense<0.000000e+00> : vector<8xf32>
    %88 = vector.multi_reduction <add>, %87, %cst_44 [1] : vector<8x512xf32> to vector<8xf32>
    %89 = vector.shape_cast %88 : vector<8xf32> to vector<8x1xf32>
    %cst_45 = arith.constant 0.001953125 : f32
    %90 = vector.broadcast %cst_45 : f32 to vector<8x1xf32>
    %91 = arith.mulf %86, %90 : vector<8x1xf32>
    %cst_46 = arith.constant 0.001953125 : f32
    %92 = vector.broadcast %cst_46 : f32 to vector<8x1xf32>
    %93 = arith.mulf %89, %92 : vector<8x1xf32>
    %94 = arith.mulf %91, %91 : vector<8x1xf32>
    %95 = arith.subf %93, %94 : vector<8x1xf32>
    %cst_47 = arith.constant 0.000000e+00 : f32
    %96 = vector.broadcast %cst_47 : f32 to vector<8x1xf32>
    %97 = arith.maximumf %95, %96 : vector<8x1xf32>
    %c0_48 = arith.constant 0 : index
    %c0_49 = arith.constant 0 : index
    %c0_50 = arith.constant 0 : index
    %98 = vector.load %arg3[%c0_48, %c0_49, %c0_50] : memref<10x8x1xf32, #tpu.memory_space<vmem>>, vector<1x8x1xf32>
    %99 = vector.shape_cast %98 : vector<1x8x1xf32> to vector<8x1xf32>
    %c1_51 = arith.constant 1 : index
    %c0_52 = arith.constant 0 : index
    %c0_53 = arith.constant 0 : index
    %100 = vector.load %arg3[%c1_51, %c0_52, %c0_53] : memref<10x8x1xf32, #tpu.memory_space<vmem>>, vector<1x8x1xf32>
    %101 = vector.shape_cast %100 : vector<1x8x1xf32> to vector<8x1xf32>
    %cst_54 = arith.constant 9.99999974E-6 : f32
    %102 = vector.broadcast %cst_54 : f32 to vector<8x1xf32>
    %103 = arith.addf %97, %102 : vector<8x1xf32>
    %104 = math.rsqrt %103 : vector<8x1xf32>
    %105 = arith.mulf %99, %104 : vector<8x1xf32>
    %106 = arith.mulf %91, %105 : vector<8x1xf32>
    %107 = arith.subf %101, %106 : vector<8x1xf32>
    %108 = vector.broadcast %105 : vector<8x1xf32> to vector<8x512xf32>
    %109 = arith.mulf %84, %108 : vector<8x512xf32>
    %110 = vector.broadcast %107 : vector<8x1xf32> to vector<8x512xf32>
    %111 = arith.addf %109, %110 : vector<8x512xf32>
    %cst_55 = arith.constant 0.000000e+00 : f32
    %112 = vector.broadcast %cst_55 : f32 to vector<8x512xf32>
    %113 = arith.maximumf %111, %112 : vector<8x512xf32>
    %c13 = arith.constant 13 : index
    %c0_56 = arith.constant 0 : index
    %c0_57 = arith.constant 0 : index
    %114 = vector.load %arg2[%c13, %c0_56, %c0_57] : memref<45x8x1xf32, #tpu.memory_space<vmem>>, vector<1x8x1xf32>
    %115 = vector.shape_cast %114 : vector<1x8x1xf32> to vector<8x1xf32>
    %116 = vector.broadcast %115 : vector<8x1xf32> to vector<8x512xf32>
    %117 = arith.mulf %0, %116 : vector<8x512xf32>
    %c34_i32 = arith.constant 34 : i32
    %118 = tpu.dynamic_rotate %0 by %c34_i32 dim 1 : vector<8x512xf32>, i32 -> vector<8x512xf32>
    %c9 = arith.constant 9 : index
    %c0_58 = arith.constant 0 : index
    %c0_59 = arith.constant 0 : index
    %119 = vector.load %arg1[%c9, %c0_58, %c0_59] : memref<18x1x512xf32, #tpu.memory_space<vmem>>, vector<1x1x512xf32>
    %120 = vector.shape_cast %119 : vector<1x1x512xf32> to vector<1x512xf32>
    %121 = vector.broadcast %120 : vector<1x512xf32> to vector<8x512xf32>
    %122 = arith.mulf %118, %121 : vector<8x512xf32>
    %c9_60 = arith.constant 9 : index
    %c0_61 = arith.constant 0 : index
    %c0_62 = arith.constant 0 : index
    %123 = vector.load %arg2[%c9_60, %c0_61, %c0_62] : memref<45x8x1xf32, #tpu.memory_space<vmem>>, vector<1x8x1xf32>
    %124 = vector.shape_cast %123 : vector<1x8x1xf32> to vector<8x1xf32>
    %125 = vector.broadcast %124 : vector<8x1xf32> to vector<8x512xf32>
    %126 = arith.mulf %122, %125 : vector<8x512xf32>
    %127 = arith.addf %117, %126 : vector<8x512xf32>
    %c32_i32 = arith.constant 32 : i32
    %128 = tpu.dynamic_rotate %0 by %c32_i32 dim 1 : vector<8x512xf32>, i32 -> vector<8x512xf32>
    %c10 = arith.constant 10 : index
    %c0_63 = arith.constant 0 : index
    %c0_64 = arith.constant 0 : index
    %129 = vector.load %arg1[%c10, %c0_63, %c0_64] : memref<18x1x512xf32, #tpu.memory_space<vmem>>, vector<1x1x512xf32>
    %130 = vector.shape_cast %129 : vector<1x1x512xf32> to vector<1x512xf32>
    %131 = vector.broadcast %130 : vector<1x512xf32> to vector<8x512xf32>
    %132 = arith.mulf %128, %131 : vector<8x512xf32>
    %c10_65 = arith.constant 10 : index
    %c0_66 = arith.constant 0 : index
    %c0_67 = arith.constant 0 : index
    %133 = vector.load %arg2[%c10_65, %c0_66, %c0_67] : memref<45x8x1xf32, #tpu.memory_space<vmem>>, vector<1x8x1xf32>
    %134 = vector.shape_cast %133 : vector<1x8x1xf32> to vector<8x1xf32>
    %135 = vector.broadcast %134 : vector<8x1xf32> to vector<8x512xf32>
    %136 = arith.mulf %132, %135 : vector<8x512xf32>
    %137 = arith.addf %127, %136 : vector<8x512xf32>
    %c30_i32 = arith.constant 30 : i32
    %138 = tpu.dynamic_rotate %0 by %c30_i32 dim 1 : vector<8x512xf32>, i32 -> vector<8x512xf32>
    %c11 = arith.constant 11 : index
    %c0_68 = arith.constant 0 : index
    %c0_69 = arith.constant 0 : index
    %139 = vector.load %arg1[%c11, %c0_68, %c0_69] : memref<18x1x512xf32, #tpu.memory_space<vmem>>, vector<1x1x512xf32>
    %140 = vector.shape_cast %139 : vector<1x1x512xf32> to vector<1x512xf32>
    %141 = vector.broadcast %140 : vector<1x512xf32> to vector<8x512xf32>
    %142 = arith.mulf %138, %141 : vector<8x512xf32>
    %c11_70 = arith.constant 11 : index
    %c0_71 = arith.constant 0 : index
    %c0_72 = arith.constant 0 : index
    %143 = vector.load %arg2[%c11_70, %c0_71, %c0_72] : memref<45x8x1xf32, #tpu.memory_space<vmem>>, vector<1x8x1xf32>
    %144 = vector.shape_cast %143 : vector<1x8x1xf32> to vector<8x1xf32>
    %145 = vector.broadcast %144 : vector<8x1xf32> to vector<8x512xf32>
    %146 = arith.mulf %142, %145 : vector<8x512xf32>
    %147 = arith.addf %137, %146 : vector<8x512xf32>
    %c2_i32 = arith.constant 2 : i32
    %148 = tpu.dynamic_rotate %0 by %c2_i32 dim 1 : vector<8x512xf32>, i32 -> vector<8x512xf32>
    %c12 = arith.constant 12 : index
    %c0_73 = arith.constant 0 : index
    %c0_74 = arith.constant 0 : index
    %149 = vector.load %arg1[%c12, %c0_73, %c0_74] : memref<18x1x512xf32, #tpu.memory_space<vmem>>, vector<1x1x512xf32>
    %150 = vector.shape_cast %149 : vector<1x1x512xf32> to vector<1x512xf32>
    %151 = vector.broadcast %150 : vector<1x512xf32> to vector<8x512xf32>
    %152 = arith.mulf %148, %151 : vector<8x512xf32>
    %c12_75 = arith.constant 12 : index
    %c0_76 = arith.constant 0 : index
    %c0_77 = arith.constant 0 : index
    %153 = vector.load %arg2[%c12_75, %c0_76, %c0_77] : memref<45x8x1xf32, #tpu.memory_space<vmem>>, vector<1x8x1xf32>
    %154 = vector.shape_cast %153 : vector<1x8x1xf32> to vector<8x1xf32>
    %155 = vector.broadcast %154 : vector<8x1xf32> to vector<8x512xf32>
    %156 = arith.mulf %152, %155 : vector<8x512xf32>
    %157 = arith.addf %147, %156 : vector<8x512xf32>
    %c510_i32 = arith.constant 510 : i32
    %158 = tpu.dynamic_rotate %0 by %c510_i32 dim 1 : vector<8x512xf32>, i32 -> vector<8x512xf32>
    %c14 = arith.constant 14 : index
    %c0_78 = arith.constant 0 : index
    %c0_79 = arith.constant 0 : index
    %159 = vector.load %arg1[%c14, %c0_78, %c0_79] : memref<18x1x512xf32, #tpu.memory_space<vmem>>, vector<1x1x512xf32>
    %160 = vector.shape_cast %159 : vector<1x1x512xf32> to vector<1x512xf32>
    %161 = vector.broadcast %160 : vector<1x512xf32> to vector<8x512xf32>
    %162 = arith.mulf %158, %161 : vector<8x512xf32>
    %c14_80 = arith.constant 14 : index
    %c0_81 = arith.constant 0 : index
    %c0_82 = arith.constant 0 : index
    %163 = vector.load %arg2[%c14_80, %c0_81, %c0_82] : memref<45x8x1xf32, #tpu.memory_space<vmem>>, vector<1x8x1xf32>
    %164 = vector.shape_cast %163 : vector<1x8x1xf32> to vector<8x1xf32>
    %165 = vector.broadcast %164 : vector<8x1xf32> to vector<8x512xf32>
    %166 = arith.mulf %162, %165 : vector<8x512xf32>
    %167 = arith.addf %157, %166 : vector<8x512xf32>
    %c482_i32 = arith.constant 482 : i32
    %168 = tpu.dynamic_rotate %0 by %c482_i32 dim 1 : vector<8x512xf32>, i32 -> vector<8x512xf32>
    %c15 = arith.constant 15 : index
    %c0_83 = arith.constant 0 : index
    %c0_84 = arith.constant 0 : index
    %169 = vector.load %arg1[%c15, %c0_83, %c0_84] : memref<18x1x512xf32, #tpu.memory_space<vmem>>, vector<1x1x512xf32>
    %170 = vector.shape_cast %169 : vector<1x1x512xf32> to vector<1x512xf32>
    %171 = vector.broadcast %170 : vector<1x512xf32> to vector<8x512xf32>
    %172 = arith.mulf %168, %171 : vector<8x512xf32>
    %c15_85 = arith.constant 15 : index
    %c0_86 = arith.constant 0 : index
    %c0_87 = arith.constant 0 : index
    %173 = vector.load %arg2[%c15_85, %c0_86, %c0_87] : memref<45x8x1xf32, #tpu.memory_space<vmem>>, vector<1x8x1xf32>
    %174 = vector.shape_cast %173 : vector<1x8x1xf32> to vector<8x1xf32>
    %175 = vector.broadcast %174 : vector<8x1xf32> to vector<8x512xf32>
    %176 = arith.mulf %172, %175 : vector<8x512xf32>
    %177 = arith.addf %167, %176 : vector<8x512xf32>
    %c480_i32 = arith.constant 480 : i32
    %178 = tpu.dynamic_rotate %0 by %c480_i32 dim 1 : vector<8x512xf32>, i32 -> vector<8x512xf32>
    %c16 = arith.constant 16 : index
    %c0_88 = arith.constant 0 : index
    %c0_89 = arith.constant 0 : index
    %179 = vector.load %arg1[%c16, %c0_88, %c0_89] : memref<18x1x512xf32, #tpu.memory_space<vmem>>, vector<1x1x512xf32>
    %180 = vector.shape_cast %179 : vector<1x1x512xf32> to vector<1x512xf32>
    %181 = vector.broadcast %180 : vector<1x512xf32> to vector<8x512xf32>
    %182 = arith.mulf %178, %181 : vector<8x512xf32>
    %c16_90 = arith.constant 16 : index
    %c0_91 = arith.constant 0 : index
    %c0_92 = arith.constant 0 : index
    %183 = vector.load %arg2[%c16_90, %c0_91, %c0_92] : memref<45x8x1xf32, #tpu.memory_space<vmem>>, vector<1x8x1xf32>
    %184 = vector.shape_cast %183 : vector<1x8x1xf32> to vector<8x1xf32>
    %185 = vector.broadcast %184 : vector<8x1xf32> to vector<8x512xf32>
    %186 = arith.mulf %182, %185 : vector<8x512xf32>
    %187 = arith.addf %177, %186 : vector<8x512xf32>
    %c478_i32 = arith.constant 478 : i32
    %188 = tpu.dynamic_rotate %0 by %c478_i32 dim 1 : vector<8x512xf32>, i32 -> vector<8x512xf32>
    %c17 = arith.constant 17 : index
    %c0_93 = arith.constant 0 : index
    %c0_94 = arith.constant 0 : index
    %189 = vector.load %arg1[%c17, %c0_93, %c0_94] : memref<18x1x512xf32, #tpu.memory_space<vmem>>, vector<1x1x512xf32>
    %190 = vector.shape_cast %189 : vector<1x1x512xf32> to vector<1x512xf32>
    %191 = vector.broadcast %190 : vector<1x512xf32> to vector<8x512xf32>
    %192 = arith.mulf %188, %191 : vector<8x512xf32>
    %c17_95 = arith.constant 17 : index
    %c0_96 = arith.constant 0 : index
    %c0_97 = arith.constant 0 : index
    %193 = vector.load %arg2[%c17_95, %c0_96, %c0_97] : memref<45x8x1xf32, #tpu.memory_space<vmem>>, vector<1x8x1xf32>
    %194 = vector.shape_cast %193 : vector<1x8x1xf32> to vector<8x1xf32>
    %195 = vector.broadcast %194 : vector<8x1xf32> to vector<8x512xf32>
    %196 = arith.mulf %192, %195 : vector<8x512xf32>
    %197 = arith.addf %187, %196 : vector<8x512xf32>
    %cst_98 = arith.constant dense<0.000000e+00> : vector<8xf32>
    %198 = vector.multi_reduction <add>, %197, %cst_98 [1] : vector<8x512xf32> to vector<8xf32>
    %199 = vector.shape_cast %198 : vector<8xf32> to vector<8x1xf32>
    %200 = arith.mulf %197, %197 : vector<8x512xf32>
    %cst_99 = arith.constant dense<0.000000e+00> : vector<8xf32>
    %201 = vector.multi_reduction <add>, %200, %cst_99 [1] : vector<8x512xf32> to vector<8xf32>
    %202 = vector.shape_cast %201 : vector<8xf32> to vector<8x1xf32>
    %cst_100 = arith.constant 0.001953125 : f32
    %203 = vector.broadcast %cst_100 : f32 to vector<8x1xf32>
    %204 = arith.mulf %199, %203 : vector<8x1xf32>
    %cst_101 = arith.constant 0.001953125 : f32
    %205 = vector.broadcast %cst_101 : f32 to vector<8x1xf32>
    %206 = arith.mulf %202, %205 : vector<8x1xf32>
    %207 = arith.mulf %204, %204 : vector<8x1xf32>
    %208 = arith.subf %206, %207 : vector<8x1xf32>
    %cst_102 = arith.constant 0.000000e+00 : f32
    %209 = vector.broadcast %cst_102 : f32 to vector<8x1xf32>
    %210 = arith.maximumf %208, %209 : vector<8x1xf32>
    %c2_103 = arith.constant 2 : index
    %c0_104 = arith.constant 0 : index
    %c0_105 = arith.constant 0 : index
    %211 = vector.load %arg3[%c2_103, %c0_104, %c0_105] : memref<10x8x1xf32, #tpu.memory_space<vmem>>, vector<1x8x1xf32>
    %212 = vector.shape_cast %211 : vector<1x8x1xf32> to vector<8x1xf32>
    %c3_106 = arith.constant 3 : index
    %c0_107 = arith.constant 0 : index
    %c0_108 = arith.constant 0 : index
    %213 = vector.load %arg3[%c3_106, %c0_107, %c0_108] : memref<10x8x1xf32, #tpu.memory_space<vmem>>, vector<1x8x1xf32>
    %214 = vector.shape_cast %213 : vector<1x8x1xf32> to vector<8x1xf32>
    %cst_109 = arith.constant 9.99999974E-6 : f32
    %215 = vector.broadcast %cst_109 : f32 to vector<8x1xf32>
    %216 = arith.addf %210, %215 : vector<8x1xf32>
    %217 = math.rsqrt %216 : vector<8x1xf32>
    %218 = arith.mulf %212, %217 : vector<8x1xf32>
    %219 = arith.mulf %204, %218 : vector<8x1xf32>
    %220 = arith.subf %214, %219 : vector<8x1xf32>
    %221 = vector.broadcast %218 : vector<8x1xf32> to vector<8x512xf32>
    %222 = arith.mulf %197, %221 : vector<8x512xf32>
    %223 = vector.broadcast %220 : vector<8x1xf32> to vector<8x512xf32>
    %224 = arith.addf %222, %223 : vector<8x512xf32>
    %cst_110 = arith.constant 0.000000e+00 : f32
    %225 = vector.broadcast %cst_110 : f32 to vector<8x512xf32>
    %226 = arith.maximumf %224, %225 : vector<8x512xf32>
    %c16_111 = arith.constant 16 : index
    %c0_112 = arith.constant 0 : index
    %227 = vector.load %arg4[%c16_111, %c0_112] : memref<48x8xf32, #tpu.memory_space<vmem>>, vector<8x8xf32>
    %cst_113 = arith.constant dense<0.000000e+00> : vector<8x512xf32>
    %228 = tpu.matmul %227, %226, %cst_113 {dimension_numbers = #tpu.dot_dimension_numbers<[1], [0], [0], [1], [0, 0, 1, 1], [], []>} : vector<8x8xf32>, vector<8x512xf32>, vector<8x512xf32> -> vector<8x512xf32>
    %cst_114 = arith.constant 0.000000e+00 : f32
    %229 = vector.broadcast %cst_114 : f32 to vector<8x512xf32>
    %230 = arith.maximumf %228, %229 : vector<8x512xf32>
    %c22 = arith.constant 22 : index
    %c0_115 = arith.constant 0 : index
    %c0_116 = arith.constant 0 : index
    %231 = vector.load %arg2[%c22, %c0_115, %c0_116] : memref<45x8x1xf32, #tpu.memory_space<vmem>>, vector<1x8x1xf32>
    %232 = vector.shape_cast %231 : vector<1x8x1xf32> to vector<8x1xf32>
    %233 = vector.broadcast %232 : vector<8x1xf32> to vector<8x512xf32>
    %234 = arith.mulf %230, %233 : vector<8x512xf32>
    %c17_i32_117 = arith.constant 17 : i32
    %235 = tpu.dynamic_rotate %230 by %c17_i32_117 dim 1 : vector<8x512xf32>, i32 -> vector<8x512xf32>
    %c0_118 = arith.constant 0 : index
    %c0_119 = arith.constant 0 : index
    %c0_120 = arith.constant 0 : index
    %236 = vector.load %arg1[%c0_118, %c0_119, %c0_120] : memref<18x1x512xf32, #tpu.memory_space<vmem>>, vector<1x1x512xf32>
    %237 = vector.shape_cast %236 : vector<1x1x512xf32> to vector<1x512xf32>
    %238 = vector.broadcast %237 : vector<1x512xf32> to vector<8x512xf32>
    %239 = arith.mulf %235, %238 : vector<8x512xf32>
    %c18 = arith.constant 18 : index
    %c0_121 = arith.constant 0 : index
    %c0_122 = arith.constant 0 : index
    %240 = vector.load %arg2[%c18, %c0_121, %c0_122] : memref<45x8x1xf32, #tpu.memory_space<vmem>>, vector<1x8x1xf32>
    %241 = vector.shape_cast %240 : vector<1x8x1xf32> to vector<8x1xf32>
    %242 = vector.broadcast %241 : vector<8x1xf32> to vector<8x512xf32>
    %243 = arith.mulf %239, %242 : vector<8x512xf32>
    %244 = arith.addf %234, %243 : vector<8x512xf32>
    %c16_i32_123 = arith.constant 16 : i32
    %245 = tpu.dynamic_rotate %230 by %c16_i32_123 dim 1 : vector<8x512xf32>, i32 -> vector<8x512xf32>
    %c1_124 = arith.constant 1 : index
    %c0_125 = arith.constant 0 : index
    %c0_126 = arith.constant 0 : index
    %246 = vector.load %arg1[%c1_124, %c0_125, %c0_126] : memref<18x1x512xf32, #tpu.memory_space<vmem>>, vector<1x1x512xf32>
    %247 = vector.shape_cast %246 : vector<1x1x512xf32> to vector<1x512xf32>
    %248 = vector.broadcast %247 : vector<1x512xf32> to vector<8x512xf32>
    %249 = arith.mulf %245, %248 : vector<8x512xf32>
    %c19 = arith.constant 19 : index
    %c0_127 = arith.constant 0 : index
    %c0_128 = arith.constant 0 : index
    %250 = vector.load %arg2[%c19, %c0_127, %c0_128] : memref<45x8x1xf32, #tpu.memory_space<vmem>>, vector<1x8x1xf32>
    %251 = vector.shape_cast %250 : vector<1x8x1xf32> to vector<8x1xf32>
    %252 = vector.broadcast %251 : vector<8x1xf32> to vector<8x512xf32>
    %253 = arith.mulf %249, %252 : vector<8x512xf32>
    %254 = arith.addf %244, %253 : vector<8x512xf32>
    %c15_i32_129 = arith.constant 15 : i32
    %255 = tpu.dynamic_rotate %230 by %c15_i32_129 dim 1 : vector<8x512xf32>, i32 -> vector<8x512xf32>
    %c2_130 = arith.constant 2 : index
    %c0_131 = arith.constant 0 : index
    %c0_132 = arith.constant 0 : index
    %256 = vector.load %arg1[%c2_130, %c0_131, %c0_132] : memref<18x1x512xf32, #tpu.memory_space<vmem>>, vector<1x1x512xf32>
    %257 = vector.shape_cast %256 : vector<1x1x512xf32> to vector<1x512xf32>
    %258 = vector.broadcast %257 : vector<1x512xf32> to vector<8x512xf32>
    %259 = arith.mulf %255, %258 : vector<8x512xf32>
    %c20 = arith.constant 20 : index
    %c0_133 = arith.constant 0 : index
    %c0_134 = arith.constant 0 : index
    %260 = vector.load %arg2[%c20, %c0_133, %c0_134] : memref<45x8x1xf32, #tpu.memory_space<vmem>>, vector<1x8x1xf32>
    %261 = vector.shape_cast %260 : vector<1x8x1xf32> to vector<8x1xf32>
    %262 = vector.broadcast %261 : vector<8x1xf32> to vector<8x512xf32>
    %263 = arith.mulf %259, %262 : vector<8x512xf32>
    %264 = arith.addf %254, %263 : vector<8x512xf32>
    %c1_i32_135 = arith.constant 1 : i32
    %265 = tpu.dynamic_rotate %230 by %c1_i32_135 dim 1 : vector<8x512xf32>, i32 -> vector<8x512xf32>
    %c3_136 = arith.constant 3 : index
    %c0_137 = arith.constant 0 : index
    %c0_138 = arith.constant 0 : index
    %266 = vector.load %arg1[%c3_136, %c0_137, %c0_138] : memref<18x1x512xf32, #tpu.memory_space<vmem>>, vector<1x1x512xf32>
    %267 = vector.shape_cast %266 : vector<1x1x512xf32> to vector<1x512xf32>
    %268 = vector.broadcast %267 : vector<1x512xf32> to vector<8x512xf32>
    %269 = arith.mulf %265, %268 : vector<8x512xf32>
    %c21 = arith.constant 21 : index
    %c0_139 = arith.constant 0 : index
    %c0_140 = arith.constant 0 : index
    %270 = vector.load %arg2[%c21, %c0_139, %c0_140] : memref<45x8x1xf32, #tpu.memory_space<vmem>>, vector<1x8x1xf32>
    %271 = vector.shape_cast %270 : vector<1x8x1xf32> to vector<8x1xf32>
    %272 = vector.broadcast %271 : vector<8x1xf32> to vector<8x512xf32>
    %273 = arith.mulf %269, %272 : vector<8x512xf32>
    %274 = arith.addf %264, %273 : vector<8x512xf32>
    %c511_i32_141 = arith.constant 511 : i32
    %275 = tpu.dynamic_rotate %230 by %c511_i32_141 dim 1 : vector<8x512xf32>, i32 -> vector<8x512xf32>
    %c5_142 = arith.constant 5 : index
    %c0_143 = arith.constant 0 : index
    %c0_144 = arith.constant 0 : index
    %276 = vector.load %arg1[%c5_142, %c0_143, %c0_144] : memref<18x1x512xf32, #tpu.memory_space<vmem>>, vector<1x1x512xf32>
    %277 = vector.shape_cast %276 : vector<1x1x512xf32> to vector<1x512xf32>
    %278 = vector.broadcast %277 : vector<1x512xf32> to vector<8x512xf32>
    %279 = arith.mulf %275, %278 : vector<8x512xf32>
    %c23 = arith.constant 23 : index
    %c0_145 = arith.constant 0 : index
    %c0_146 = arith.constant 0 : index
    %280 = vector.load %arg2[%c23, %c0_145, %c0_146] : memref<45x8x1xf32, #tpu.memory_space<vmem>>, vector<1x8x1xf32>
    %281 = vector.shape_cast %280 : vector<1x8x1xf32> to vector<8x1xf32>
    %282 = vector.broadcast %281 : vector<8x1xf32> to vector<8x512xf32>
    %283 = arith.mulf %279, %282 : vector<8x512xf32>
    %284 = arith.addf %274, %283 : vector<8x512xf32>
    %c497_i32_147 = arith.constant 497 : i32
    %285 = tpu.dynamic_rotate %230 by %c497_i32_147 dim 1 : vector<8x512xf32>, i32 -> vector<8x512xf32>
    %c6_148 = arith.constant 6 : index
    %c0_149 = arith.constant 0 : index
    %c0_150 = arith.constant 0 : index
    %286 = vector.load %arg1[%c6_148, %c0_149, %c0_150] : memref<18x1x512xf32, #tpu.memory_space<vmem>>, vector<1x1x512xf32>
    %287 = vector.shape_cast %286 : vector<1x1x512xf32> to vector<1x512xf32>
    %288 = vector.broadcast %287 : vector<1x512xf32> to vector<8x512xf32>
    %289 = arith.mulf %285, %288 : vector<8x512xf32>
    %c24 = arith.constant 24 : index
    %c0_151 = arith.constant 0 : index
    %c0_152 = arith.constant 0 : index
    %290 = vector.load %arg2[%c24, %c0_151, %c0_152] : memref<45x8x1xf32, #tpu.memory_space<vmem>>, vector<1x8x1xf32>
    %291 = vector.shape_cast %290 : vector<1x8x1xf32> to vector<8x1xf32>
    %292 = vector.broadcast %291 : vector<8x1xf32> to vector<8x512xf32>
    %293 = arith.mulf %289, %292 : vector<8x512xf32>
    %294 = arith.addf %284, %293 : vector<8x512xf32>
    %c496_i32_153 = arith.constant 496 : i32
    %295 = tpu.dynamic_rotate %230 by %c496_i32_153 dim 1 : vector<8x512xf32>, i32 -> vector<8x512xf32>
    %c7_154 = arith.constant 7 : index
    %c0_155 = arith.constant 0 : index
    %c0_156 = arith.constant 0 : index
    %296 = vector.load %arg1[%c7_154, %c0_155, %c0_156] : memref<18x1x512xf32, #tpu.memory_space<vmem>>, vector<1x1x512xf32>
    %297 = vector.shape_cast %296 : vector<1x1x512xf32> to vector<1x512xf32>
    %298 = vector.broadcast %297 : vector<1x512xf32> to vector<8x512xf32>
    %299 = arith.mulf %295, %298 : vector<8x512xf32>
    %c25 = arith.constant 25 : index
    %c0_157 = arith.constant 0 : index
    %c0_158 = arith.constant 0 : index
    %300 = vector.load %arg2[%c25, %c0_157, %c0_158] : memref<45x8x1xf32, #tpu.memory_space<vmem>>, vector<1x8x1xf32>
    %301 = vector.shape_cast %300 : vector<1x8x1xf32> to vector<8x1xf32>
    %302 = vector.broadcast %301 : vector<8x1xf32> to vector<8x512xf32>
    %303 = arith.mulf %299, %302 : vector<8x512xf32>
    %304 = arith.addf %294, %303 : vector<8x512xf32>
    %c495_i32_159 = arith.constant 495 : i32
    %305 = tpu.dynamic_rotate %230 by %c495_i32_159 dim 1 : vector<8x512xf32>, i32 -> vector<8x512xf32>
    %c8_160 = arith.constant 8 : index
    %c0_161 = arith.constant 0 : index
    %c0_162 = arith.constant 0 : index
    %306 = vector.load %arg1[%c8_160, %c0_161, %c0_162] : memref<18x1x512xf32, #tpu.memory_space<vmem>>, vector<1x1x512xf32>
    %307 = vector.shape_cast %306 : vector<1x1x512xf32> to vector<1x512xf32>
    %308 = vector.broadcast %307 : vector<1x512xf32> to vector<8x512xf32>
    %309 = arith.mulf %305, %308 : vector<8x512xf32>
    %c26 = arith.constant 26 : index
    %c0_163 = arith.constant 0 : index
    %c0_164 = arith.constant 0 : index
    %310 = vector.load %arg2[%c26, %c0_163, %c0_164] : memref<45x8x1xf32, #tpu.memory_space<vmem>>, vector<1x8x1xf32>
    %311 = vector.shape_cast %310 : vector<1x8x1xf32> to vector<8x1xf32>
    %312 = vector.broadcast %311 : vector<8x1xf32> to vector<8x512xf32>
    %313 = arith.mulf %309, %312 : vector<8x512xf32>
    %314 = arith.addf %304, %313 : vector<8x512xf32>
    %cst_165 = arith.constant dense<0.000000e+00> : vector<8xf32>
    %315 = vector.multi_reduction <add>, %314, %cst_165 [1] : vector<8x512xf32> to vector<8xf32>
    %316 = vector.shape_cast %315 : vector<8xf32> to vector<8x1xf32>
    %317 = arith.mulf %314, %314 : vector<8x512xf32>
    %cst_166 = arith.constant dense<0.000000e+00> : vector<8xf32>
    %318 = vector.multi_reduction <add>, %317, %cst_166 [1] : vector<8x512xf32> to vector<8xf32>
    %319 = vector.shape_cast %318 : vector<8xf32> to vector<8x1xf32>
    %cst_167 = arith.constant 0.001953125 : f32
    %320 = vector.broadcast %cst_167 : f32 to vector<8x1xf32>
    %321 = arith.mulf %316, %320 : vector<8x1xf32>
    %cst_168 = arith.constant 0.001953125 : f32
    %322 = vector.broadcast %cst_168 : f32 to vector<8x1xf32>
    %323 = arith.mulf %319, %322 : vector<8x1xf32>
    %324 = arith.mulf %321, %321 : vector<8x1xf32>
    %325 = arith.subf %323, %324 : vector<8x1xf32>
    %cst_169 = arith.constant 0.000000e+00 : f32
    %326 = vector.broadcast %cst_169 : f32 to vector<8x1xf32>
    %327 = arith.maximumf %325, %326 : vector<8x1xf32>
    %c4_170 = arith.constant 4 : index
    %c0_171 = arith.constant 0 : index
    %c0_172 = arith.constant 0 : index
    %328 = vector.load %arg3[%c4_170, %c0_171, %c0_172] : memref<10x8x1xf32, #tpu.memory_space<vmem>>, vector<1x8x1xf32>
    %329 = vector.shape_cast %328 : vector<1x8x1xf32> to vector<8x1xf32>
    %c5_173 = arith.constant 5 : index
    %c0_174 = arith.constant 0 : index
    %c0_175 = arith.constant 0 : index
    %330 = vector.load %arg3[%c5_173, %c0_174, %c0_175] : memref<10x8x1xf32, #tpu.memory_space<vmem>>, vector<1x8x1xf32>
    %331 = vector.shape_cast %330 : vector<1x8x1xf32> to vector<8x1xf32>
    %cst_176 = arith.constant 9.99999974E-6 : f32
    %332 = vector.broadcast %cst_176 : f32 to vector<8x1xf32>
    %333 = arith.addf %327, %332 : vector<8x1xf32>
    %334 = math.rsqrt %333 : vector<8x1xf32>
    %335 = arith.mulf %329, %334 : vector<8x1xf32>
    %336 = arith.mulf %321, %335 : vector<8x1xf32>
    %337 = arith.subf %331, %336 : vector<8x1xf32>
    %338 = vector.broadcast %335 : vector<8x1xf32> to vector<8x512xf32>
    %339 = arith.mulf %314, %338 : vector<8x512xf32>
    %340 = vector.broadcast %337 : vector<8x1xf32> to vector<8x512xf32>
    %341 = arith.addf %339, %340 : vector<8x512xf32>
    %cst_177 = arith.constant 0.000000e+00 : f32
    %342 = vector.broadcast %cst_177 : f32 to vector<8x512xf32>
    %343 = arith.maximumf %341, %342 : vector<8x512xf32>
    %c31 = arith.constant 31 : index
    %c0_178 = arith.constant 0 : index
    %c0_179 = arith.constant 0 : index
    %344 = vector.load %arg2[%c31, %c0_178, %c0_179] : memref<45x8x1xf32, #tpu.memory_space<vmem>>, vector<1x8x1xf32>
    %345 = vector.shape_cast %344 : vector<1x8x1xf32> to vector<8x1xf32>
    %346 = vector.broadcast %345 : vector<8x1xf32> to vector<8x512xf32>
    %347 = arith.mulf %230, %346 : vector<8x512xf32>
    %c34_i32_180 = arith.constant 34 : i32
    %348 = tpu.dynamic_rotate %230 by %c34_i32_180 dim 1 : vector<8x512xf32>, i32 -> vector<8x512xf32>
    %c9_181 = arith.constant 9 : index
    %c0_182 = arith.constant 0 : index
    %c0_183 = arith.constant 0 : index
    %349 = vector.load %arg1[%c9_181, %c0_182, %c0_183] : memref<18x1x512xf32, #tpu.memory_space<vmem>>, vector<1x1x512xf32>
    %350 = vector.shape_cast %349 : vector<1x1x512xf32> to vector<1x512xf32>
    %351 = vector.broadcast %350 : vector<1x512xf32> to vector<8x512xf32>
    %352 = arith.mulf %348, %351 : vector<8x512xf32>
    %c27 = arith.constant 27 : index
    %c0_184 = arith.constant 0 : index
    %c0_185 = arith.constant 0 : index
    %353 = vector.load %arg2[%c27, %c0_184, %c0_185] : memref<45x8x1xf32, #tpu.memory_space<vmem>>, vector<1x8x1xf32>
    %354 = vector.shape_cast %353 : vector<1x8x1xf32> to vector<8x1xf32>
    %355 = vector.broadcast %354 : vector<8x1xf32> to vector<8x512xf32>
    %356 = arith.mulf %352, %355 : vector<8x512xf32>
    %357 = arith.addf %347, %356 : vector<8x512xf32>
    %c32_i32_186 = arith.constant 32 : i32
    %358 = tpu.dynamic_rotate %230 by %c32_i32_186 dim 1 : vector<8x512xf32>, i32 -> vector<8x512xf32>
    %c10_187 = arith.constant 10 : index
    %c0_188 = arith.constant 0 : index
    %c0_189 = arith.constant 0 : index
    %359 = vector.load %arg1[%c10_187, %c0_188, %c0_189] : memref<18x1x512xf32, #tpu.memory_space<vmem>>, vector<1x1x512xf32>
    %360 = vector.shape_cast %359 : vector<1x1x512xf32> to vector<1x512xf32>
    %361 = vector.broadcast %360 : vector<1x512xf32> to vector<8x512xf32>
    %362 = arith.mulf %358, %361 : vector<8x512xf32>
    %c28 = arith.constant 28 : index
    %c0_190 = arith.constant 0 : index
    %c0_191 = arith.constant 0 : index
    %363 = vector.load %arg2[%c28, %c0_190, %c0_191] : memref<45x8x1xf32, #tpu.memory_space<vmem>>, vector<1x8x1xf32>
    %364 = vector.shape_cast %363 : vector<1x8x1xf32> to vector<8x1xf32>
    %365 = vector.broadcast %364 : vector<8x1xf32> to vector<8x512xf32>
    %366 = arith.mulf %362, %365 : vector<8x512xf32>
    %367 = arith.addf %357, %366 : vector<8x512xf32>
    %c30_i32_192 = arith.constant 30 : i32
    %368 = tpu.dynamic_rotate %230 by %c30_i32_192 dim 1 : vector<8x512xf32>, i32 -> vector<8x512xf32>
    %c11_193 = arith.constant 11 : index
    %c0_194 = arith.constant 0 : index
    %c0_195 = arith.constant 0 : index
    %369 = vector.load %arg1[%c11_193, %c0_194, %c0_195] : memref<18x1x512xf32, #tpu.memory_space<vmem>>, vector<1x1x512xf32>
    %370 = vector.shape_cast %369 : vector<1x1x512xf32> to vector<1x512xf32>
    %371 = vector.broadcast %370 : vector<1x512xf32> to vector<8x512xf32>
    %372 = arith.mulf %368, %371 : vector<8x512xf32>
    %c29 = arith.constant 29 : index
    %c0_196 = arith.constant 0 : index
    %c0_197 = arith.constant 0 : index
    %373 = vector.load %arg2[%c29, %c0_196, %c0_197] : memref<45x8x1xf32, #tpu.memory_space<vmem>>, vector<1x8x1xf32>
    %374 = vector.shape_cast %373 : vector<1x8x1xf32> to vector<8x1xf32>
    %375 = vector.broadcast %374 : vector<8x1xf32> to vector<8x512xf32>
    %376 = arith.mulf %372, %375 : vector<8x512xf32>
    %377 = arith.addf %367, %376 : vector<8x512xf32>
    %c2_i32_198 = arith.constant 2 : i32
    %378 = tpu.dynamic_rotate %230 by %c2_i32_198 dim 1 : vector<8x512xf32>, i32 -> vector<8x512xf32>
    %c12_199 = arith.constant 12 : index
    %c0_200 = arith.constant 0 : index
    %c0_201 = arith.constant 0 : index
    %379 = vector.load %arg1[%c12_199, %c0_200, %c0_201] : memref<18x1x512xf32, #tpu.memory_space<vmem>>, vector<1x1x512xf32>
    %380 = vector.shape_cast %379 : vector<1x1x512xf32> to vector<1x512xf32>
    %381 = vector.broadcast %380 : vector<1x512xf32> to vector<8x512xf32>
    %382 = arith.mulf %378, %381 : vector<8x512xf32>
    %c30 = arith.constant 30 : index
    %c0_202 = arith.constant 0 : index
    %c0_203 = arith.constant 0 : index
    %383 = vector.load %arg2[%c30, %c0_202, %c0_203] : memref<45x8x1xf32, #tpu.memory_space<vmem>>, vector<1x8x1xf32>
    %384 = vector.shape_cast %383 : vector<1x8x1xf32> to vector<8x1xf32>
    %385 = vector.broadcast %384 : vector<8x1xf32> to vector<8x512xf32>
    %386 = arith.mulf %382, %385 : vector<8x512xf32>
    %387 = arith.addf %377, %386 : vector<8x512xf32>
    %c510_i32_204 = arith.constant 510 : i32
    %388 = tpu.dynamic_rotate %230 by %c510_i32_204 dim 1 : vector<8x512xf32>, i32 -> vector<8x512xf32>
    %c14_205 = arith.constant 14 : index
    %c0_206 = arith.constant 0 : index
    %c0_207 = arith.constant 0 : index
    %389 = vector.load %arg1[%c14_205, %c0_206, %c0_207] : memref<18x1x512xf32, #tpu.memory_space<vmem>>, vector<1x1x512xf32>
    %390 = vector.shape_cast %389 : vector<1x1x512xf32> to vector<1x512xf32>
    %391 = vector.broadcast %390 : vector<1x512xf32> to vector<8x512xf32>
    %392 = arith.mulf %388, %391 : vector<8x512xf32>
    %c32 = arith.constant 32 : index
    %c0_208 = arith.constant 0 : index
    %c0_209 = arith.constant 0 : index
    %393 = vector.load %arg2[%c32, %c0_208, %c0_209] : memref<45x8x1xf32, #tpu.memory_space<vmem>>, vector<1x8x1xf32>
    %394 = vector.shape_cast %393 : vector<1x8x1xf32> to vector<8x1xf32>
    %395 = vector.broadcast %394 : vector<8x1xf32> to vector<8x512xf32>
    %396 = arith.mulf %392, %395 : vector<8x512xf32>
    %397 = arith.addf %387, %396 : vector<8x512xf32>
    %c482_i32_210 = arith.constant 482 : i32
    %398 = tpu.dynamic_rotate %230 by %c482_i32_210 dim 1 : vector<8x512xf32>, i32 -> vector<8x512xf32>
    %c15_211 = arith.constant 15 : index
    %c0_212 = arith.constant 0 : index
    %c0_213 = arith.constant 0 : index
    %399 = vector.load %arg1[%c15_211, %c0_212, %c0_213] : memref<18x1x512xf32, #tpu.memory_space<vmem>>, vector<1x1x512xf32>
    %400 = vector.shape_cast %399 : vector<1x1x512xf32> to vector<1x512xf32>
    %401 = vector.broadcast %400 : vector<1x512xf32> to vector<8x512xf32>
    %402 = arith.mulf %398, %401 : vector<8x512xf32>
    %c33 = arith.constant 33 : index
    %c0_214 = arith.constant 0 : index
    %c0_215 = arith.constant 0 : index
    %403 = vector.load %arg2[%c33, %c0_214, %c0_215] : memref<45x8x1xf32, #tpu.memory_space<vmem>>, vector<1x8x1xf32>
    %404 = vector.shape_cast %403 : vector<1x8x1xf32> to vector<8x1xf32>
    %405 = vector.broadcast %404 : vector<8x1xf32> to vector<8x512xf32>
    %406 = arith.mulf %402, %405 : vector<8x512xf32>
    %407 = arith.addf %397, %406 : vector<8x512xf32>
    %c480_i32_216 = arith.constant 480 : i32
    %408 = tpu.dynamic_rotate %230 by %c480_i32_216 dim 1 : vector<8x512xf32>, i32 -> vector<8x512xf32>
    %c16_217 = arith.constant 16 : index
    %c0_218 = arith.constant 0 : index
    %c0_219 = arith.constant 0 : index
    %409 = vector.load %arg1[%c16_217, %c0_218, %c0_219] : memref<18x1x512xf32, #tpu.memory_space<vmem>>, vector<1x1x512xf32>
    %410 = vector.shape_cast %409 : vector<1x1x512xf32> to vector<1x512xf32>
    %411 = vector.broadcast %410 : vector<1x512xf32> to vector<8x512xf32>
    %412 = arith.mulf %408, %411 : vector<8x512xf32>
    %c34 = arith.constant 34 : index
    %c0_220 = arith.constant 0 : index
    %c0_221 = arith.constant 0 : index
    %413 = vector.load %arg2[%c34, %c0_220, %c0_221] : memref<45x8x1xf32, #tpu.memory_space<vmem>>, vector<1x8x1xf32>
    %414 = vector.shape_cast %413 : vector<1x8x1xf32> to vector<8x1xf32>
    %415 = vector.broadcast %414 : vector<8x1xf32> to vector<8x512xf32>
    %416 = arith.mulf %412, %415 : vector<8x512xf32>
    %417 = arith.addf %407, %416 : vector<8x512xf32>
    %c478_i32_222 = arith.constant 478 : i32
    %418 = tpu.dynamic_rotate %230 by %c478_i32_222 dim 1 : vector<8x512xf32>, i32 -> vector<8x512xf32>
    %c17_223 = arith.constant 17 : index
    %c0_224 = arith.constant 0 : index
    %c0_225 = arith.constant 0 : index
    %419 = vector.load %arg1[%c17_223, %c0_224, %c0_225] : memref<18x1x512xf32, #tpu.memory_space<vmem>>, vector<1x1x512xf32>
    %420 = vector.shape_cast %419 : vector<1x1x512xf32> to vector<1x512xf32>
    %421 = vector.broadcast %420 : vector<1x512xf32> to vector<8x512xf32>
    %422 = arith.mulf %418, %421 : vector<8x512xf32>
    %c35 = arith.constant 35 : index
    %c0_226 = arith.constant 0 : index
    %c0_227 = arith.constant 0 : index
    %423 = vector.load %arg2[%c35, %c0_226, %c0_227] : memref<45x8x1xf32, #tpu.memory_space<vmem>>, vector<1x8x1xf32>
    %424 = vector.shape_cast %423 : vector<1x8x1xf32> to vector<8x1xf32>
    %425 = vector.broadcast %424 : vector<8x1xf32> to vector<8x512xf32>
    %426 = arith.mulf %422, %425 : vector<8x512xf32>
    %427 = arith.addf %417, %426 : vector<8x512xf32>
    %cst_228 = arith.constant dense<0.000000e+00> : vector<8xf32>
    %428 = vector.multi_reduction <add>, %427, %cst_228 [1] : vector<8x512xf32> to vector<8xf32>
    %429 = vector.shape_cast %428 : vector<8xf32> to vector<8x1xf32>
    %430 = arith.mulf %427, %427 : vector<8x512xf32>
    %cst_229 = arith.constant dense<0.000000e+00> : vector<8xf32>
    %431 = vector.multi_reduction <add>, %430, %cst_229 [1] : vector<8x512xf32> to vector<8xf32>
    %432 = vector.shape_cast %431 : vector<8xf32> to vector<8x1xf32>
    %cst_230 = arith.constant 0.001953125 : f32
    %433 = vector.broadcast %cst_230 : f32 to vector<8x1xf32>
    %434 = arith.mulf %429, %433 : vector<8x1xf32>
    %cst_231 = arith.constant 0.001953125 : f32
    %435 = vector.broadcast %cst_231 : f32 to vector<8x1xf32>
    %436 = arith.mulf %432, %435 : vector<8x1xf32>
    %437 = arith.mulf %434, %434 : vector<8x1xf32>
    %438 = arith.subf %436, %437 : vector<8x1xf32>
    %cst_232 = arith.constant 0.000000e+00 : f32
    %439 = vector.broadcast %cst_232 : f32 to vector<8x1xf32>
    %440 = arith.maximumf %438, %439 : vector<8x1xf32>
    %c6_233 = arith.constant 6 : index
    %c0_234 = arith.constant 0 : index
    %c0_235 = arith.constant 0 : index
    %441 = vector.load %arg3[%c6_233, %c0_234, %c0_235] : memref<10x8x1xf32, #tpu.memory_space<vmem>>, vector<1x8x1xf32>
    %442 = vector.shape_cast %441 : vector<1x8x1xf32> to vector<8x1xf32>
    %c7_236 = arith.constant 7 : index
    %c0_237 = arith.constant 0 : index
    %c0_238 = arith.constant 0 : index
    %443 = vector.load %arg3[%c7_236, %c0_237, %c0_238] : memref<10x8x1xf32, #tpu.memory_space<vmem>>, vector<1x8x1xf32>
    %444 = vector.shape_cast %443 : vector<1x8x1xf32> to vector<8x1xf32>
    %cst_239 = arith.constant 9.99999974E-6 : f32
    %445 = vector.broadcast %cst_239 : f32 to vector<8x1xf32>
    %446 = arith.addf %440, %445 : vector<8x1xf32>
    %447 = math.rsqrt %446 : vector<8x1xf32>
    %448 = arith.mulf %442, %447 : vector<8x1xf32>
    %449 = arith.mulf %434, %448 : vector<8x1xf32>
    %450 = arith.subf %444, %449 : vector<8x1xf32>
    %451 = vector.broadcast %448 : vector<8x1xf32> to vector<8x512xf32>
    %452 = arith.mulf %427, %451 : vector<8x512xf32>
    %453 = vector.broadcast %450 : vector<8x1xf32> to vector<8x512xf32>
    %454 = arith.addf %452, %453 : vector<8x512xf32>
    %cst_240 = arith.constant 0.000000e+00 : f32
    %455 = vector.broadcast %cst_240 : f32 to vector<8x512xf32>
    %456 = arith.maximumf %454, %455 : vector<8x512xf32>
    %c32_241 = arith.constant 32 : index
    %c0_242 = arith.constant 0 : index
    %457 = vector.load %arg4[%c32_241, %c0_242] : memref<48x8xf32, #tpu.memory_space<vmem>>, vector<8x8xf32>
    %cst_243 = arith.constant dense<0.000000e+00> : vector<8x512xf32>
    %458 = tpu.matmul %457, %456, %cst_243 {dimension_numbers = #tpu.dot_dimension_numbers<[1], [0], [0], [1], [0, 0, 1, 1], [], []>} : vector<8x8xf32>, vector<8x512xf32>, vector<8x512xf32> -> vector<8x512xf32>
    %cst_244 = arith.constant 0.000000e+00 : f32
    %459 = vector.broadcast %cst_244 : f32 to vector<8x512xf32>
    %460 = arith.maximumf %458, %459 : vector<8x512xf32>
    %c40 = arith.constant 40 : index
    %c0_245 = arith.constant 0 : index
    %c0_246 = arith.constant 0 : index
    %461 = vector.load %arg2[%c40, %c0_245, %c0_246] : memref<45x8x1xf32, #tpu.memory_space<vmem>>, vector<1x8x1xf32>
    %462 = vector.shape_cast %461 : vector<1x8x1xf32> to vector<8x1xf32>
    %463 = vector.broadcast %462 : vector<8x1xf32> to vector<8x512xf32>
    %464 = arith.mulf %460, %463 : vector<8x512xf32>
    %c17_i32_247 = arith.constant 17 : i32
    %465 = tpu.dynamic_rotate %460 by %c17_i32_247 dim 1 : vector<8x512xf32>, i32 -> vector<8x512xf32>
    %c0_248 = arith.constant 0 : index
    %c0_249 = arith.constant 0 : index
    %c0_250 = arith.constant 0 : index
    %466 = vector.load %arg1[%c0_248, %c0_249, %c0_250] : memref<18x1x512xf32, #tpu.memory_space<vmem>>, vector<1x1x512xf32>
    %467 = vector.shape_cast %466 : vector<1x1x512xf32> to vector<1x512xf32>
    %468 = vector.broadcast %467 : vector<1x512xf32> to vector<8x512xf32>
    %469 = arith.mulf %465, %468 : vector<8x512xf32>
    %c36 = arith.constant 36 : index
    %c0_251 = arith.constant 0 : index
    %c0_252 = arith.constant 0 : index
    %470 = vector.load %arg2[%c36, %c0_251, %c0_252] : memref<45x8x1xf32, #tpu.memory_space<vmem>>, vector<1x8x1xf32>
    %471 = vector.shape_cast %470 : vector<1x8x1xf32> to vector<8x1xf32>
    %472 = vector.broadcast %471 : vector<8x1xf32> to vector<8x512xf32>
    %473 = arith.mulf %469, %472 : vector<8x512xf32>
    %474 = arith.addf %464, %473 : vector<8x512xf32>
    %c16_i32_253 = arith.constant 16 : i32
    %475 = tpu.dynamic_rotate %460 by %c16_i32_253 dim 1 : vector<8x512xf32>, i32 -> vector<8x512xf32>
    %c1_254 = arith.constant 1 : index
    %c0_255 = arith.constant 0 : index
    %c0_256 = arith.constant 0 : index
    %476 = vector.load %arg1[%c1_254, %c0_255, %c0_256] : memref<18x1x512xf32, #tpu.memory_space<vmem>>, vector<1x1x512xf32>
    %477 = vector.shape_cast %476 : vector<1x1x512xf32> to vector<1x512xf32>
    %478 = vector.broadcast %477 : vector<1x512xf32> to vector<8x512xf32>
    %479 = arith.mulf %475, %478 : vector<8x512xf32>
    %c37 = arith.constant 37 : index
    %c0_257 = arith.constant 0 : index
    %c0_258 = arith.constant 0 : index
    %480 = vector.load %arg2[%c37, %c0_257, %c0_258] : memref<45x8x1xf32, #tpu.memory_space<vmem>>, vector<1x8x1xf32>
    %481 = vector.shape_cast %480 : vector<1x8x1xf32> to vector<8x1xf32>
    %482 = vector.broadcast %481 : vector<8x1xf32> to vector<8x512xf32>
    %483 = arith.mulf %479, %482 : vector<8x512xf32>
    %484 = arith.addf %474, %483 : vector<8x512xf32>
    %c15_i32_259 = arith.constant 15 : i32
    %485 = tpu.dynamic_rotate %460 by %c15_i32_259 dim 1 : vector<8x512xf32>, i32 -> vector<8x512xf32>
    %c2_260 = arith.constant 2 : index
    %c0_261 = arith.constant 0 : index
    %c0_262 = arith.constant 0 : index
    %486 = vector.load %arg1[%c2_260, %c0_261, %c0_262] : memref<18x1x512xf32, #tpu.memory_space<vmem>>, vector<1x1x512xf32>
    %487 = vector.shape_cast %486 : vector<1x1x512xf32> to vector<1x512xf32>
    %488 = vector.broadcast %487 : vector<1x512xf32> to vector<8x512xf32>
    %489 = arith.mulf %485, %488 : vector<8x512xf32>
    %c38 = arith.constant 38 : index
    %c0_263 = arith.constant 0 : index
    %c0_264 = arith.constant 0 : index
    %490 = vector.load %arg2[%c38, %c0_263, %c0_264] : memref<45x8x1xf32, #tpu.memory_space<vmem>>, vector<1x8x1xf32>
    %491 = vector.shape_cast %490 : vector<1x8x1xf32> to vector<8x1xf32>
    %492 = vector.broadcast %491 : vector<8x1xf32> to vector<8x512xf32>
    %493 = arith.mulf %489, %492 : vector<8x512xf32>
    %494 = arith.addf %484, %493 : vector<8x512xf32>
    %c1_i32_265 = arith.constant 1 : i32
    %495 = tpu.dynamic_rotate %460 by %c1_i32_265 dim 1 : vector<8x512xf32>, i32 -> vector<8x512xf32>
    %c3_266 = arith.constant 3 : index
    %c0_267 = arith.constant 0 : index
    %c0_268 = arith.constant 0 : index
    %496 = vector.load %arg1[%c3_266, %c0_267, %c0_268] : memref<18x1x512xf32, #tpu.memory_space<vmem>>, vector<1x1x512xf32>
    %497 = vector.shape_cast %496 : vector<1x1x512xf32> to vector<1x512xf32>
    %498 = vector.broadcast %497 : vector<1x512xf32> to vector<8x512xf32>
    %499 = arith.mulf %495, %498 : vector<8x512xf32>
    %c39 = arith.constant 39 : index
    %c0_269 = arith.constant 0 : index
    %c0_270 = arith.constant 0 : index
    %500 = vector.load %arg2[%c39, %c0_269, %c0_270] : memref<45x8x1xf32, #tpu.memory_space<vmem>>, vector<1x8x1xf32>
    %501 = vector.shape_cast %500 : vector<1x8x1xf32> to vector<8x1xf32>
    %502 = vector.broadcast %501 : vector<8x1xf32> to vector<8x512xf32>
    %503 = arith.mulf %499, %502 : vector<8x512xf32>
    %504 = arith.addf %494, %503 : vector<8x512xf32>
    %c511_i32_271 = arith.constant 511 : i32
    %505 = tpu.dynamic_rotate %460 by %c511_i32_271 dim 1 : vector<8x512xf32>, i32 -> vector<8x512xf32>
    %c5_272 = arith.constant 5 : index
    %c0_273 = arith.constant 0 : index
    %c0_274 = arith.constant 0 : index
    %506 = vector.load %arg1[%c5_272, %c0_273, %c0_274] : memref<18x1x512xf32, #tpu.memory_space<vmem>>, vector<1x1x512xf32>
    %507 = vector.shape_cast %506 : vector<1x1x512xf32> to vector<1x512xf32>
    %508 = vector.broadcast %507 : vector<1x512xf32> to vector<8x512xf32>
    %509 = arith.mulf %505, %508 : vector<8x512xf32>
    %c41 = arith.constant 41 : index
    %c0_275 = arith.constant 0 : index
    %c0_276 = arith.constant 0 : index
    %510 = vector.load %arg2[%c41, %c0_275, %c0_276] : memref<45x8x1xf32, #tpu.memory_space<vmem>>, vector<1x8x1xf32>
    %511 = vector.shape_cast %510 : vector<1x8x1xf32> to vector<8x1xf32>
    %512 = vector.broadcast %511 : vector<8x1xf32> to vector<8x512xf32>
    %513 = arith.mulf %509, %512 : vector<8x512xf32>
    %514 = arith.addf %504, %513 : vector<8x512xf32>
    %c497_i32_277 = arith.constant 497 : i32
    %515 = tpu.dynamic_rotate %460 by %c497_i32_277 dim 1 : vector<8x512xf32>, i32 -> vector<8x512xf32>
    %c6_278 = arith.constant 6 : index
    %c0_279 = arith.constant 0 : index
    %c0_280 = arith.constant 0 : index
    %516 = vector.load %arg1[%c6_278, %c0_279, %c0_280] : memref<18x1x512xf32, #tpu.memory_space<vmem>>, vector<1x1x512xf32>
    %517 = vector.shape_cast %516 : vector<1x1x512xf32> to vector<1x512xf32>
    %518 = vector.broadcast %517 : vector<1x512xf32> to vector<8x512xf32>
    %519 = arith.mulf %515, %518 : vector<8x512xf32>
    %c42 = arith.constant 42 : index
    %c0_281 = arith.constant 0 : index
    %c0_282 = arith.constant 0 : index
    %520 = vector.load %arg2[%c42, %c0_281, %c0_282] : memref<45x8x1xf32, #tpu.memory_space<vmem>>, vector<1x8x1xf32>
    %521 = vector.shape_cast %520 : vector<1x8x1xf32> to vector<8x1xf32>
    %522 = vector.broadcast %521 : vector<8x1xf32> to vector<8x512xf32>
    %523 = arith.mulf %519, %522 : vector<8x512xf32>
    %524 = arith.addf %514, %523 : vector<8x512xf32>
    %c496_i32_283 = arith.constant 496 : i32
    %525 = tpu.dynamic_rotate %460 by %c496_i32_283 dim 1 : vector<8x512xf32>, i32 -> vector<8x512xf32>
    %c7_284 = arith.constant 7 : index
    %c0_285 = arith.constant 0 : index
    %c0_286 = arith.constant 0 : index
    %526 = vector.load %arg1[%c7_284, %c0_285, %c0_286] : memref<18x1x512xf32, #tpu.memory_space<vmem>>, vector<1x1x512xf32>
    %527 = vector.shape_cast %526 : vector<1x1x512xf32> to vector<1x512xf32>
    %528 = vector.broadcast %527 : vector<1x512xf32> to vector<8x512xf32>
    %529 = arith.mulf %525, %528 : vector<8x512xf32>
    %c43 = arith.constant 43 : index
    %c0_287 = arith.constant 0 : index
    %c0_288 = arith.constant 0 : index
    %530 = vector.load %arg2[%c43, %c0_287, %c0_288] : memref<45x8x1xf32, #tpu.memory_space<vmem>>, vector<1x8x1xf32>
    %531 = vector.shape_cast %530 : vector<1x8x1xf32> to vector<8x1xf32>
    %532 = vector.broadcast %531 : vector<8x1xf32> to vector<8x512xf32>
    %533 = arith.mulf %529, %532 : vector<8x512xf32>
    %534 = arith.addf %524, %533 : vector<8x512xf32>
    %c495_i32_289 = arith.constant 495 : i32
    %535 = tpu.dynamic_rotate %460 by %c495_i32_289 dim 1 : vector<8x512xf32>, i32 -> vector<8x512xf32>
    %c8_290 = arith.constant 8 : index
    %c0_291 = arith.constant 0 : index
    %c0_292 = arith.constant 0 : index
    %536 = vector.load %arg1[%c8_290, %c0_291, %c0_292] : memref<18x1x512xf32, #tpu.memory_space<vmem>>, vector<1x1x512xf32>
    %537 = vector.shape_cast %536 : vector<1x1x512xf32> to vector<1x512xf32>
    %538 = vector.broadcast %537 : vector<1x512xf32> to vector<8x512xf32>
    %539 = arith.mulf %535, %538 : vector<8x512xf32>
    %c44 = arith.constant 44 : index
    %c0_293 = arith.constant 0 : index
    %c0_294 = arith.constant 0 : index
    %540 = vector.load %arg2[%c44, %c0_293, %c0_294] : memref<45x8x1xf32, #tpu.memory_space<vmem>>, vector<1x8x1xf32>
    %541 = vector.shape_cast %540 : vector<1x8x1xf32> to vector<8x1xf32>
    %542 = vector.broadcast %541 : vector<8x1xf32> to vector<8x512xf32>
    %543 = arith.mulf %539, %542 : vector<8x512xf32>
    %544 = arith.addf %534, %543 : vector<8x512xf32>
    %cst_295 = arith.constant dense<0.000000e+00> : vector<8xf32>
    %545 = vector.multi_reduction <add>, %544, %cst_295 [1] : vector<8x512xf32> to vector<8xf32>
    %546 = vector.shape_cast %545 : vector<8xf32> to vector<8x1xf32>
    %547 = arith.mulf %544, %544 : vector<8x512xf32>
    %cst_296 = arith.constant dense<0.000000e+00> : vector<8xf32>
    %548 = vector.multi_reduction <add>, %547, %cst_296 [1] : vector<8x512xf32> to vector<8xf32>
    %549 = vector.shape_cast %548 : vector<8xf32> to vector<8x1xf32>
    %cst_297 = arith.constant 0.001953125 : f32
    %550 = vector.broadcast %cst_297 : f32 to vector<8x1xf32>
    %551 = arith.mulf %546, %550 : vector<8x1xf32>
    %cst_298 = arith.constant 0.001953125 : f32
    %552 = vector.broadcast %cst_298 : f32 to vector<8x1xf32>
    %553 = arith.mulf %549, %552 : vector<8x1xf32>
    %554 = arith.mulf %551, %551 : vector<8x1xf32>
    %555 = arith.subf %553, %554 : vector<8x1xf32>
    %cst_299 = arith.constant 0.000000e+00 : f32
    %556 = vector.broadcast %cst_299 : f32 to vector<8x1xf32>
    %557 = arith.maximumf %555, %556 : vector<8x1xf32>
    %c8_300 = arith.constant 8 : index
    %c0_301 = arith.constant 0 : index
    %c0_302 = arith.constant 0 : index
    %558 = vector.load %arg3[%c8_300, %c0_301, %c0_302] : memref<10x8x1xf32, #tpu.memory_space<vmem>>, vector<1x8x1xf32>
    %559 = vector.shape_cast %558 : vector<1x8x1xf32> to vector<8x1xf32>
    %c9_303 = arith.constant 9 : index
    %c0_304 = arith.constant 0 : index
    %c0_305 = arith.constant 0 : index
    %560 = vector.load %arg3[%c9_303, %c0_304, %c0_305] : memref<10x8x1xf32, #tpu.memory_space<vmem>>, vector<1x8x1xf32>
    %561 = vector.shape_cast %560 : vector<1x8x1xf32> to vector<8x1xf32>
    %cst_306 = arith.constant 9.99999974E-6 : f32
    %562 = vector.broadcast %cst_306 : f32 to vector<8x1xf32>
    %563 = arith.addf %557, %562 : vector<8x1xf32>
    %564 = math.rsqrt %563 : vector<8x1xf32>
    %565 = arith.mulf %559, %564 : vector<8x1xf32>
    %566 = arith.mulf %551, %565 : vector<8x1xf32>
    %567 = arith.subf %561, %566 : vector<8x1xf32>
    %568 = vector.broadcast %565 : vector<8x1xf32> to vector<8x512xf32>
    %569 = arith.mulf %544, %568 : vector<8x512xf32>
    %570 = vector.broadcast %567 : vector<8x1xf32> to vector<8x512xf32>
    %571 = arith.addf %569, %570 : vector<8x512xf32>
    %cst_307 = arith.constant 0.000000e+00 : f32
    %572 = vector.broadcast %cst_307 : f32 to vector<8x512xf32>
    %573 = arith.maximumf %571, %572 : vector<8x512xf32>
    %c0_308 = arith.constant 0 : index
    %c0_309 = arith.constant 0 : index
    %574 = vector.load %arg4[%c0_308, %c0_309] : memref<48x8xf32, #tpu.memory_space<vmem>>, vector<16x8xf32>
    %cst_310 = arith.constant dense<0.000000e+00> : vector<16x512xf32>
    %575 = tpu.matmul %574, %113, %cst_310 {dimension_numbers = #tpu.dot_dimension_numbers<[1], [0], [0], [1], [0, 0, 1, 1], [], []>} : vector<16x8xf32>, vector<8x512xf32>, vector<16x512xf32> -> vector<16x512xf32>
    %cst_311 = arith.constant 0.000000e+00 : f32
    %576 = vector.broadcast %cst_311 : f32 to vector<16x512xf32>
    %577 = arith.maximumf %575, %576 : vector<16x512xf32>
    %c0_312 = arith.constant 0 : index
    %c0_313 = arith.constant 0 : index
    %578 = vector.load %arg5[%c0_312, %c0_313] : memref<32x512xf32, #tpu.memory_space<vmem>>, vector<16x512xf32>
    tpu.vector_store %arg5[%c0_312, %c0_313], %577 {strides = array<i32>} : memref<32x512xf32, #tpu.memory_space<vmem>>, vector<16x512xf32>,
    %c24_314 = arith.constant 24 : index
    %c0_315 = arith.constant 0 : index
    %579 = vector.load %arg4[%c24_314, %c0_315] : memref<48x8xf32, #tpu.memory_space<vmem>>, vector<8x8xf32>
    %cst_316 = arith.constant dense<0.000000e+00> : vector<8x512xf32>
    %580 = tpu.matmul %579, %343, %cst_316 {dimension_numbers = #tpu.dot_dimension_numbers<[1], [0], [0], [1], [0, 0, 1, 1], [], []>} : vector<8x8xf32>, vector<8x512xf32>, vector<8x512xf32> -> vector<8x512xf32>
    %cst_317 = arith.constant 0.000000e+00 : f32
    %581 = vector.broadcast %cst_317 : f32 to vector<8x512xf32>
    %582 = arith.maximumf %580, %581 : vector<8x512xf32>
    %c16_318 = arith.constant 16 : index
    %c0_319 = arith.constant 0 : index
    %583 = vector.load %arg5[%c16_318, %c0_319] : memref<32x512xf32, #tpu.memory_space<vmem>>, vector<8x512xf32>
    tpu.vector_store %arg5[%c16_318, %c0_319], %582 {strides = array<i32>} : memref<32x512xf32, #tpu.memory_space<vmem>>, vector<8x512xf32>,
    %c40_320 = arith.constant 40 : index
    %c0_321 = arith.constant 0 : index
    %584 = vector.load %arg4[%c40_320, %c0_321] : memref<48x8xf32, #tpu.memory_space<vmem>>, vector<8x8xf32>
    %cst_322 = arith.constant dense<0.000000e+00> : vector<8x512xf32>
    %585 = tpu.matmul %584, %573, %cst_322 {dimension_numbers = #tpu.dot_dimension_numbers<[1], [0], [0], [1], [0, 0, 1, 1], [], []>} : vector<8x8xf32>, vector<8x512xf32>, vector<8x512xf32> -> vector<8x512xf32>
    %cst_323 = arith.constant 0.000000e+00 : f32
    %586 = vector.broadcast %cst_323 : f32 to vector<8x512xf32>
    %587 = arith.maximumf %585, %586 : vector<8x512xf32>
    %c24_324 = arith.constant 24 : index
    %c0_325 = arith.constant 0 : index
    %588 = vector.load %arg5[%c24_324, %c0_325] : memref<32x512xf32, #tpu.memory_space<vmem>>, vector<8x512xf32>
    tpu.vector_store %arg5[%c24_324, %c0_325], %587 {strides = array<i32>} : memref<32x512xf32, #tpu.memory_space<vmem>>, vector<8x512xf32>,
    return
  }
}

</mosaic_0001>

<bundles_post_ra>
// kernel: ssh_context_my.1
= control target key start
LH: loop header
LB: loop body
LE: loop exit
PB: predicated region body
PF: predicated region fallthrough
CT: control target
= control target key end

     0   :  { %v2412_v2 = vmov 0   ;;  %s2413_s22 = smov 34   ;;  %s2414_s23 = smov 32   ;;  %v43_v38 = vlaneseq  ;;  %vm852_vm11 = vcmask 64512   ;;  %s4540_s0 = inlined_call_operand.vmem [shape: f32[8,512], index: 0, kind: input, shape index: {}]   ;;  %s4541_s2 = inlined_call_operand.vmem [shape: f32[45,8,1], index: 2, kind: input, shape index: {}]   ;;  %s4542_s1 = inlined_call_operand.vmem [shape: f32[18,1,512], index: 1, kind: input, shape index: {}]   ;;  %s4543_s3 = inlined_call_operand.vmem [shape: f32[10,8,1], index: 3, kind: input, shape index: {}]   ;;  %s4544_s4 = inlined_call_operand.vmem [shape: f32[48,8], index: 4, kind: input, shape index: {}]   ;;  %s4545_s5 = inlined_call_operand.vmem [shape: f32[32,512], index: 5, kind: output, shape index: {}]  }
   0x1   :  { %v2462_v0 = vld [vmem:[%s4540_s0 + $0x18] sm:$0xff]  ;;  %v2467_v1 = vld [vmem:[%s4540_s0] sm:$0xff]  ;;  %2396 = vset.pattern.permute.xlu2 %v2412_v2  ;;  %2395 = vset.pattern.permute.xlu1 %v2412_v2  ;;  %v2478_v3 = vld [vmem:[%s4540_s0 + $0x10] sm:$0xff]  ;;  %s2415_s7 = smov 30   ;;  %s2416_s10 = smov 2  }
   0x2   :  { %454 = vrot.lane.b32.xlu1 %v2462_v0, %s2413_s22  ;;  %491 = vrot.lane.b32.xlu2 %v2467_v1, %s2414_s23  ;;  %v2483_v4 = vld [vmem:[%s4540_s0 + $0x8] sm:$0xff]  ;;  %v2306_v7 = vld [vmem:[%s4541_s2 + $0x50] sm:$0xff]  ;;  %s2417_s13 = smov 126   ;;  %s2418_s16 = smov 98   ;;  %v2615_v39 = vand.u32 127, %v43_v38 }
   0x3   :  { %448 = vrot.lane.b32.xlu0 %v2467_v1, %s2413_s22  ;;  %v2302_v5 = vld [vmem:[%s4541_s2 + $0x68] sm:$0xff]  ;;  %v2308_v8 = vld [vmem:[%s4541_s2 + $0x58] sm:$0xff]  ;;  %v2310_v9 = vld [vmem:[%s4541_s2 + $0x60] sm:$0xff]  ;;  %s2419_s19 = smov 96   ;;  %s2420_s24 = smov 94  }
   0x4   :  { %2397 = vset.pattern.permute.xlu0 %v2412_v2  ;;  %v2304_v6 = vld [vmem:[%s4541_s2 + $0x48] sm:$0xff]  ;;  %v2312_v10 = vld [vmem:[%s4541_s2 + $0x70] sm:$0xff]  ;;  %v2314_v11 = vld [vmem:[%s4541_s2 + $0x78] sm:$0xff]  ;;  %s2421_s6 = smov 17   ;;  %s2422_s8 = smov 16   ;;  %vm456_vm0 = vcmp.lt.s32.totalorder %v2615_v39, 34 }
   0x5   :  { %v2316_v13 = vld [vmem:[%s4541_s2 + $0x80] sm:$0xff]  ;;  %v2318_v15 = vld [vmem:[%s4541_s2 + $0x88] sm:$0xff]  ;;  %vm499_vm1 = vcmp.lt.s32.totalorder %v2615_v39, 32  ;;  %vm542_vm2 = vcmp.lt.s32.totalorder %v2615_v39, 30  ;;  %vm585_vm3 = vcmp.lt.s32.totalorder %v2615_v39, 2  ;;  %vm628_vm4 = vcmp.lt.s32.totalorder %v2615_v39, 126 }
   0x6   :  { %v2286_v17 = vld [vmem:[%s4541_s2 + $0x20] sm:$0xff]  ;;  %v2632_v44 = vld [vmem:[%s4542_s1 + $0x28] sm:$0xf]  ;;  %v2642_v48 = vld [vmem:[%s4542_s1 + $0x2c] sm:$0xf]  ;;  %vm671_vm5 = vcmp.lt.s32.totalorder %v2615_v39, 98 }
   0x7   :  { %v2624_v42 = vld [vmem:[%s4542_s1 + $0x24] sm:$0xf]  ;;  %v4576_v47 = vperm.slane %v2632_v44, 1  ;;  %v4546_v54 = vperm.slane %v2642_v48, 2  ;;  %v4555_v60 = vperm.slane %v2632_v44, 0  ;;  %v4575_v62 = vperm.slane %v2642_v48, 1 }
   0x8   :  { %v4549_v45 = vperm.slane %v2624_v42, 0  ;;  %v4548_v52 = vperm.slane %v2624_v42, 3  ;;  %v4577_v55 = vperm.slane %v2624_v42, 1  ;;  %v4547_v56 = vperm.slane %v2624_v42, 2  ;;  %s2423_s17 = smov 15   ;;  %s2424_s18 = smov 1  }
   0x9   :  { %v4551_v63 = vperm.slane %v2632_v44, 2  ;;  %v4552_v2 = vperm.slane %v2632_v44, 3  ;;  %vm714_vm6 = vcmp.lt.s32.totalorder %v2615_v39, 96  ;;  %vm757_vm7 = vcmp.lt.s32.totalorder %v2615_v39, 94  ;;  %s2425_s25 = smov 127   ;;  %s2426_s28 = smov 113  }
   0xa   :  { %452 = vrot.lane.b32.xlu1 %v2478_v3, %s2413_s22  ;;  %493 = vrot.lane.b32.xlu2 %v2483_v4, %s2414_s23  ;;  %s2427_s20 = smov 112   ;;  %vm45_vm12 = vcmp.lt.s32.totalorder %v2615_v39, 17  ;;  %vm86_vm13 = vcmp.lt.s32.totalorder %v2615_v39, 16  ;;  %vm129_vm14 = vcmp.lt.s32.totalorder %v2615_v39, 15  ;;  %vm172_vm15 = vcmp.lt.s32.totalorder %v2615_v39, 1 }
   0xb   :  { %450 = vrot.lane.b32.xlu0 %v2483_v4, %s2413_s22 }
  0x12   :  { %441 = vperm.xlu1 %2395, %v2302_v5   ;;  %480 = vperm.xlu2 %2396, %v2304_v6  }
  0x13   :  { %497 = vrot.lane.b32.xlu0 %v2462_v0, %s2414_s23 }
  0x1a   :  { %534 = vrot.lane.b32.xlu1 %v2467_v1, %s2415_s7  ;;  %536 = vrot.lane.b32.xlu2 %v2483_v4, %s2415_s7 }
  0x1b   :  { %495 = vrot.lane.b32.xlu0 %v2478_v3, %s2414_s23 }
  0x22   :  { %523 = vperm.xlu1 %2395, %v2306_v7   ;;  %538 = vrot.lane.b32.xlu2 %v2478_v3, %s2415_s7  ;;  %v4553_v7 = vperm.slane %v2642_v48, 0 }
  0x23   :  { %540 = vrot.lane.b32.xlu0 %v2462_v0, %s2415_s7 }
  0x2a   :  { %579 = vrot.lane.b32.xlu1 %v2483_v4, %s2416_s10  ;;  %583 = vrot.lane.b32.xlu2 %v2462_v0, %s2416_s10 }
  0x2b   :  { %577 = vrot.lane.b32.xlu0 %v2467_v1, %s2416_s10 }
  0x32   :  { %581 = vrot.lane.b32.xlu1 %v2478_v3, %s2416_s10  ;;  %620 = vrot.lane.b32.xlu2 %v2467_v1, %s2417_s13 }
  0x33   :  { %566 = vperm.xlu0 %2397, %v2308_v8   ;;  %v4550_v8 = vperm.slane %v2642_v48, 3 }
  0x3a   :  { %622 = vrot.lane.b32.xlu1 %v2483_v4, %s2417_s13  ;;  %624 = vrot.lane.b32.xlu2 %v2478_v3, %s2417_s13 }
  0x3b   :  { %609 = vperm.xlu0 %2397, %v2310_v9   ;;  %v2681_v9 = vld [vmem:[%s4542_s1 + $0x30] sm:$0xf] }
  0x3c   :  { %v4574_v38 = vperm.slane %v2681_v9, 1 }
  0x42   :  { %626 = vrot.lane.b32.xlu1 %v2462_v0, %s2417_s13  ;;  %663 = vrot.lane.b32.xlu2 %v2467_v1, %s2418_s16 }
  0x43   :  { %665 = vrot.lane.b32.xlu0 %v2483_v4, %s2418_s16 }
  0x4a   :  { %667 = vrot.lane.b32.xlu1 %v2478_v3, %s2418_s16  ;;  %652 = vperm.xlu2 %2396, %v2312_v10  }
  0x4b   :  { %669 = vrot.lane.b32.xlu0 %v2462_v0, %s2418_s16 }
  0x52   :  { %706 = vrot.lane.b32.xlu1 %v2467_v1, %s2419_s19  ;;  %708 = vrot.lane.b32.xlu2 %v2483_v4, %s2419_s19 }
  0x53   :  { %710 = vrot.lane.b32.xlu0 %v2478_v3, %s2419_s19 }
  0x5a   :  { %695 = vperm.xlu1 %2395, %v2314_v11   ;;  %712 = vrot.lane.b32.xlu2 %v2462_v0, %s2419_s19 }
  0x5b   :  { %749 = vrot.lane.b32.xlu0 %v2467_v1, %s2420_s24 }
  0x5c   :  { %v2558_v12 = vpop.permute.xlu2 %491 }
  0x62   :  { %751 = vrot.lane.b32.xlu1 %v2483_v4, %s2420_s24  ;;  %753 = vrot.lane.b32.xlu2 %v2478_v3, %s2420_s24 }
  0x63   :  { %738 = vperm.xlu0 %2397, %v2316_v13  }
  0x64   :  { %v2567_v14 = vpop.permute.xlu2 %493 }
  0x65   :  { %v502_v49 = vsel %vm499_vm1, %v2558_v12, %v2567_v14 }
  0x66   :  { %v516_v57 = vmul.f32 %v4576_v47, %v502_v49 }
  0x6a   :  { %755 = vrot.lane.b32.xlu1 %v2462_v0, %s2420_s24  ;;  %781 = vperm.xlu2 %2396, %v2318_v15  }
  0x6c   :  { %v2574_v16 = vpop.permute.xlu2 %480 }
  0x72   :  { %28 = vperm.xlu2 %2396, %v2286_v17  }
  0x74   :  { %v455_v18 = vpop.permute.xlu1 %454  ;;  %v2579_v19 = vpop.permute.xlu2 %536 }
  0x75   :  { %v449_v20 = vpop.permute.xlu0 %448 }
  0x76   :  { %v460_v46 = vsel %vm456_vm0, %v455_v18, %v449_v20 }
  0x77   :  { %v472_v51 = vmul.f32 %v4549_v45, %v460_v46  ;;  %v4569_v46 = vperm.slane %v2681_v9, 2 }
  0x79   :  { %v483_v5 = vmul.f32 %v2574_v16, %v472_v51 }
  0x7a   :  { %35 = vrot.lane.b32.xlu2 %v2467_v1, %s2421_s6 }
  0x7c   :  { %v453_v21 = vpop.permute.xlu1 %452  ;;  %v2583_v22 = vpop.permute.xlu2 %538 }
  0x7d   :  { %v451_v23 = vpop.permute.xlu0 %450  ;;  %v457_v58 = vsel %vm456_vm0, %v453_v21, %v455_v18  ;;  %v544_v6 = vsel %vm542_vm2, %v2579_v19, %v2583_v22 }
  0x7e   :  { %v459_v59 = vsel %vm456_vm0, %v449_v20, %v451_v23  ;;  %v458_v61 = vsel %vm456_vm0, %v451_v23, %v453_v21  ;;  %v475_v11 = vmul.f32 %v4548_v52, %v457_v58  ;;  %v560_v23 = vmul.f32 %v4546_v54, %v544_v6 }
  0x7f   :  { %v473_v13 = vmul.f32 %v4577_v55, %v459_v59  ;;  %v474_v17 = vmul.f32 %v4547_v56, %v458_v61  ;;  %v4570_v54 = vperm.slane %v2681_v9, 3 }
  0x80   :  { %v486_v59 = vmul.f32 %v2574_v16, %v475_v11 }
  0x81   :  { %v484_v56 = vmul.f32 %v2574_v16, %v473_v13  ;;  %v485_v52 = vmul.f32 %v2574_v16, %v474_v17 }
  0x82   :  { %37 = vrot.lane.b32.xlu2 %v2483_v4, %s2421_s6 }
  0x84   :  { %v2587_v24 = vpop.permute.xlu1 %441  ;;  %v2589_v26 = vpop.permute.xlu2 %583 }
  0x85   :  { %v498_v25 = vpop.permute.xlu0 %497  ;;  %v444_v18 = vmul.f32 %v2587_v24, %v2467_v1  ;;  %v445_v51 = vmul.f32 %v2587_v24, %v2483_v4 }
  0x86   :  { %v503_v15 = vsel %vm499_vm1, %v498_v25, %v2558_v12  ;;  %v4554_v12 = vperm.slane %v2681_v9, 0 }
  0x87   :  { %v488_v16 = vadd.f32 %v484_v56, %v445_v51 }
  0x8a   :  { %39 = vrot.lane.b32.xlu2 %v2478_v3, %s2421_s6 }
  0x8c   :  { %v2593_v27 = vpop.permute.xlu1 %534  ;;  %v2595_v29 = vpop.permute.xlu2 %620 }
  0x8d   :  { %v496_v28 = vpop.permute.xlu0 %495  ;;  %v545_v11 = vsel %vm542_vm2, %v2593_v27, %v2579_v19 }
  0x8e   :  { %v500_v20 = vsel %vm499_vm1, %v496_v28, %v498_v25  ;;  %v501_v21 = vsel %vm499_vm1, %v2567_v14, %v496_v28  ;;  %v446_v25 = vmul.f32 %v2587_v24, %v2478_v3  ;;  %v447_v14 = vmul.f32 %v2587_v24, %v2462_v0 }
  0x8f   :  { %v515_v28 = vmul.f32 %v4555_v60, %v503_v15  ;;  %v517_v61 = vmul.f32 %v4551_v63, %v501_v21  ;;  %v518_v6 = vmul.f32 %v4552_v2, %v500_v20  ;;  %v487_v24 = vadd.f32 %v483_v5, %v444_v18  ;;  %v2731_v15 = vld [vmem:[%s4542_s1 + $0x38] sm:$0xf] }
  0x90   :  { %v489_v5 = vadd.f32 %v485_v52, %v446_v25  ;;  %v490_v17 = vadd.f32 %v486_v59, %v447_v14  ;;  %v4572_v19 = vperm.slane %v2731_v15, 0  ;;  %v4567_v56 = vperm.slane %v2731_v15, 2 }
  0x91   :  { %v4568_v51 = vperm.slane %v2731_v15, 3 }
  0x92   :  { %78 = vrot.lane.b32.xlu2 %v2467_v1, %s2422_s8 }
  0x94   :  { %v2599_v30 = vpop.permute.xlu1 %523  ;;  %v2603_v32 = vpop.permute.xlu2 %624 }
  0x95   :  { %v2601_v31 = vpop.permute.xlu0 %540  ;;  %v526_v45 = vmul.f32 %v2599_v30, %v515_v28  ;;  %v527_v20 = vmul.f32 %v2599_v30, %v516_v57  ;;  %v528_v21 = vmul.f32 %v2599_v30, %v517_v61  ;;  %v529_v13 = vmul.f32 %v2599_v30, %v518_v6 }
  0x96   :  { %v546_v18 = vsel %vm542_vm2, %v2601_v31, %v2593_v27  ;;  %v543_v28 = vsel %vm542_vm2, %v2583_v22, %v2601_v31  ;;  %v4573_v57 = vperm.slane %v2731_v15, 1  ;;  %v559_v30 = vmul.f32 %v4575_v62, %v545_v11  ;;  %v2760_v22 = vld [vmem:[%s4542_s1 + $0x3c] sm:$0xf] }
  0x97   :  { %v530_v52 = vadd.f32 %v526_v45, %v487_v24  ;;  %v531_v31 = vadd.f32 %v527_v20, %v488_v16  ;;  %v532_v25 = vadd.f32 %v528_v21, %v489_v5  ;;  %v533_v14 = vadd.f32 %v529_v13, %v490_v17 }
  0x98   :  { %v558_v59 = vmul.f32 %v4553_v7, %v546_v18  ;;  %v561_v45 = vmul.f32 %v4550_v8, %v543_v28  ;;  %v4571_v13 = vperm.slane %v2760_v22, 0  ;;  %v4563_v16 = vperm.slane %v2760_v22, 1 }
  0x99   :  { %v4562_v18 = vperm.slane %v2760_v22, 2  ;;  %v4566_v28 = vperm.slane %v2760_v22, 3 }
  0x9c   :  { %v2605_v33 = vpop.permute.xlu1 %579  ;;  %v2611_v36 = vpop.permute.xlu2 %663 }
  0x9d   :  { %v2607_v34 = vpop.permute.xlu0 %577 }
  0x9e   :  { %v588_v6 = vsel %vm585_vm3, %v2607_v34, %v2605_v33  ;;  %v589_v24 = vsel %vm585_vm3, %v2589_v26, %v2607_v34 }
  0xa4   :  { %v2609_v35 = vpop.permute.xlu1 %581  ;;  %v2627_v43 = vpop.permute.xlu2 %652 }
  0xa5   :  { %v2613_v37 = vpop.permute.xlu0 %566  ;;  %v586_v20 = vsel %vm585_vm3, %v2609_v35, %v2589_v26  ;;  %v587_v21 = vsel %vm585_vm3, %v2605_v33, %v2609_v35  ;;  %v601_v33 = vmul.f32 %v4554_v12, %v589_v24  ;;  %v602_v35 = vmul.f32 %v4574_v38, %v588_v6 }
  0xa6   :  { %v569_v34 = vmul.f32 %v2613_v37, %v558_v59  ;;  %v570_v5 = vmul.f32 %v2613_v37, %v559_v30  ;;  %v2808_v30 = vld [vmem:[%s4542_s1 + $0x40] sm:$0xf]  ;;  %v603_v59 = vmul.f32 %v4569_v46, %v587_v21  ;;  %v571_v24 = vmul.f32 %v2613_v37, %v560_v23 }
  0xa7   :  { %v572_v8 = vmul.f32 %v2613_v37, %v561_v45 }
  0xa8   :  { %v573_v12 = vadd.f32 %v569_v34, %v530_v52  ;;  %v574_v60 = vadd.f32 %v570_v5, %v531_v31  ;;  %v575_v31 = vadd.f32 %v571_v24, %v532_v25  ;;  %v4561_v25 = vperm.slane %v2808_v30, 2 }
  0xa9   :  { %v576_v34 = vadd.f32 %v572_v8, %v533_v14  ;;  %v2851_v14 = vld [vmem:[%s4542_s1 + $0x44] sm:$0xf] }
  0xac   :  { %v2617_v40 = vpop.permute.xlu1 %622  ;;  %v2683_v10 = vpop.permute.xlu2 %708 }
  0xad   :  { %v2619_v41 = vpop.permute.xlu0 %609  ;;  %v630_v17 = vsel %vm628_vm4, %v2617_v40, %v2603_v32  ;;  %v631_v26 = vsel %vm628_vm4, %v2595_v29, %v2617_v40  ;;  %v604_v40 = vmul.f32 %v4570_v54, %v586_v20  ;;  %v4565_v20 = vperm.slane %v2808_v30, 0 }
  0xae   :  { %v644_v6 = vmul.f32 %v4572_v19, %v631_v26  ;;  %v645_v63 = vmul.f32 %v4573_v57, %v630_v17  ;;  %v612_v2 = vmul.f32 %v2619_v41, %v601_v33  ;;  %v613_v7 = vmul.f32 %v2619_v41, %v602_v35 }
  0xaf   :  { %v614_v23 = vmul.f32 %v2619_v41, %v603_v59  ;;  %v615_v37 = vmul.f32 %v2619_v41, %v604_v40  ;;  %v4560_v17 = vperm.slane %v2808_v30, 3  ;;  %v4564_v26 = vperm.slane %v2808_v30, 1 }
  0xb0   :  { %v655_v33 = vmul.f32 %v2627_v43, %v644_v6  ;;  %v656_v35 = vmul.f32 %v2627_v43, %v645_v63  ;;  %v616_v59 = vadd.f32 %v612_v2, %v573_v12  ;;  %v617_v40 = vadd.f32 %v613_v7, %v574_v60 }
  0xb1   :  { %v618_v24 = vadd.f32 %v614_v23, %v575_v31  ;;  %v619_v6 = vadd.f32 %v615_v37, %v576_v34 }
  0xb2   :  { %v659_v37 = vadd.f32 %v655_v33, %v616_v59 }
  0xb4   :  { %v2648_v50 = vpop.permute.xlu1 %626  ;;  %v2755_v27 = vpop.permute.xlu2 %712 }
  0xb5   :  { %v2653_v53 = vpop.permute.xlu0 %665  ;;  %v629_v60 = vsel %vm628_vm4, %v2603_v32, %v2648_v50  ;;  %v632_v63 = vsel %vm628_vm4, %v2648_v50, %v2595_v29  ;;  %v4557_v32 = vperm.slane %v2851_v14, 0 }
  0xb6   :  { %v674_v45 = vsel %vm671_vm5, %v2611_v36, %v2653_v53  ;;  %v646_v29 = vmul.f32 %v4567_v56, %v629_v60  ;;  %v647_v50 = vmul.f32 %v4568_v51, %v632_v63 }
  0xb8   :  { %v657_v63 = vmul.f32 %v2627_v43, %v646_v29 }
  0xbc   :  { %v2707_v49 = vpop.permute.xlu1 %667  ;;  %v2834_v5 = vpop.permute.xlu2 %753 }
  0xbd   :  { %v2717_v58 = vpop.permute.xlu0 %669  ;;  %v673_v21 = vsel %vm671_vm5, %v2653_v53, %v2707_v49  ;;  %v687_v53 = vmul.f32 %v4571_v13, %v674_v45  ;;  %v660_v45 = vadd.f32 %v656_v35, %v617_v40 }
  0xbe   :  { %v688_v8 = vmul.f32 %v4563_v16, %v673_v21  ;;  %v4556_v21 = vperm.slane %v2851_v14, 1  ;;  %v672_v31 = vsel %vm671_vm5, %v2707_v49, %v2717_v58 }
  0xc4   :  { %v2764_v61 = vpop.permute.xlu1 %706 }
  0xc5   :  { %v2777_v11 = vpop.permute.xlu0 %710  ;;  %v717_v2 = vsel %vm714_vm6, %v2764_v61, %v2683_v10  ;;  %v718_v34 = vsel %vm714_vm6, %v2755_v27, %v2764_v61 }
  0xc6   :  { %v716_v7 = vsel %vm714_vm6, %v2683_v10, %v2777_v11  ;;  %v675_v10 = vsel %vm671_vm5, %v2717_v58, %v2611_v36  ;;  %v730_v33 = vmul.f32 %v4565_v20, %v717_v2  ;;  %v715_v35 = vsel %vm714_vm6, %v2777_v11, %v2755_v27 }
  0xc7   :  { %v731_v49 = vmul.f32 %v4564_v26, %v716_v7  ;;  %v658_v2 = vmul.f32 %v2627_v43, %v647_v50  ;;  %v689_v7 = vmul.f32 %v4562_v18, %v672_v31  ;;  %v4559_v43 = vperm.slane %v2851_v14, 2 }
  0xc8   :  { %v4558_v50 = vperm.slane %v2851_v14, 3  ;;  %v661_v31 = vadd.f32 %v657_v63, %v618_v24 }
  0xcc   :  { %v696_v52 = vpop.permute.xlu1 %695 }
  0xcd   :  { %v2838_v41 = vpop.permute.xlu0 %749  ;;  %v698_v12 = vmul.f32 %v696_v52, %v687_v53  ;;  %v699_v23 = vmul.f32 %v696_v52, %v688_v8  ;;  %v700_v29 = vmul.f32 %v696_v52, %v689_v7 }
  0xcf   :  { %v702_v40 = vadd.f32 %v698_v12, %v659_v37  ;;  %v703_v53 = vadd.f32 %v699_v23, %v660_v45  ;;  %v690_v12 = vmul.f32 %v4566_v28, %v675_v10  ;;  %v782_v23 = vpop.permute.xlu2 %781 }
  0xd4   :  { %v752_v59 = vpop.permute.xlu1 %751 }
  0xd5   :  { %v759_v36 = vsel %vm757_vm7, %v752_v59, %v2834_v5  ;;  %v760_v58 = vsel %vm757_vm7, %v2838_v41, %v752_v59  ;;  %v739_v61 = vpop.permute.xlu0 %738 }
  0xd6   :  { %v773_v8 = vmul.f32 %v4557_v32, %v760_v58  ;;  %v774_v27 = vmul.f32 %v4556_v21, %v759_v36  ;;  %v741_v11 = vmul.f32 %v739_v61, %v730_v33  ;;  %v742_v60 = vmul.f32 %v739_v61, %v731_v49 }
  0xd7   :  { %v733_v36 = vmul.f32 %v4560_v17, %v718_v34  ;;  %v732_v33 = vmul.f32 %v4561_v25, %v715_v35  ;;  %v701_v49 = vmul.f32 %v696_v52, %v690_v12  ;;  %v662_v21 = vadd.f32 %v658_v2, %v619_v6 }
  0xd8   :  { %v784_v37 = vmul.f32 %v782_v23, %v773_v8  ;;  %v785_v45 = vmul.f32 %v782_v23, %v774_v27  ;;  %v745_v59 = vadd.f32 %v741_v11, %v702_v40  ;;  %v746_v58 = vadd.f32 %v742_v60, %v703_v53 }
  0xd9   :  { %v743_v10 = vmul.f32 %v739_v61, %v732_v33  ;;  %v744_v32 = vmul.f32 %v739_v61, %v733_v36  ;;  %v704_v53 = vadd.f32 %v700_v29, %v661_v31  ;;  %v705_v35 = vadd.f32 %v701_v49, %v662_v21  ;;  %v64_v36 = vld [vmem:[%s4541_s2] sm:$0xff]  ;;  %v2288_v33 = vld [vmem:[%s4541_s2 + $0x8] sm:$0xff]  ;;  %v2292_v29 = vld [vmem:[%s4541_s2 + $0x18] sm:$0xff] }
  0xda   :  { %v2917_v27 = vadd.f32 %v784_v37, %v745_v59  ;;  %v2919_v40 = vadd.f32 %v785_v45, %v746_v58  ;;  %v2294_v49 = vld [vmem:[%s4541_s2 + $0x28] sm:$0xff] }
  0xdb   :  { %v747_v61 = vadd.f32 %v743_v10, %v704_v53  ;;  %v748_v11 = vadd.f32 %v744_v32, %v705_v35  ;;  %v2339_v31 = vld [vmem:[%s4541_s2 + $0xe8] sm:$0xff]  ;;  %v2336_v10 = vld [vmem:[%s4541_s2 + $0xf8] sm:$0xff]  ;;  %v2338_v53 = vld [vmem:[%s4541_s2 + $0xe0] sm:$0xff] }
  0xdc   :  { %v756_v8 = vpop.permute.xlu1 %755  ;;  %v797_v2 = vmul.f32 %v2917_v27, %v2917_v27  ;;  %v792_v21 = vadd.f32 %v2919_v40, %v2917_v27 }
  0xdd   :  { %v758_v34 = vsel %vm757_vm7, %v2834_v5, %v756_v8  ;;  %v761_v52 = vsel %vm757_vm7, %v756_v8, %v2838_v41  ;;  %v798_v5 = vmul.f32 %v2919_v40, %v2919_v40  ;;  %v2342_v8 = vld [vmem:[%s4541_s2 + $0x108] sm:$0xff] }
  0xde   :  { %v775_v24 = vmul.f32 %v4559_v43, %v758_v34  ;;  %v776_v6 = vmul.f32 %v4558_v50, %v761_v52  ;;  %v2341_v34 = vld [vmem:[%s4541_s2 + $0x100] sm:$0xff]  ;;  %v2344_v52 = vld [vmem:[%s4541_s2 + $0x118] sm:$0xff] }
  0xdf   :  { %v801_v37 = vadd.f32 %v798_v5, %v797_v2 }
  0xe0   :  { %v786_v60 = vmul.f32 %v782_v23, %v775_v24  ;;  %v787_v63 = vmul.f32 %v782_v23, %v776_v6 }
  0xe2   :  { %v2935_v7 = vadd.f32 %v786_v60, %v747_v61  ;;  %v2937_v41 = vadd.f32 %v787_v63, %v748_v11 }
  0xe4   :  { %v793_v12 = vadd.f32 %v792_v21, %v2935_v7  ;;  %v799_v32 = vmul.f32 %v2935_v7, %v2935_v7  ;;  %v800_v45 = vmul.f32 %v2937_v41, %v2937_v41 }
  0xe6   :  { %v794_v23 = vadd.f32 %v793_v12, %v2937_v41  ;;  %v802_v59 = vadd.f32 %v801_v37, %v799_v32 }
  0xe8   :  { %795 = vadd.xlane.f32.xlu0 %v794_v23  ;;  %v803_v58 = vadd.f32 %v802_v59, %v800_v45  ;;  %v2319_v23 = vld [vmem:[%s4543_s3 + $0x10] sm:$0xff] }
  0xea   :  { %804 = vadd.xlane.f32.xlu1 %v803_v58 }
  0xfc   :  { %41 = vrot.lane.b32.xlu0 %v2462_v0, %s2421_s6 }
 0x103   :  { %67 = vperm.xlu1 %2395, %v64_v36  }
 0x104   :  { %82 = vrot.lane.b32.xlu0 %v2478_v3, %s2422_s8 }
 0x10b   :  { %110 = vperm.xlu1 %2395, %v2288_v33   ;;  %v2320_v33 = vld [vmem:[%s4543_s3 + $0x18] sm:$0xff] }
 0x10c   :  { %121 = vrot.lane.b32.xlu0 %v2467_v1, %s2423_s17 }
 0x113   :  { %125 = vrot.lane.b32.xlu1 %v2478_v3, %s2423_s17 }
 0x114   :  { %127 = vrot.lane.b32.xlu0 %v2462_v0, %s2423_s17 }
 0x11b   :  { %164 = vrot.lane.b32.xlu1 %v2467_v1, %s2424_s18 }
 0x11c   :  { %166 = vrot.lane.b32.xlu0 %v2483_v4, %s2424_s18 }
 0x123   :  { %170 = vrot.lane.b32.xlu1 %v2462_v0, %s2424_s18 }
 0x124   :  { %196 = vperm.xlu0 %2397, %v2292_v29  }
 0x12b   :  { %209 = vrot.lane.b32.xlu1 %v2483_v4, %s2425_s25 }
 0x12c   :  { %211 = vrot.lane.b32.xlu0 %v2478_v3, %s2425_s25 }
 0x133   :  { %239 = vperm.xlu1 %2395, %v2294_v49   ;;  %v2290_v49 = vld [vmem:[%s4541_s2 + $0x10] sm:$0xff] }
 0x134   :  { %250 = vrot.lane.b32.xlu0 %v2467_v1, %s2426_s28 }
 0x13b   :  { %254 = vrot.lane.b32.xlu1 %v2478_v3, %s2426_s28 }
 0x13c   :  { %256 = vrot.lane.b32.xlu0 %v2462_v0, %s2426_s28 }
 0x143   :  { %1351 = vperm.xlu1 %2395, %v2339_v31   ;;  %v3018_v31 = vpop.permute.xlu2 %28 }
 0x144   :  { %1262 = vperm.xlu0 %2397, %v2336_v10   ;;  %4650 = vst [vmem:[#allocation2_spill] sm:$0xff] %v3018_v31  ;;  %v33_v26 = vmul.f32 %v3018_v31, %v2478_v3 }
 0x14b   :  { %1444 = vperm.xlu1 %2395, %v2342_v8   ;;  %v3022_v10 = vpop.permute.xlu2 %35 }
 0x14c   :  { %1320 = vperm.xlu0 %2397, %v2338_v53  }
 0x153   :  { %v3026_v8 = vpop.permute.xlu2 %37 }
 0x154   :  { %1413 = vperm.xlu0 %2397, %v2341_v34   ;;  %v2296_v34 = vld [vmem:[%s4541_s2 + $0x30] sm:$0xff] }
 0x15b   :  { %v796_v35 = vpop.xlane.xlu0 %795  ;;  %v40_v53 = vpop.permute.xlu2 %39 }
 0x15c   :  { %v806_v24 = vmul.f32 0.001953125, %v796_v35  ;;  %1506 = vperm.xlu0 %2397, %v2344_v52  }
 0x15d   :  { %v805_v6 = vpop.xlane.xlu1 %804 }
 0x15e   :  { %v808_v61 = vmul.f32 %v806_v24, %v806_v24  ;;  %v807_v11 = vmul.f32 0.001953125, %v805_v6 }
 0x160   :  { %v809_v60 = vsub.f32 %v807_v11, %v808_v61 }
 0x162   :  { %v810_v63 = vmax.f32 %v809_v60, 0.0 }
 0x163   :  { %v3039_v35 = vpop.permute.xlu2 %78 }
 0x164   :  { %v815_v2 = vadd.f32 1e-05, %v810_v63  ;;  %293 = vrot.lane.b32.xlu0 %v2467_v1, %s2427_s20  ;;  %4651 = vst [vmem:[#allocation3_spill] sm:$0xff] %v3039_v35 }
 0x166   :  { %2398 = vrsqrt.f32 %v815_v2  ;;  %vm822_vm9 = vweird.f32 %v815_v2 }
 0x16c   :  { %v2399_v5 = vpop.eup %2398 }
 0x16d   :  { %v817_v21 = vmul.f32 %v2399_v5, %v815_v2  ;;  %vm823_vm8 = vweird.f32 %v2399_v5 }
 0x16e   :  { %vm824_vm10 = vmor %vm822_vm9, %vm823_vm8  ;;  %v3037_v52 = vpop.permute.xlu0 %41  ;;  %vm215_vm8 = vcmp.lt.s32.totalorder %v2615_v39, 127  ;;  %vm258_vm9 = vcmp.lt.s32.totalorder %v2615_v39, 113 }
 0x16f   :  { %v818_v12 = vmul.f32 %v2399_v5, %v817_v21 }
 0x171   :  { %v819_v32 = vmul.f32 0.5, %v818_v12 }
 0x173   :  { %v820_v37 = vsub.f32 1.5, %v819_v32 }
 0x175   :  { %v821_v45 = vmul.f32 %v2399_v5, %v820_v37  ;;  %v3044_v6 = vpop.permute.xlu1 %67 }
 0x176   :  { %4652 = vst [vmem:[#allocation4_spill] sm:$0xff] %v3044_v6 }
 0x177   :  { %v825_v59 = vsel %vm824_vm10, %v2399_v5, %v821_v45 }
 0x178   :  { %v826_v58 = vmul.f32 %v2319_v23, %v825_v59 }
 0x17a   :  { %831 = vperm.xlu2 %2396, %v826_v58   ;;  %v827_v36 = vmul.f32 %v826_v58, %v806_v24  ;;  %v2337_v24 = vld [vmem:[%s4541_s2 + $0xd8] sm:$0xff] }
 0x17c   :  { %v828_v29 = vsub.f32 %v2320_v33, %v827_v36 }
 0x17d   :  { %v3055_v21 = vpop.permute.xlu1 %110 }
 0x17e   :  { %4653 = vst [vmem:[#allocation5_spill] sm:$0xff] %v3055_v21 }
 0x182   :  { %840 = vperm.xlu2 %2396, %v828_v29  }
 0x18a   :  { %80 = vrot.lane.b32.xlu2 %v2483_v4, %s2422_s8 }
 0x192   :  { %84 = vrot.lane.b32.xlu2 %v2462_v0, %s2422_s8 }
 0x19a   :  { %123 = vrot.lane.b32.xlu2 %v2483_v4, %s2423_s17 }
 0x1a2   :  { %153 = vperm.xlu2 %2396, %v2290_v49  }
 0x1aa   :  { %168 = vrot.lane.b32.xlu2 %v2478_v3, %s2424_s18 }
 0x1b2   :  { %207 = vrot.lane.b32.xlu2 %v2467_v1, %s2425_s25  ;;  %v3046_v1 = vpop.permute.xlu0 %82 }
 0x1ba   :  { %213 = vrot.lane.b32.xlu2 %v2462_v0, %s2425_s25  ;;  %v3057_v45 = vpop.permute.xlu0 %121 }
 0x1bb   :  { %4654 = vst [vmem:[#allocation6_spill] sm:$0xff] %v3057_v45 }
 0x1c2   :  { %252 = vrot.lane.b32.xlu2 %v2483_v4, %s2426_s28  ;;  %v2340_v4 = vld [vmem:[%s4541_s2 + $0xf0] sm:$0xff]  ;;  %v3071_v29 = vpop.permute.xlu0 %127 }
 0x1c3   :  { %4656 = vst [vmem:[#allocation8_spill] sm:$0xff] %v3071_v29 }
 0x1ca   :  { %282 = vperm.xlu2 %2396, %v2296_v34  }
 0x1d2   :  { %1289 = vperm.xlu2 %2396, %v2337_v24   ;;  %v3077_v24 = vpop.permute.xlu0 %166 }
 0x1d3   :  { %4659 = vst [vmem:[#allocation11_spill] sm:$0xff] %v3077_v24 }
 0x1d4   :  { %v832_v61 = vpop.permute.xlu2 %831 }
 0x1d5   :  { %v834_v11 = vmul.f32 %v832_v61, %v2917_v27  ;;  %v835_v60 = vmul.f32 %v832_v61, %v2919_v40  ;;  %v836_v63 = vmul.f32 %v832_v61, %v2935_v7  ;;  %v837_v2 = vmul.f32 %v832_v61, %v2937_v41  ;;  %v2343_v27 = vld [vmem:[%s4541_s2 + $0x110] sm:$0xff]  ;;  %v126_v41 = vpop.permute.xlu1 %125 }
 0x1d6   :  { %v851_v40 = vld [vmem:[%s4544_s4 + $0x10] sm:$0xff] }
 0x1da   :  { %1382 = vperm.xlu2 %2396, %v2340_v4  }
 0x1dc   :  { %v841_v5 = vpop.permute.xlu2 %840 }
 0x1dd   :  { %v843_v12 = vadd.f32 %v841_v5, %v834_v11  ;;  %v844_v32 = vadd.f32 %v841_v5, %v835_v60  ;;  %v845_v37 = vadd.f32 %v841_v5, %v836_v63  ;;  %v846_v23 = vadd.f32 %v841_v5, %v837_v2  ;;  %v3075_v34 = vpop.permute.xlu1 %164  ;;  %v3083_v11 = vpop.permute.xlu0 %196 }
 0x1de   :  { %4658 = vst [vmem:[#allocation10_spill] sm:$0xff] %v3075_v34 }
 0x1df   :  { %v847_v59 = vmax.f32 %v843_v12, 0.0  ;;  %v848_v58 = vmax.f32 %v844_v32, 0.0  ;;  %v849_v36 = vmax.f32 %v845_v37, 0.0  ;;  %v850_v33 = vmax.f32 %v846_v23, 0.0  ;;  %4662 = vst [vmem:[#allocation14_spill] sm:$0xff] %v3083_v11 }
 0x1e0   :  { %v3094_v12 = vld [vmem:[%s4542_s1] sm:$0xf] }
 0x1e1   :  { %871 = vmatpush.msra.mxu0 %v847_v59  ;;  %891 = vmatpush.msra.mxu1 %v848_v58  ;;  %v3100_v37 = vperm.slane %v3094_v12, 2  ;;  %v3103_v23 = vperm.slane %v3094_v12, 3  ;;  %v3108_v59 = vld [vmem:[%s4542_s1 + $0x4] sm:$0xf]  ;;  %v46_v58 = vsel %vm45_vm12, %v40_v53, %v3037_v52 }
 0x1e2   :  { %911 = vmatpush.msra.mxu2 %v849_v36  ;;  %931 = vmatpush.msra.mxu3 %v850_v33  ;;  %4669 = vst [vmem:[#allocation21_spill] sm:$0xff] %v3108_v59  ;;  %v47_v36 = vsel %vm45_vm12, %v3026_v8, %v40_v53  ;;  %v3120_v33 = vld [vmem:[%s4542_s1 + $0x8] sm:$0xf]  ;;  %v3126_v50 = vperm.slane %v3108_v59, 2  ;;  %v3129_v43 = vperm.slane %v3108_v59, 3 }
 0x1e3   :  { %1475 = vperm.xlu2 %2396, %v2343_v27   ;;  %2321 = vmatmul.msk.f32.vlgmr.msra.gmra.mxu0 %vm852_vm11, %v851_v40  ;;  %4667 = vst [vmem:[#allocation19_spill] sm:$0xff] %v3100_v37  ;;  %v62_v53 = vmul.f32 %v3100_v37, %v47_v36  ;;  %v63_v17 = vmul.f32 %v3103_v23, %v46_v58  ;;  %v3142_v16 = vperm.slane %v3120_v33, 3  ;;  %v3152_v20 = vperm.slane %v3120_v33, 2 }
 0x1e4   :  { %2322 = vmatmul.msk.f32.vlgmr.msra.gmra.mxu1 %vm852_vm11, %v851_v40  ;;  %2323 = vmatmul.msk.f32.vlgmr.msra.gmra.mxu2 %vm852_vm11, %v851_v40  ;;  %v3068_v7 = vpop.permute.xlu2 %80  ;;  %4668 = vst [vmem:[#allocation20_spill] sm:$0xff] %v3103_v23  ;;  %v34_v36 = vmul.f32 %v3018_v31, %v2462_v0  ;;  %v130_v58 = vsel %vm129_vm14, %v126_v41, %v3071_v29  ;;  %v4701_v29 = vperm.slane %v2632_v44, 0 }
 0x1e5   :  { %4655 = vst [vmem:[#allocation7_spill] sm:$0xff] %v3068_v7  ;;  %2324 = vmatmul.msk.f32.vlgmr.msra.gmra.mxu3 %vm852_vm11, %v851_v40  ;;  %v3081_v4 = vpop.permute.xlu1 %170  ;;  %v3089_v5 = vpop.permute.xlu0 %211  ;;  %v88_v25 = vsel %vm86_vm13, %v3068_v7, %v3046_v1  ;;  %v72_v51 = vmul.f32 %v3044_v6, %v62_v53  ;;  %v73_v46 = vmul.f32 %v3044_v6, %v63_v17 }
 0x1e6   :  { %4661 = vst [vmem:[#allocation13_spill] sm:$0xff] %v3081_v4  ;;  %v104_v3 = vmul.f32 %v3126_v50, %v88_v25  ;;  %v148_v19 = vmul.f32 %v3142_v16, %v130_v58 }
 0x1e7   :  { %4665 = vst [vmem:[#allocation17_spill] sm:$0xff] %v3089_v5 }
 0x1e8   :  { %4670 = vst [vmem:[#allocation22_spill] sm:$0xff] %v3120_v33  ;;  %v115_v38 = vmul.f32 %v3055_v21, %v104_v3 }
 0x1e9   :  { %4672 = vst [vmem:[#allocation24_spill] sm:$0xff] %v3126_v50 }
 0x1ea   :  { %4673 = vst [vmem:[#allocation25_spill] sm:$0xff] %v3129_v43 }
 0x1eb   :  { %4674 = vst [vmem:[#allocation26_spill] sm:$0xff] %v3142_v16  ;;  %v76_v16 = vadd.f32 %v72_v51, %v33_v26 }
 0x1ec   :  { %v3073_v49 = vpop.permute.xlu2 %84  ;;  %4675 = vst [vmem:[#allocation27_spill] sm:$0xff] %v3152_v20 }
 0x1ed   :  { %4657 = vst [vmem:[#allocation9_spill] sm:$0xff] %v3073_v49  ;;  %v3087_v2 = vpop.permute.xlu1 %209  ;;  %v251_v40 = vpop.permute.xlu0 %250  ;;  %v87_v18 = vsel %vm86_vm13, %v3046_v1, %v3073_v49  ;;  %v3158_v1 = vld [vmem:[%s4542_s1 + $0xc] sm:$0xf] }
 0x1ee   :  { %4664 = vst [vmem:[#allocation16_spill] sm:$0xff] %v3087_v2  ;;  %v105_v56 = vmul.f32 %v3129_v43, %v87_v18  ;;  %v3168_v54 = vperm.slane %v3158_v1, 2  ;;  %v3171_v13 = vperm.slane %v3158_v1, 3  ;;  %v3178_v18 = vld [vmem:[%s4542_s1 + $0x14] sm:$0xf] }
 0x1ef   :  { %4676 = vst [vmem:[#allocation28_spill] sm:$0xff] %v3158_v1  ;;  %v3192_v58 = vperm.slane %v3178_v18, 2  ;;  %v3195_v57 = vperm.slane %v3178_v18, 3 }
 0x1f0   :  { %4677 = vst [vmem:[#allocation29_spill] sm:$0xff] %v3168_v54  ;;  %v116_v62 = vmul.f32 %v3055_v21, %v105_v56 }
 0x1f1   :  { %4678 = vst [vmem:[#allocation30_spill] sm:$0xff] %v3171_v13 }
 0x1f2   :  { %4679 = vst [vmem:[#allocation31_spill] sm:$0xff] %v3178_v18 }
 0x1f3   :  { %4680 = vst [vmem:[#allocation32_spill] sm:$0xff] %v3192_v58 }
 0x1f4   :  { %v3079_v61 = vpop.permute.xlu2 %123  ;;  %4681 = vst [vmem:[#allocation33_spill] sm:$0xff] %v3195_v57 }
 0x1f5   :  { %4660 = vst [vmem:[#allocation12_spill] sm:$0xff] %v3079_v61  ;;  %v3122_v27 = vpop.permute.xlu1 %239  ;;  %v131_v0 = vsel %vm129_vm14, %v3079_v61, %v126_v41  ;;  %v2295_v41 = vld [vmem:[%s4542_s1 + $0x18] sm:$0xf] }
 0x1f6   :  { %4671 = vst [vmem:[#allocation23_spill] sm:$0xff] %v3122_v27  ;;  %v147_v53 = vmul.f32 %v3152_v20, %v131_v0  ;;  %v257_v0 = vpop.permute.xlu0 %256  ;;  %v77_v20 = vadd.f32 %v73_v46, %v34_v36  ;;  %v3207_v37 = vperm.slane %v2295_v41, 2  ;;  %v3209_v3 = vperm.slane %v2295_v41, 3 }
 0x1f7   :  { %v262_v23 = vsel %vm258_vm9, %v257_v0, %v251_v40  ;;  %v119_v36 = vadd.f32 %v115_v38, %v76_v16 }
 0x1f8   :  { %4682 = vst [vmem:[#allocation34_spill] sm:$0xff] %v3207_v37  ;;  %v277_v16 = vmul.f32 %v3209_v3, %v262_v23 }
 0x1f9   :  { %4683 = vst [vmem:[#allocation35_spill] sm:$0xff] %v3209_v3  ;;  %v2300_v3 = vld [vmem:[%s4541_s2 + $0x40] sm:$0xff] }
 0x1fc   :  { %v3085_v60 = vpop.permute.xlu2 %153 }
 0x1fd   :  { %4663 = vst [vmem:[#allocation15_spill] sm:$0xff] %v3085_v60  ;;  %v255_v55 = vpop.permute.xlu1 %254 }
 0x1fe   :  { %v259_v56 = vsel %vm258_vm9, %v255_v55, %v257_v0 }
 0x1ff   :  { %v276_v38 = vmul.f32 %v3207_v37, %v259_v56 }
 0x204   :  { %v169_v63 = vpop.permute.xlu2 %168 }
 0x205   :  { %v173_v25 = vsel %vm172_vm15, %v169_v63, %v3081_v4  ;;  %v174_v17 = vsel %vm172_vm15, %v3077_v24, %v169_v63 }
 0x206   :  { %v190_v50 = vmul.f32 %v3168_v54, %v174_v17  ;;  %v191_v43 = vmul.f32 %v3171_v13, %v173_v25  ;;  %v120_v25 = vadd.f32 %v116_v62, %v77_v20  ;;  %v3219_v17 = vperm.slane %v2295_v41, 0 }
 0x207   :  { %v3221_v13 = vperm.slane %v2295_v41, 1 }
 0x208   :  { %4684 = vst [vmem:[#allocation36_spill] sm:$0xff] %v3219_v17  ;;  %v201_v54 = vmul.f32 %v3083_v11, %v190_v50  ;;  %v202_v24 = vmul.f32 %v3083_v11, %v191_v43 }
 0x209   :  { %4685 = vst [vmem:[#allocation37_spill] sm:$0xff] %v3221_v13 }
 0x20c   :  { %v3097_v32 = vpop.permute.xlu2 %207 }
 0x20d   :  { %4666 = vst [vmem:[#allocation18_spill] sm:$0xff] %v3097_v32 }
 0x214   :  { %v214_v28 = vpop.permute.xlu2 %213 }
 0x215   :  { %v216_v63 = vsel %vm215_vm8, %v3089_v5, %v214_v28  ;;  %v219_v47 = vsel %vm215_vm8, %v214_v28, %v3097_v32  ;;  %v158_v28 = vmul.f32 %v3085_v60, %v147_v53  ;;  %v159_v5 = vmul.f32 %v3085_v60, %v148_v19 }
 0x216   :  { %v233_v46 = vmul.f32 %v3192_v58, %v216_v63  ;;  %v234_v51 = vmul.f32 %v3195_v57, %v219_v47  ;;  %v4697_v32 = vperm.slane %v2642_v48, 1 }
 0x217   :  { %v162_v63 = vadd.f32 %v158_v28, %v119_v36  ;;  %v163_v0 = vadd.f32 %v159_v5, %v120_v25 }
 0x218   :  { %v244_v47 = vmul.f32 %v3122_v27, %v233_v46  ;;  %v245_v62 = vmul.f32 %v3122_v27, %v234_v51  ;;  %v4696_v27 = vperm.slane %v2632_v44, 1 }
 0x219   :  { %v205_v50 = vadd.f32 %v201_v54, %v162_v63  ;;  %v206_v41 = vadd.f32 %v202_v24, %v163_v0 }
 0x21b   :  { %v249_v57 = vadd.f32 %v245_v62, %v206_v41  ;;  %v3331_v62 = vld [vmem:[%s4540_s0 + $0x8] sm:$0xff] }
 0x21c   :  { %v253_v26 = vpop.permute.xlu2 %252  ;;  %4692 = vst [vmem:[#allocation44_spill] sm:$0xff] %v3331_v62 }
 0x21d   :  { %v260_v53 = vsel %vm258_vm9, %v253_v26, %v255_v55  ;;  %v261_v19 = vsel %vm258_vm9, %v251_v40, %v253_v26  ;;  %v248_v55 = vadd.f32 %v244_v47, %v205_v50  ;;  %v3324_v47 = vld [vmem:[%s4540_s0 + $0x18] sm:$0xff] }
 0x21e   :  { %v274_v20 = vmul.f32 %v3219_v17, %v261_v19  ;;  %v275_v43 = vmul.f32 %v3221_v13, %v260_v53  ;;  %v3305_v53 = vpop.permute.xlu0 %1262 }
 0x224   :  { %v283_v58 = vpop.permute.xlu2 %282 }
 0x225   :  { %v3235_v40 = vmul.f32 %v283_v58, %v274_v20  ;;  %v3237_v5 = vmul.f32 %v283_v58, %v275_v43  ;;  %v287_v28 = vmul.f32 %v283_v58, %v276_v38  ;;  %v288_v46 = vmul.f32 %v283_v58, %v277_v16  ;;  %v2410_v20 = vld [vmem:[%s4540_s0 + $0x10] sm:$0xff]  ;;  %v3345_v43 = vpop.permute.xlu1 %1351 }
 0x226   :  { %v3315_v63 = vpop.permute.xlu0 %1320 }
 0x227   :  { %4686 = vst [vmem:[#allocation38_spill] sm:$0xff] %v3235_v40  ;;  %v3239_v51 = vadd.f32 %v287_v28, %v248_v55  ;;  %v3241_v56 = vadd.f32 %v288_v46, %v249_v57  ;;  %v3354_v55 = vld [vmem:[%s4540_s0] sm:$0xff] }
 0x228   :  { %4687 = vst [vmem:[#allocation39_spill] sm:$0xff] %v3237_v5  ;;  %v4695_v5 = vperm.slane %v2624_v42, 1 }
 0x229   :  { %4688 = vst [vmem:[#allocation40_spill] sm:$0xff] %v3239_v51 }
 0x22a   :  { %4689 = vst [vmem:[#allocation41_spill] sm:$0xff] %v3241_v56 }
 0x22b   :  { %4693 = vst [vmem:[#allocation45_spill] sm:$0xff] %v3354_v55 }
 0x22c   :  { %v3307_v19 = vpop.permute.xlu2 %1289 }
 0x22d   :  { %v3362_v46 = vpop.permute.xlu1 %1444 }
 0x22e   :  { %v3335_v38 = vpop.permute.xlu0 %1413 }
 0x234   :  { %v3317_v0 = vpop.permute.xlu2 %1382 }
 0x236   :  { %v3347_v50 = vpop.permute.xlu0 %1506 }
 0x23d   :  { %v3339_v16 = vpop.permute.xlu2 %1475 }
 0x23e   :  { %v3360_v28 = vpop.permute.xlu0 %293 }
 0x23f   :  { %4694 = vst [vmem:[#allocation46_spill] sm:$0xff] %v3360_v28 }
 0x260   :  { %v873_v23 = vpop.f32.mrf.mxu0 }
 0x261   :  { %v3243_v26 = vmax.f32 %v873_v23, 0.0  ;;  %v893_v36 = vpop.f32.mrf.mxu1 }
 0x262   :  { %v3245_v25 = vmax.f32 %v893_v36, 0.0 }
 0x263   :  { %4690 = vst [vmem:[#allocation42_spill] sm:$0xff] %v3243_v26  ;;  %1269 = vrot.lane.b32.xlu1 %v3243_v26, %s2413_s22 }
 0x264   :  { %4691 = vst [vmem:[#allocation43_spill] sm:$0xff] %v3245_v25  ;;  %1302 = vrot.lane.b32.xlu2 %v3245_v25, %s2414_s23  ;;  %1271 = vrot.lane.b32.xlu0 %v3245_v25, %s2413_s22  ;;  %v1266_v18 = vmul.f32 %v3305_v53, %v3245_v25 }
 0x267   :  { %v913_v54 = vpop.f32.mrf.mxu2 }
 0x268   :  { %v933_v57 = vpop.f32.mrf.mxu3  ;;  %v3277_v24 = vmax.f32 %v913_v54, 0.0 }
 0x269   :  { %v3279_v58 = vmax.f32 %v933_v57, 0.0 }
 0x26b   :  { %1362 = vrot.lane.b32.xlu1 %v3243_v26, %s2416_s10 }
 0x26c   :  { %1333 = vrot.lane.b32.xlu2 %v3245_v25, %s2415_s7  ;;  %1300 = vrot.lane.b32.xlu0 %v3243_v26, %s2414_s23 }
 0x273   :  { %1395 = vrot.lane.b32.xlu1 %v3245_v25, %s2417_s13 }
 0x274   :  { %1393 = vrot.lane.b32.xlu2 %v3243_v26, %s2417_s13  ;;  %1331 = vrot.lane.b32.xlu0 %v3243_v26, %s2415_s7 }
 0x27b   :  { %1455 = vrot.lane.b32.xlu1 %v3243_v26, %s2419_s19 }
 0x27c   :  { %1426 = vrot.lane.b32.xlu2 %v3245_v25, %s2418_s16  ;;  %1364 = vrot.lane.b32.xlu0 %v3245_v25, %s2416_s10 }
 0x283   :  { %1488 = vrot.lane.b32.xlu1 %v3245_v25, %s2420_s24 }
 0x284   :  { %1486 = vrot.lane.b32.xlu2 %v3243_v26, %s2420_s24  ;;  %1424 = vrot.lane.b32.xlu0 %v3243_v26, %s2418_s16 }
 0x28b   :  { %1273 = vrot.lane.b32.xlu1 %v3277_v24, %s2413_s22 }
 0x28c   :  { %1275 = vrot.lane.b32.xlu2 %v3279_v58, %s2413_s22  ;;  %1457 = vrot.lane.b32.xlu0 %v3245_v25, %s2419_s19 }
 0x293   :  { %1306 = vrot.lane.b32.xlu1 %v3279_v58, %s2414_s23 }
 0x294   :  { %1335 = vrot.lane.b32.xlu2 %v3277_v24, %s2415_s7  ;;  %1366 = vrot.lane.b32.xlu0 %v3277_v24, %s2416_s10 }
 0x29b   :  { %1304 = vrot.lane.b32.xlu1 %v3277_v24, %s2414_s23 }
 0x29c   :  { %1368 = vrot.lane.b32.xlu2 %v3279_v58, %s2416_s10  ;;  %1397 = vrot.lane.b32.xlu0 %v3277_v24, %s2417_s13 }
 0x2a3   :  { %1337 = vrot.lane.b32.xlu1 %v3279_v58, %s2415_s7 }
 0x2a4   :  { %1430 = vrot.lane.b32.xlu2 %v3279_v58, %s2418_s16  ;;  %1461 = vrot.lane.b32.xlu0 %v3279_v58, %s2419_s19 }
 0x2ab   :  { %1399 = vrot.lane.b32.xlu1 %v3279_v58, %s2417_s13 }
 0x2ac   :  { %1459 = vrot.lane.b32.xlu2 %v3277_v24, %s2419_s19  ;;  %1490 = vrot.lane.b32.xlu0 %v3277_v24, %s2420_s24 }
 0x2b3   :  { %1428 = vrot.lane.b32.xlu1 %v3277_v24, %s2418_s16 }
 0x2b4   :  { %299 = vrot.lane.b32.xlu2 %v3324_v47, %s2427_s20  ;;  %295 = vrot.lane.b32.xlu0 %v3331_v62, %s2427_s20 }
 0x2bb   :  { %1492 = vrot.lane.b32.xlu1 %v3279_v58, %s2420_s24  ;;  %s2428_s24 = smov 111  }
 0x2bc   :  { %297 = vrot.lane.b32.xlu0 %v2410_v20, %s2427_s20 }
 0x2be   :  { %v3349_v41 = vpop.permute.xlu2 %1302 }
 0x2c4   :  { %336 = vrot.lane.b32.xlu0 %v3354_v55, %s2428_s24 }
 0x2c6   :  { %v3364_v23 = vpop.permute.xlu2 %1333 }
 0x2cc   :  { %338 = vrot.lane.b32.xlu0 %v3331_v62, %s2428_s24 }
 0x2ce   :  { %v3367_v57 = vpop.permute.xlu2 %1393 }
 0x2d4   :  { %340 = vrot.lane.b32.xlu0 %v2410_v20, %s2428_s24 }
 0x2d5   :  { %v1270_v36 = vpop.permute.xlu1 %1269 }
 0x2d6   :  { %v1272_v54 = vpop.permute.xlu0 %1271  ;;  %v3372_v13 = vpop.permute.xlu2 %1426 }
 0x2d7   :  { %v1279_v56 = vsel %vm456_vm0, %v1270_v36, %v1272_v54 }
 0x2d8   :  { %v1282_v40 = vmul.f32 %v1279_v56, %v4695_v5 }
 0x2da   :  { %v1293_v60 = vmul.f32 %v3307_v19, %v1282_v40 }
 0x2dc   :  { %368 = vperm.xlu0 %2397, %v2300_v3   ;;  %v1297_v4 = vadd.f32 %v1293_v60, %v1266_v18 }
 0x2dd   :  { %v1363_v17 = vpop.permute.xlu1 %1362 }
 0x2de   :  { %v1301_v37 = vpop.permute.xlu0 %1300  ;;  %v3391_v21 = vpop.permute.xlu2 %1486 }
 0x2df   :  { %v1310_v20 = vsel %vm499_vm1, %v1301_v37, %v3349_v41 }
 0x2e0   :  { %v1313_v11 = vmul.f32 %v1310_v20, %v4696_v27 }
 0x2e2   :  { %v1324_v5 = vmul.f32 %v3315_v63, %v1313_v11 }
 0x2e4   :  { %v1328_v40 = vadd.f32 %v1324_v5, %v1297_v4 }
 0x2e5   :  { %v1396_v51 = vpop.permute.xlu1 %1395 }
 0x2e6   :  { %v1332_v28 = vpop.permute.xlu0 %1331  ;;  %v1276_v55 = vpop.permute.xlu2 %1275 }
 0x2e7   :  { %v1341_v3 = vsel %vm542_vm2, %v1332_v28, %v3364_v23  ;;  %v1280_v4 = vsel %vm456_vm0, %v1276_v55, %v1270_v36 }
 0x2e8   :  { %v1344_v2 = vmul.f32 %v1341_v3, %v4697_v32  ;;  %v4698_v32 = vperm.slane %v2681_v9, 1 }
 0x2ea   :  { %v1355_v34 = vmul.f32 %v3345_v43, %v1344_v2 }
 0x2ec   :  { %v1359_v3 = vadd.f32 %v1355_v34, %v1328_v40  ;;  %v4699_v34 = vperm.slane %v2624_v42, 0 }
 0x2ed   :  { %v3394_v56 = vpop.permute.xlu1 %1455 }
 0x2ee   :  { %v3397_v1 = vpop.permute.xlu0 %1364  ;;  %v1336_v31 = vpop.permute.xlu2 %1335 }
 0x2ef   :  { %v1372_v27 = vsel %vm585_vm3, %v1363_v17, %v3397_v1 }
 0x2f0   :  { %v1375_v20 = vmul.f32 %v1372_v27, %v4698_v32  ;;  %v1281_v27 = vmul.f32 %v1280_v4, %v4699_v34 }
 0x2f2   :  { %v1386_v25 = vmul.f32 %v3317_v0, %v1375_v20  ;;  %v4700_v20 = vperm.slane %v2731_v15, 1  ;;  %v1292_v33 = vmul.f32 %v3307_v19, %v1281_v27 }
 0x2f4   :  { %v1390_v62 = vadd.f32 %v1386_v25, %v1359_v3 }
 0x2f5   :  { %v3405_v11 = vpop.permute.xlu1 %1488 }
 0x2f6   :  { %v3407_v60 = vpop.permute.xlu0 %1424  ;;  %v1369_v7 = vpop.permute.xlu2 %1368 }
 0x2f7   :  { %v1373_v34 = vsel %vm585_vm3, %v1369_v7, %v1363_v17  ;;  %v4702_v17 = vperm.slane %v2624_v42, 3 }
 0x2fd   :  { %v1274_v2 = vpop.permute.xlu1 %1273 }
 0x2fe   :  { %v3409_v18 = vpop.permute.xlu0 %1457  ;;  %v1277_v4 = vsel %vm456_vm0, %v1274_v2, %v1276_v55  ;;  %v1278_v49 = vsel %vm456_vm0, %v1272_v54, %v1274_v2  ;;  %v4703_v2 = vperm.slane %v2681_v9, 0  ;;  %vm301_vm0 = vcmp.lt.s32.totalorder %v2615_v39, 112 }
 0x305   :  { %v1307_v6 = vpop.permute.xlu1 %1306 }
 0x306   :  { %v1367_v61 = vpop.permute.xlu0 %1366  ;;  %v1311_v25 = vsel %vm499_vm1, %v1307_v6, %v1301_v37  ;;  %v1265_v37 = vmul.f32 %v3305_v53, %v3243_v26  ;;  %v1284_v26 = vmul.f32 %v1277_v4, %v4702_v17  ;;  %v4706_v4 = vperm.slane %v2731_v15, 0 }
 0x307   :  { %v1312_v45 = vmul.f32 %v1311_v25, %v4701_v29  ;;  %v1403_v29 = vsel %vm628_vm4, %v3367_v57, %v1396_v51 }
 0x308   :  { %v1405_v17 = vmul.f32 %v1403_v29, %v4706_v4  ;;  %v4711_v4 = vperm.slane %v2760_v22, 0 }
 0x309   :  { %v1323_v27 = vmul.f32 %v3315_v63, %v1312_v45  ;;  %v4704_v45 = vperm.slane %v2624_v42, 2 }
 0x30d   :  { %v1305_v5 = vpop.permute.xlu1 %1304 }
 0x30e   :  { %v1398_v40 = vpop.permute.xlu0 %1397  ;;  %v1308_v55 = vsel %vm499_vm1, %v1305_v5, %v1307_v6  ;;  %v1309_v54 = vsel %vm499_vm1, %v3349_v41, %v1305_v5  ;;  %v4707_v41 = vperm.slane %v2632_v44, 3  ;;  %vm344_vm1 = vcmp.lt.s32.totalorder %v2615_v39, 111 }
 0x30f   :  { %v1402_v32 = vsel %vm628_vm4, %v1396_v51, %v1398_v40  ;;  %v1374_v51 = vmul.f32 %v1373_v34, %v4703_v2 }
 0x310   :  { %v1406_v3 = vmul.f32 %v1402_v32, %v4700_v20  ;;  %v3433_v32 = vpop.permute.xlu2 %1430  ;;  %v1315_v5 = vmul.f32 %v1308_v55, %v4707_v41 }
 0x311   :  { %v1385_v29 = vmul.f32 %v3317_v0, %v1374_v51 }
 0x312   :  { %v1417_v36 = vmul.f32 %v3335_v38, %v1406_v3  ;;  %v1296_v3 = vadd.f32 %v1292_v33, %v1265_v37  ;;  %v4705_v33 = vperm.slane %v2642_v48, 0 }
 0x314   :  { %v3435_v20 = vadd.f32 %v1417_v36, %v1390_v62  ;;  %v1283_v36 = vmul.f32 %v1278_v49, %v4704_v45  ;;  %v1327_v35 = vadd.f32 %v1323_v27, %v1296_v3  ;;  %v1340_v49 = vsel %vm542_vm2, %v3364_v23, %v1336_v31 }
 0x315   :  { %v1338_v25 = vpop.permute.xlu1 %1337  ;;  %v1267_v27 = vmul.f32 %v3305_v53, %v3277_v24  ;;  %v1416_v3 = vmul.f32 %v3335_v38, %v1405_v17  ;;  %v1326_v23 = vmul.f32 %v3315_v63, %v1315_v5  ;;  %v1370_v45 = vsel %vm585_vm3, %v1367_v61, %v1369_v7 }
 0x316   :  { %v1342_v62 = vsel %vm542_vm2, %v1338_v25, %v1332_v28  ;;  %v1339_v6 = vsel %vm542_vm2, %v1336_v31, %v1338_v25  ;;  %v4708_v28 = vperm.slane %v2632_v44, 2  ;;  %v1462_v42 = vpop.permute.xlu0 %1461  ;;  %v1295_v25 = vmul.f32 %v3307_v19, %v1284_v26 }
 0x317   :  { %v1343_v37 = vmul.f32 %v1342_v62, %v4705_v33  ;;  %v4709_v62 = vperm.slane %v2642_v48, 3  ;;  %v1294_v44 = vmul.f32 %v3307_v19, %v1283_v36  ;;  %v1434_v31 = vsel %vm671_vm5, %v3407_v60, %v3372_v13 }
 0x318   :  { %v1314_v59 = vmul.f32 %v1309_v54, %v4708_v28  ;;  %v1268_v26 = vmul.f32 %v3305_v53, %v3279_v58  ;;  %v4710_v54 = vperm.slane %v2642_v48, 2  ;;  %v1460_v33 = vpop.permute.xlu2 %1459  ;;  %v1436_v17 = vmul.f32 %v1434_v31, %v4711_v4 }
 0x319   :  { %v1354_v34 = vmul.f32 %v3345_v43, %v1343_v37  ;;  %v1346_v2 = vmul.f32 %v1339_v6, %v4709_v62  ;;  %v1371_v37 = vsel %vm585_vm3, %v3397_v1, %v1367_v61  ;;  %v1298_v7 = vadd.f32 %v1294_v44, %v1267_v27 }
 0x31a   :  { %v1345_v51 = vmul.f32 %v1340_v49, %v4710_v54  ;;  %v1299_v6 = vadd.f32 %v1295_v25, %v1268_v26  ;;  %v1465_v61 = vsel %vm714_vm6, %v3394_v56, %v3409_v18  ;;  %v4712_v1 = vperm.slane %v2681_v9, 3 }
 0x31b   :  { %v1358_v55 = vadd.f32 %v1354_v34, %v1327_v35  ;;  %v1325_v35 = vmul.f32 %v3315_v63, %v1314_v59  ;;  %v1357_v53 = vmul.f32 %v3345_v43, %v1346_v2  ;;  %v1435_v59 = vsel %vm671_vm5, %v3433_v32, %v3407_v60 }
 0x31c   :  { %v1377_v41 = vmul.f32 %v1370_v45, %v4712_v1  ;;  %v1330_v5 = vadd.f32 %v1326_v23, %v1299_v6  ;;  %v1464_v28 = vsel %vm714_vm6, %v3409_v18, %v1460_v33  ;;  %v4713_v34 = vperm.slane %v2681_v9, 2 }
 0x31d   :  { %v1389_v19 = vadd.f32 %v1385_v29, %v1358_v55  ;;  %v1400_v36 = vpop.permute.xlu1 %1399  ;;  %v1329_v49 = vadd.f32 %v1325_v35, %v1298_v7  ;;  %v4714_v25 = vperm.slane %v2731_v15, 3  ;;  %v1356_v29 = vmul.f32 %v3345_v43, %v1345_v51 }
 0x31e   :  { %v1404_v48 = vsel %vm628_vm4, %v1400_v36, %v3367_v57  ;;  %v1401_v57 = vsel %vm628_vm4, %v1398_v40, %v1400_v36  ;;  %v1376_v60 = vmul.f32 %v1371_v37, %v4713_v34  ;;  %v1361_v2 = vadd.f32 %v1357_v53, %v1330_v5  ;;  %v1491_v55 = vpop.permute.xlu0 %1490 }
 0x31f   :  { %v1420_v63 = vadd.f32 %v1416_v3, %v1389_v19  ;;  %v1408_v62 = vmul.f32 %v1404_v48, %v4714_v25  ;;  %v1496_v27 = vsel %vm757_vm7, %v3391_v21, %v3405_v11  ;;  %v1447_v40 = vmul.f32 %v3362_v46, %v1436_v17 }
 0x320   :  { %v4715_v44 = vperm.slane %v2731_v15, 2  ;;  %v4716_v9 = vperm.slane %v2760_v22, 3  ;;  %v4717_v31 = vperm.slane %v2808_v30, 0  ;;  %v4718_v23 = vperm.slane %v2808_v30, 1 }
 0x321   :  { %v1388_v54 = vmul.f32 %v3317_v0, %v1377_v41  ;;  %v1387_v51 = vmul.f32 %v3317_v0, %v1376_v60  ;;  %v1360_v45 = vadd.f32 %v1356_v29, %v1329_v49  ;;  %v1463_v35 = vsel %vm714_vm6, %v1460_v33, %v1462_v42 }
 0x322   :  { %v1407_v18 = vmul.f32 %v1401_v57, %v4715_v44  ;;  %v1439_v3 = vmul.f32 %v1435_v59, %v4716_v9  ;;  %v1467_v26 = vmul.f32 %v1465_v61, %v4717_v31  ;;  %v1468_v43 = vmul.f32 %v1464_v28, %v4718_v23 }
 0x323   :  { %v1419_v15 = vmul.f32 %v3335_v38, %v1408_v62  ;;  %v1392_v36 = vadd.f32 %v1388_v54, %v1361_v2  ;;  %v1495_v6 = vsel %vm757_vm7, %v3405_v11, %v1491_v55  ;;  %v1451_v53 = vadd.f32 %v1447_v40, %v1420_v63 }
 0x324   :  { %v1418_v48 = vmul.f32 %v3335_v38, %v1407_v18  ;;  %v4719_v33 = vperm.slane %v2760_v22, 1  ;;  %v4720_v17 = vperm.slane %v2760_v22, 2  ;;  %v4721_v59 = vperm.slane %v2851_v14, 0 }
 0x325   :  { %v1429_v19 = vpop.permute.xlu1 %1428  ;;  %v1478_v61 = vmul.f32 %v3339_v16, %v1467_v26  ;;  %v1391_v1 = vadd.f32 %v1387_v51, %v1360_v45  ;;  %v1450_v41 = vmul.f32 %v3362_v46, %v1439_v3  ;;  %v1479_v22 = vmul.f32 %v3339_v16, %v1468_v43 }
 0x326   :  { %v1432_v37 = vsel %vm671_vm5, %v1429_v19, %v3433_v32  ;;  %v1433_v0 = vsel %vm671_vm5, %v3372_v13, %v1429_v19  ;;  %v1498_v11 = vmul.f32 %v1496_v27, %v4721_v59  ;;  %v1466_v32 = vsel %vm714_vm6, %v1462_v42, %v3394_v56 }
 0x327   :  { %v1437_v4 = vmul.f32 %v1433_v0, %v4719_v33  ;;  %v1438_v7 = vmul.f32 %v1432_v37, %v4720_v17  ;;  %v1423_v13 = vadd.f32 %v1419_v15, %v1392_v36  ;;  %v4722_v5 = vperm.slane %v2808_v30, 2  ;;  %v3606_v33 = vpop.permute.xlu0 %295  ;;  %v3610_v17 = vpop.permute.xlu2 %299 }
 0x328   :  { %v4723_v28 = vperm.slane %v2851_v14, 1  ;;  %v4724_v60 = vperm.slane %v2808_v30, 3  ;;  %v1422_v56 = vadd.f32 %v1418_v48, %v1391_v1  ;;  %v1482_v25 = vadd.f32 %v1478_v61, %v1451_v53  ;;  %v2298_v48 = vld [vmem:[%s4541_s2 + $0x38] sm:$0xff] }
 0x329   :  { %v1448_v63 = vmul.f32 %v3362_v46, %v1437_v4  ;;  %v1449_v38 = vmul.f32 %v3362_v46, %v1438_v7  ;;  %v1469_v57 = vmul.f32 %v1463_v35, %v4722_v5  ;;  %v1509_v62 = vmul.f32 %v3347_v50, %v1498_v11 }
 0x32a   :  { %v1499_v34 = vmul.f32 %v1495_v6, %v4723_v28  ;;  %v1470_v49 = vmul.f32 %v1466_v32, %v4724_v60  ;;  %v1454_v2 = vadd.f32 %v1450_v41, %v1423_v13  ;;  %v4725_v9 = vperm.slane %v2851_v14, 2  ;;  %v4727_v32 = vld [vmem:[#allocation21_spill] sm:$0xff]  ;;  %v4728_v13 = vld [vmem:[#allocation3_spill] sm:$0xff] }
 0x32b   :  { %v1452_v42 = vadd.f32 %v1448_v63, %v3435_v20  ;;  %v1453_v29 = vadd.f32 %v1449_v38, %v1422_v56  ;;  %v1480_v40 = vmul.f32 %v3339_v16, %v1469_v57  ;;  %v4726_v31 = vperm.slane %v2851_v14, 3  ;;  %v4729_v63 = vld [vmem:[#allocation9_spill] sm:$0xff] }
 0x32c   :  { %v1510_v44 = vmul.f32 %v3347_v50, %v1499_v34  ;;  %v1481_v20 = vmul.f32 %v3339_v16, %v1470_v49  ;;  %v3579_v23 = vadd.f32 %v1509_v62, %v1482_v25  ;;  %v3615_v59 = vperm.slane %v3094_v12, 1  ;;  %v4733_v34 = vld [vmem:[#allocation7_spill] sm:$0xff]  ;;  %v4734_v62 = vld [vmem:[#allocation12_spill] sm:$0xff] }
 0x32d   :  { %v1483_v46 = vadd.f32 %v1479_v22, %v1452_v42  ;;  %v1493_v27 = vpop.permute.xlu1 %1492  ;;  %v1484_v54 = vadd.f32 %v1480_v40, %v1453_v29  ;;  %v3618_v11 = vperm.slane %v3094_v12, 0  ;;  %v49_v61 = vsel %vm45_vm12, %v3037_v52, %v3022_v10  ;;  %v4730_v22 = vld [vmem:[#allocation22_spill] sm:$0xff]  ;;  %v4732_v52 = vld [vmem:[#allocation8_spill] sm:$0xff] }
 0x32e   :  { %v1494_v18 = vsel %vm757_vm7, %v1491_v55, %v1493_v27  ;;  %v1497_v30 = vsel %vm757_vm7, %v1493_v27, %v3391_v21  ;;  %v1485_v45 = vadd.f32 %v1481_v20, %v1454_v2  ;;  %v1522_v15 = vmul.f32 %v3579_v23, %v3579_v23  ;;  %v4735_v27 = vld [vmem:[#allocation4_spill] sm:$0xff]  ;;  %v4736_v20 = vld [vmem:[#allocation2_spill] sm:$0xff] }
 0x32f   :  { %v1500_v3 = vmul.f32 %v1494_v18, %v4725_v9  ;;  %v1501_v26 = vmul.f32 %v1497_v30, %v4726_v31  ;;  %v3581_v43 = vadd.f32 %v1510_v44, %v1483_v46  ;;  %v3608_v4 = vpop.permute.xlu0 %297  ;;  %v3629_v1 = vperm.slane %v4727_v32, 0  ;;  %v4737_v9 = vld [vmem:[#allocation45_spill] sm:$0xff]  ;;  %v4738_v31 = vld [vmem:[#allocation44_spill] sm:$0xff] }
 0x330   :  { %v90_v38 = vsel %vm86_vm13, %v4729_v63, %v4728_v13  ;;  %v60_v41 = vmul.f32 %v3618_v11, %v49_v61  ;;  %v3638_v5 = vperm.slane %v4730_v22, 0  ;;  %v89_v60 = vsel %vm86_vm13, %v4728_v13, %v4733_v34 }
 0x331   :  { %v1511_v51 = vmul.f32 %v3347_v50, %v1500_v3  ;;  %v1512_v55 = vmul.f32 %v3347_v50, %v1501_v26  ;;  %v1523_v21 = vmul.f32 %v3581_v43, %v3581_v43  ;;  %v1517_v14 = vadd.f32 %v3581_v43, %v3579_v23 }
 0x332   :  { %v102_v56 = vmul.f32 %v3629_v1, %v90_v38  ;;  %v3655_v42 = vperm.slane %v4730_v22, 1  ;;  %v70_v40 = vmul.f32 %v4735_v27, %v60_v41  ;;  %v31_v3 = vmul.f32 %v4737_v9, %v4736_v20  ;;  %v4748_v38 = vld [vmem:[#allocation15_spill] sm:$0xff] }
 0x333   :  { %v3587_v16 = vadd.f32 %v1511_v51, %v1484_v54  ;;  %v3589_v35 = vadd.f32 %v1512_v55, %v1485_v45  ;;  %v1526_v50 = vadd.f32 %v1523_v21, %v1522_v15  ;;  %v32_v26 = vmul.f32 %v4738_v31, %v4736_v20  ;;  %v4739_v54 = vld [vmem:[#allocation28_spill] sm:$0xff]  ;;  %v4741_v21 = vld [vmem:[#allocation10_spill] sm:$0xff]  ;;  %v4749_v41 = vld [vmem:[#allocation11_spill] sm:$0xff] }
 0x334   :  { %v3672_v51 = vperm.slane %v4739_v54, 0  ;;  %v74_v63 = vadd.f32 %v70_v40, %v31_v3  ;;  %v175_v22 = vsel %vm172_vm15, %v4741_v21, %v4749_v41  ;;  %v2297_v20 = vld [vmem:[%s4542_s1 + $0x1c] sm:$0xf] }
 0x335   :  { %v1518_v19 = vadd.f32 %v1517_v14, %v3587_v16  ;;  %v1524_v36 = vmul.f32 %v3587_v16, %v3587_v16  ;;  %v1525_v37 = vmul.f32 %v3589_v35, %v3589_v35  ;;  %v4742_v14 = vld [vmem:[#allocation13_spill] sm:$0xff] }
 0x336   :  { %4740 = vst [vmem:[#allocation21_spill] sm:$0xff] %v3672_v51  ;;  %v176_v15 = vsel %vm172_vm15, %v4742_v14, %v4741_v21 }
 0x337   :  { %v1519_v6 = vadd.f32 %v1518_v19, %v3589_v35  ;;  %v1527_v0 = vadd.f32 %v1526_v50, %v1524_v36  ;;  %v3612_v7 = vpop.permute.xlu0 %336  ;;  %v4743_v19 = vld [vmem:[#allocation5_spill] sm:$0xff] }
 0x338   :  { %v113_v36 = vmul.f32 %v4743_v19, %v102_v56 }
 0x339   :  { %1520 = vadd.xlane.f32.xlu2 %v1519_v6  ;;  %v1528_v53 = vadd.f32 %v1527_v0, %v1525_v37  ;;  %v4744_v6 = vld [vmem:[#allocation31_spill] sm:$0xff]  ;;  %v3684_v0 = vperm.slane %v4739_v54, 1 }
 0x33a   :  { %v3681_v37 = vperm.slane %v4744_v6, 0 }
 0x33b   :  { %1529 = vadd.xlane.f32.xlu1 %v1528_v53  ;;  %v4746_v53 = vld [vmem:[#allocation16_spill] sm:$0xff] }
 0x33c   :  { %4745 = vst [vmem:[#allocation3_spill] sm:$0xff] %v3681_v37 }
 0x33f   :  { %v339_v55 = vpop.permute.xlu0 %338 }
 0x347   :  { %v341_v9 = vpop.permute.xlu0 %340 }
 0x348   :  { %v346_v41 = vsel %vm344_vm1, %v339_v55, %v341_v9 }
 0x351   :  { %342 = vrot.lane.b32.xlu2 %v3324_v47, %s2428_s24  ;;  %v48_v47 = vsel %vm45_vm12, %v3022_v10, %v3026_v8  ;;  %v3641_v8 = vperm.slane %v4727_v32, 1  ;;  %v4731_v10 = vld [vmem:[#allocation6_spill] sm:$0xff] }
 0x352   :  { %v61_v12 = vmul.f32 %v3615_v59, %v48_v47  ;;  %v133_v28 = vsel %vm129_vm14, %v4732_v52, %v4731_v10  ;;  %v132_v2 = vsel %vm129_vm14, %v4731_v10, %v4734_v62  ;;  %v3698_v10 = vperm.slane %v4744_v6, 1 }
 0x353   :  { %v145_v18 = vmul.f32 %v3638_v5, %v133_v28  ;;  %v103_v30 = vmul.f32 %v3641_v8, %v89_v60  ;;  %v146_v50 = vmul.f32 %v3655_v42, %v132_v2  ;;  %v4750_v28 = vld [vmem:[#allocation17_spill] sm:$0xff]  ;;  %v117_v60 = vadd.f32 %v113_v36, %v74_v63 }
 0x354   :  { %325 = vperm.xlu1 %2395, %v2298_v48   ;;  %v71_v44 = vmul.f32 %v4735_v27, %v61_v12  ;;  %v4747_v48 = vld [vmem:[#allocation18_spill] sm:$0xff]  ;;  %v217_v34 = vsel %vm215_vm8, %v4746_v53, %v4750_v28  ;;  %v189_v62 = vmul.f32 %v3684_v0, %v175_v22  ;;  %v303_v28 = vsel %vm301_vm0, %v3606_v33, %v3608_v4 }
 0x355   :  { %v218_v47 = vsel %vm215_vm8, %v4747_v48, %v4746_v53  ;;  %v114_v13 = vmul.f32 %v4743_v19, %v103_v30  ;;  %v156_v12 = vmul.f32 %v4748_v38, %v145_v18  ;;  %v157_v56 = vmul.f32 %v4748_v38, %v146_v50  ;;  %v4751_v27 = vld [vmem:[#allocation14_spill] sm:$0xff]  ;;  %v4752_v18 = vld [vmem:[#allocation23_spill] sm:$0xff] }
 0x356   :  { %v75_v32 = vadd.f32 %v71_v44, %v32_v26  ;;  %v200_v3 = vmul.f32 %v4751_v27, %v189_v62  ;;  %v2299_v26 = vld [vmem:[%s4542_s1 + $0x20] sm:$0xf]  ;;  %v3726_v53 = vperm.slane %v2297_v20, 0  ;;  %v3728_v48 = vperm.slane %v2297_v20, 1 }
 0x357   :  { %v4753_v50 = vld [vmem:[#allocation46_spill] sm:$0xff]  ;;  %v3737_v63 = vperm.slane %v2299_v26, 2 }
 0x358   :  { %v118_v2 = vadd.f32 %v114_v13, %v75_v32  ;;  %v305_v6 = vsel %vm301_vm0, %v3610_v17, %v4753_v50  ;;  %4754 = vst [vmem:[#allocation9_spill] sm:$0xff] %v3726_v53  ;;  %v3735_v32 = vperm.slane %v2299_v26, 1  ;;  %v304_v38 = vsel %vm301_vm0, %v4753_v50, %v3606_v33 }
 0x35a   :  { %v161_v44 = vadd.f32 %v157_v56, %v118_v2 }
 0x35c   :  { %v204_v14 = vadd.f32 %v200_v3, %v161_v44  ;;  %v369_v44 = vpop.permute.xlu0 %368 }
 0x3ac   :  { %v1521_v57 = vpop.xlane.xlu2 %1520 }
 0x3ad   :  { %v3651_v49 = vmul.f32 0.001953125, %v1521_v57  ;;  %v188_v57 = vmul.f32 %v3672_v51, %v176_v15  ;;  %v3720_v15 = vperm.slane %v2297_v20, 3 }
 0x3ae   :  { %v1530_v25 = vpop.xlane.xlu1 %1529 }
 0x3af   :  { %v1533_v29 = vmul.f32 %v3651_v49, %v3651_v49  ;;  %v1532_v46 = vmul.f32 0.001953125, %v1530_v25  ;;  %v231_v25 = vmul.f32 %v3681_v37, %v218_v47  ;;  %v199_v40 = vmul.f32 %v4751_v27, %v188_v57 }
 0x3b0   :  { %v3730_v47 = vperm.slane %v2299_v26, 0  ;;  %v302_v57 = vsel %vm301_vm0, %v3608_v4, %v3610_v17  ;;  %v320_v33 = vmul.f32 %v3720_v15, %v305_v6  ;;  %v317_v4 = vmul.f32 %v3726_v53, %v304_v38  ;;  %v4758_v38 = vld [vmem:[#allocation41_spill] sm:$0xff] }
 0x3b1   :  { %v1534_v45 = vsub.f32 %v1532_v46, %v1533_v29  ;;  %v160_v29 = vadd.f32 %v156_v12, %v117_v60  ;;  %v232_v46 = vmul.f32 %v3698_v10, %v217_v34  ;;  %v242_v30 = vmul.f32 %v4752_v18, %v231_v25  ;;  %v4755_v25 = vld [vmem:[#allocation38_spill] sm:$0xff] }
 0x3b2   :  { %v3743_v12 = vperm.slane %v2297_v20, 2  ;;  %v3757_v60 = vperm.slane %v2299_v26, 3  ;;  %v318_v27 = vmul.f32 %v3728_v48, %v303_v28 }
 0x3b3   :  { %v1535_v61 = vmax.f32 %v1534_v45, 0.0  ;;  %v203_v31 = vadd.f32 %v199_v40, %v160_v29  ;;  %v243_v45 = vmul.f32 %v4752_v18, %v232_v46  ;;  %v361_v29 = vmul.f32 %v3735_v32, %v346_v41  ;;  %v4756_v18 = vld [vmem:[#allocation39_spill] sm:$0xff] }
 0x3b4   :  { %v343_v36 = vpop.permute.xlu2 %342  ;;  %v319_v40 = vmul.f32 %v3743_v12, %v302_v57 }
 0x3b5   :  { %v1540_v52 = vadd.f32 1e-05, %v1535_v61  ;;  %v246_v21 = vadd.f32 %v242_v30, %v203_v31  ;;  %v347_v61 = vsel %vm344_vm1, %v3612_v7, %v339_v55  ;;  %v345_v22 = vsel %vm344_vm1, %v341_v9, %v343_v36 }
 0x3b6   :  { %v247_v56 = vadd.f32 %v243_v45, %v204_v14  ;;  %v360_v55 = vmul.f32 %v3730_v47, %v347_v61  ;;  %v348_v2 = vsel %vm344_vm1, %v343_v36, %v3612_v7  ;;  %v362_v46 = vmul.f32 %v3737_v63, %v345_v22 }
 0x3b7   :  { %2400 = vrsqrt.f32 %v1540_v52  ;;  %v289_v62 = vadd.f32 %v4755_v25, %v246_v21  ;;  %vm1547_vm3 = vweird.f32 %v1540_v52  ;;  %v363_v7 = vmul.f32 %v3757_v60, %v348_v2  ;;  %v2345_v21 = vld [vmem:[%s4543_s3 + $0x30] sm:$0xff] }
 0x3b8   :  { %v290_v30 = vadd.f32 %v4756_v18, %v247_v56  ;;  %v371_v14 = vmul.f32 %v369_v44, %v360_v55  ;;  %v373_v36 = vmul.f32 %v369_v44, %v362_v46  ;;  %v2328_v18 = vld [vmem:[%s4541_s2 + $0xa0] sm:$0xff] }
 0x3b9   :  { %v374_v57 = vmul.f32 %v369_v44, %v363_v7  ;;  %v2330_v7 = vld [vmem:[%s4541_s2 + $0xb8] sm:$0xff] }
 0x3bd   :  { %v2401_v54 = vpop.eup %2400 }
 0x3be   :  { %v1542_v19 = vmul.f32 %v2401_v54, %v1540_v52  ;;  %vm1548_vm2 = vweird.f32 %v2401_v54  ;;  %v4757_v52 = vld [vmem:[#allocation40_spill] sm:$0xff] }
 0x3bf   :  { %vm1549_vm4 = vmor %vm1547_vm3, %vm1548_vm2 }
 0x3c0   :  { %v1543_v13 = vmul.f32 %v2401_v54, %v1542_v19  ;;  %v372_v19 = vmul.f32 %v369_v44, %v361_v29  ;;  %v4760_v44 = vld [vmem:[#allocation43_spill] sm:$0xff] }
 0x3c2   :  { %v1544_v34 = vmul.f32 0.5, %v1543_v13 }
 0x3c4   :  { %v1545_v17 = vsub.f32 1.5, %v1544_v34 }
 0x3c6   :  { %v326_v20 = vpop.permute.xlu1 %325  ;;  %v1546_v9 = vmul.f32 %v2401_v54, %v1545_v17 }
 0x3c7   :  { %v328_v3 = vmul.f32 %v326_v20, %v317_v4  ;;  %v329_v31 = vmul.f32 %v326_v20, %v318_v27  ;;  %v330_v26 = vmul.f32 %v326_v20, %v319_v40  ;;  %v331_v45 = vmul.f32 %v326_v20, %v320_v33  ;;  %v4759_v40 = vld [vmem:[#allocation42_spill] sm:$0xff] }
 0x3c8   :  { %v1550_v50 = vsel %vm1549_vm4, %v2401_v54, %v1546_v9  ;;  %v2351_v20 = vld [vmem:[%s4541_s2 + $0x140] sm:$0xff]  ;;  %v2353_v9 = vld [vmem:[%s4541_s2 + $0x128] sm:$0xff] }
 0x3c9   :  { %v332_v6 = vadd.f32 %v328_v3, %v289_v62  ;;  %v333_v61 = vadd.f32 %v329_v31, %v290_v30  ;;  %v334_v13 = vadd.f32 %v330_v26, %v4757_v52  ;;  %v335_v41 = vadd.f32 %v331_v45, %v4758_v38  ;;  %v2329_v30 = vld [vmem:[%s4541_s2 + $0xa8] sm:$0xff]  ;;  %v2333_v52 = vld [vmem:[%s4541_s2 + $0xd0] sm:$0xff] }
 0x3ca   :  { %v3777_v22 = vmul.f32 %v2345_v21, %v1550_v50 }
 0x3cb   :  { %v3779_v28 = vadd.f32 %v371_v14, %v332_v6  ;;  %v3781_v34 = vadd.f32 %v372_v19, %v333_v61  ;;  %v3783_v56 = vadd.f32 %v373_v36, %v334_v13  ;;  %v3789_v54 = vadd.f32 %v374_v57, %v335_v41  ;;  %v2354_v14 = vld [vmem:[%s4541_s2 + $0x130] sm:$0xff]  ;;  %v2332_v61 = vld [vmem:[%s4541_s2 + $0xc8] sm:$0xff] }
 0x3cc   :  { %v3787_v25 = vmul.f32 %v3777_v22, %v3651_v49  ;;  %v2357_v57 = vld [vmem:[%s4541_s2 + $0x150] sm:$0xff] }
 0x3cd   :  { %v379_v62 = vadd.f32 %v3781_v34, %v3779_v28  ;;  %v384_v55 = vmul.f32 %v3779_v28, %v3779_v28  ;;  %v385_v2 = vmul.f32 %v3781_v34, %v3781_v34  ;;  %v386_v17 = vmul.f32 %v3783_v56, %v3783_v56 }
 0x3ce   :  { %v387_v33 = vmul.f32 %v3789_v54, %v3789_v54 }
 0x3cf   :  { %v380_v29 = vadd.f32 %v379_v62, %v3783_v56  ;;  %v388_v46 = vadd.f32 %v385_v2, %v384_v55  ;;  %v2356_v55 = vld [vmem:[%s4541_s2 + $0x148] sm:$0xff] }
 0x3d1   :  { %v381_v49 = vadd.f32 %v380_v29, %v3789_v54  ;;  %v389_v4 = vadd.f32 %v388_v46, %v386_v17 }
 0x3d3   :  { %382 = vadd.xlane.f32.xlu1 %v381_v49  ;;  %v390_v27 = vadd.f32 %v389_v4, %v387_v33  ;;  %v398_v49 = vld [vmem:[%s4543_s3] sm:$0xff] }
 0x3d5   :  { %391 = vadd.xlane.f32.xlu2 %v390_v27 }
 0x3ec   :  { %955 = vrot.lane.b32.xlu1 %v3277_v24, %s2421_s6 }
 0x3ed   :  { %957 = vrot.lane.b32.xlu2 %v3279_v58, %s2421_s6 }
 0x3f4   :  { %986 = vrot.lane.b32.xlu1 %v3277_v24, %s2422_s8 }
 0x3f5   :  { %988 = vrot.lane.b32.xlu2 %v3279_v58, %s2422_s8 }
 0x3fc   :  { %1013 = vrot.lane.b32.xlu1 %v4759_v40, %s2423_s17 }
 0x3fd   :  { %1015 = vrot.lane.b32.xlu2 %v4760_v44, %s2423_s17 }
 0x404   :  { %1019 = vrot.lane.b32.xlu1 %v3279_v58, %s2423_s17 }
 0x405   :  { %1044 = vrot.lane.b32.xlu2 %v4759_v40, %s2424_s18 }
 0x40c   :  { %1050 = vrot.lane.b32.xlu1 %v3279_v58, %s2424_s18 }
 0x40d   :  { %1033 = vperm.xlu2 %2396, %v2328_v18  }
 0x414   :  { %1075 = vrot.lane.b32.xlu1 %v4759_v40, %s2425_s25 }
 0x415   :  { %1077 = vrot.lane.b32.xlu2 %v4760_v44, %s2425_s25 }
 0x41c   :  { %1064 = vperm.xlu1 %2395, %v2329_v30  }
 0x41d   :  { %1081 = vrot.lane.b32.xlu2 %v3279_v58, %s2425_s25 }
 0x424   :  { %1108 = vrot.lane.b32.xlu1 %v4760_v44, %s2426_s28 }
 0x425   :  { %1110 = vrot.lane.b32.xlu2 %v3277_v24, %s2426_s28 }
 0x42c   :  { %1095 = vperm.xlu1 %2395, %v2330_v7  }
 0x42d   :  { %1668 = vperm.xlu2 %2396, %v2351_v20   ;;  %v2301_v20 = vld [vmem:[%s4543_s3 + $0x8] sm:$0xff] }
 0x434   :  { %1112 = vrot.lane.b32.xlu1 %v3279_v58, %s2426_s28 }
 0x435   :  { %1137 = vrot.lane.b32.xlu2 %v4759_v40, %s2427_s20 }
 0x43c   :  { %1141 = vrot.lane.b32.xlu1 %v3277_v24, %s2427_s20 }
 0x43d   :  { %1143 = vrot.lane.b32.xlu2 %v3279_v58, %s2427_s20 }
 0x444   :  { %1726 = vperm.xlu1 %2395, %v2353_v9  }
 0x445   :  { %1172 = vrot.lane.b32.xlu2 %v3277_v24, %s2428_s24 }
 0x446   :  { %v383_v3 = vpop.xlane.xlu1 %382 }
 0x447   :  { %v393_v31 = vmul.f32 0.001953125, %v383_v3 }
 0x448   :  { %v392_v26 = vpop.xlane.xlu2 %391 }
 0x449   :  { %v395_v45 = vmul.f32 %v393_v31, %v393_v31  ;;  %v394_v21 = vmul.f32 0.001953125, %v392_v26 }
 0x44b   :  { %v396_v19 = vsub.f32 %v394_v21, %v395_v45 }
 0x44c   :  { %1170 = vrot.lane.b32.xlu1 %v4760_v44, %s2428_s24 }
 0x44d   :  { %v397_v36 = vmax.f32 %v396_v19, 0.0  ;;  %1757 = vperm.xlu2 %2396, %v2354_v14  }
 0x44f   :  { %v401_v50 = vadd.f32 1e-05, %v397_v36 }
 0x450   :  { %v3861_v6 = vpop.permute.xlu2 %957 }
 0x451   :  { %2402 = vrsqrt.f32 %v401_v50  ;;  %vm408_vm6 = vweird.f32 %v401_v50 }
 0x454   :  { %1157 = vperm.xlu1 %2395, %v2332_v61  }
 0x455   :  { %1188 = vperm.xlu2 %2396, %v2333_v52  }
 0x457   :  { %v2403_v13 = vpop.eup %2402 }
 0x458   :  { %v403_v38 = vmul.f32 %v2403_v13, %v401_v50  ;;  %v3869_v41 = vpop.permute.xlu2 %988  ;;  %vm409_vm5 = vweird.f32 %v2403_v13 }
 0x459   :  { %vm410_vm7 = vmor %vm408_vm6, %vm409_vm5 }
 0x45a   :  { %v404_v62 = vmul.f32 %v2403_v13, %v403_v38  ;;  %v2326_v38 = vld [vmem:[%s4541_s2 + $0x90] sm:$0xff] }
 0x45c   :  { %v405_v2 = vmul.f32 0.5, %v404_v62  ;;  %1850 = vperm.xlu1 %2395, %v2357_v57   ;;  %v2346_v57 = vld [vmem:[%s4543_s3 + $0x38] sm:$0xff] }
 0x45d   :  { %1819 = vperm.xlu2 %2396, %v2356_v55   ;;  %v1553_v62 = vsub.f32 %v2346_v57, %v3787_v25  ;;  %v2327_v55 = vld [vmem:[%s4541_s2 + $0x98] sm:$0xff] }
 0x45e   :  { %v406_v29 = vsub.f32 1.5, %v405_v2  ;;  %v956_v17 = vpop.permute.xlu1 %955  ;;  %v2352_v2 = vld [vmem:[%s4541_s2 + $0x120] sm:$0xff] }
 0x460   :  { %v3877_v46 = vpop.permute.xlu2 %1015  ;;  %v407_v33 = vmul.f32 %v2403_v13, %v406_v29 }
 0x462   :  { %v411_v4 = vsel %vm410_vm7, %v2403_v13, %v407_v33  ;;  %v2331_v33 = vld [vmem:[%s4541_s2 + $0xc0] sm:$0xff] }
 0x463   :  { %v412_v27 = vmul.f32 %v411_v4, %v398_v49 }
 0x465   :  { %417 = vperm.xlu0 %2397, %v412_v27   ;;  %v413_v30 = vmul.f32 %v412_v27, %v393_v31  ;;  %v2325_v31 = vld [vmem:[%s4541_s2 + $0xb0] sm:$0xff] }
 0x466   :  { %v3882_v18 = vpop.permute.xlu1 %986 }
 0x467   :  { %v414_v9 = vsub.f32 %v2301_v20, %v413_v30  ;;  %v959_v30 = vsel %vm45_vm12, %v956_v17, %v3861_v6 }
 0x468   :  { %v3884_v7 = vpop.permute.xlu2 %1044 }
 0x46d   :  { %426 = vperm.xlu0 %2397, %v414_v9  }
 0x46e   :  { %v1014_v3 = vpop.permute.xlu1 %1013 }
 0x46f   :  { %v1023_v26 = vsel %vm129_vm14, %v1014_v3, %v3877_v46 }
 0x470   :  { %v1026_v45 = vmul.f32 %v1023_v26, %v3655_v42  ;;  %v3893_v21 = vpop.permute.xlu2 %1033 }
 0x472   :  { %v3896_v14 = vmul.f32 %v3893_v21, %v1026_v45 }
 0x475   :  { %944 = vperm.xlu0 %2397, %v2325_v31  }
 0x476   :  { %v3901_v19 = vpop.permute.xlu1 %1019 }
 0x477   :  { %v1024_v36 = vsel %vm129_vm14, %v3901_v19, %v1014_v3  ;;  %v4761_v3 = vld [vmem:[#allocation20_spill] sm:$0xff] }
 0x478   :  { %v1025_v50 = vmul.f32 %v1024_v36, %v3638_v5  ;;  %v966_v26 = vmul.f32 %v959_v30, %v4761_v3  ;;  %v4762_v36 = vld [vmem:[#allocation19_spill] sm:$0xff]  ;;  %v4774_v3 = vld [vmem:[#allocation36_spill] sm:$0xff] }
 0x47a   :  { %v3908_v61 = vmul.f32 %v3893_v21, %v1025_v50 }
 0x47d   :  { %951 = vrot.lane.b32.xlu0 %v4759_v40, %s2421_s6 }
 0x47e   :  { %v3912_v52 = vpop.permute.xlu1 %1050 }
 0x47f   :  { %v3918_v13 = vsel %vm172_vm15, %v3912_v52, %v3884_v7 }
 0x485   :  { %953 = vrot.lane.b32.xlu0 %v4760_v44, %s2421_s6 }
 0x48d   :  { %971 = vperm.xlu0 %2397, %v2326_v38  }
 0x495   :  { %982 = vrot.lane.b32.xlu0 %v4759_v40, %s2422_s8 }
 0x49d   :  { %1556 = vperm.xlu0 %2397, %v3777_v22  }
 0x4a5   :  { %1565 = vperm.xlu0 %2397, %v1553_v62  }
 0x4ad   :  { %984 = vrot.lane.b32.xlu0 %v4760_v44, %s2422_s8 }
 0x4b5   :  { %1002 = vperm.xlu0 %2397, %v2327_v55  }
 0x4bd   :  { %1017 = vrot.lane.b32.xlu0 %v3277_v24, %s2423_s17 }
 0x4c5   :  { %1046 = vrot.lane.b32.xlu0 %v4760_v44, %s2424_s18 }
 0x4cd   :  { %1048 = vrot.lane.b32.xlu0 %v3277_v24, %s2424_s18 }
 0x4d5   :  { %1079 = vrot.lane.b32.xlu0 %v3277_v24, %s2425_s25 }
 0x4d7   :  { %v418_v22 = vpop.permute.xlu0 %417 }
 0x4dd   :  { %1106 = vrot.lane.b32.xlu0 %v4759_v40, %s2426_s28 }
 0x4df   :  { %v427_v25 = vpop.permute.xlu0 %426 }
 0x4e5   :  { %1695 = vperm.xlu0 %2397, %v2352_v2  }
 0x4e7   :  { %v945_v29 = vpop.permute.xlu0 %944 }
 0x4e8   :  { %v947_v38 = vmul.f32 %v945_v29, %v4759_v40  ;;  %v948_v57 = vmul.f32 %v945_v29, %v4760_v44  ;;  %v950_v62 = vmul.f32 %v945_v29, %v3279_v58 }
 0x4ed   :  { %1139 = vrot.lane.b32.xlu0 %v4760_v44, %s2427_s20 }
 0x4ef   :  { %v952_v49 = vpop.permute.xlu0 %951 }
 0x4f0   :  { %v962_v20 = vsel %vm45_vm12, %v3861_v6, %v952_v49  ;;  %v949_v6 = vmul.f32 %v945_v29, %v3277_v24  ;;  %v2355_v24 = vld [vmem:[%s4541_s2 + $0x138] sm:$0xff] }
 0x4f1   :  { %v963_v45 = vmul.f32 %v962_v20, %v3618_v11 }
 0x4f5   :  { %1126 = vperm.xlu0 %2397, %v2331_v33  }
 0x4f7   :  { %v954_v4 = vpop.permute.xlu0 %953 }
 0x4f8   :  { %v961_v27 = vsel %vm45_vm12, %v952_v49, %v954_v4  ;;  %v960_v9 = vsel %vm45_vm12, %v954_v4, %v956_v17 }
 0x4f9   :  { %v964_v31 = vmul.f32 %v961_v27, %v3615_v59  ;;  %v965_v50 = vmul.f32 %v960_v9, %v4762_v36 }
 0x4fd   :  { %1168 = vrot.lane.b32.xlu0 %v4759_v40, %s2428_s24 }
 0x4ff   :  { %v972_v17 = vpop.permute.xlu0 %971 }
 0x500   :  { %v974_v55 = vmul.f32 %v972_v17, %v963_v45  ;;  %v975_v2 = vmul.f32 %v972_v17, %v964_v31  ;;  %v976_v49 = vmul.f32 %v972_v17, %v965_v50  ;;  %v977_v33 = vmul.f32 %v972_v17, %v966_v26 }
 0x501   :  { %v420_v31 = vmul.f32 %v418_v22, %v3779_v28  ;;  %v421_v50 = vmul.f32 %v418_v22, %v3781_v34  ;;  %v422_v17 = vmul.f32 %v418_v22, %v3783_v56  ;;  %v1576_v28 = vld [vmem:[%s4544_s4 + $0x20] sm:$0xff] }
 0x502   :  { %v3975_v4 = vadd.f32 %v974_v55, %v947_v38  ;;  %v3977_v30 = vadd.f32 %v975_v2, %v948_v57  ;;  %v3979_v27 = vadd.f32 %v976_v49, %v949_v6  ;;  %v3981_v20 = vadd.f32 %v977_v33, %v950_v62 }
 0x503   :  { %v423_v55 = vmul.f32 %v418_v22, %v3789_v54  ;;  %v430_v2 = vadd.f32 %v427_v25, %v421_v50  ;;  %v4001_v54 = vpop.permute.xlu1 %1075 }
 0x505   :  { %1174 = vrot.lane.b32.xlu0 %v3279_v58, %s2428_s24  ;;  %v434_v56 = vmax.f32 %v430_v2, 0.0 }
 0x507   :  { %v983_v40 = vpop.permute.xlu0 %982 }
 0x50d   :  { %1788 = vperm.xlu0 %2397, %v2355_v24   ;;  %v432_v24 = vadd.f32 %v427_v25, %v423_v55 }
 0x50f   :  { %v1557_v44 = vpop.permute.xlu0 %1556 }
 0x510   :  { %v1559_v29 = vmul.f32 %v1557_v44, %v3579_v23  ;;  %v1560_v9 = vmul.f32 %v1557_v44, %v3581_v43  ;;  %v1561_v26 = vmul.f32 %v1557_v44, %v3587_v16  ;;  %v1562_v45 = vmul.f32 %v1557_v44, %v3589_v35 }
 0x511   :  { %v429_v23 = vadd.f32 %v427_v25, %v420_v31  ;;  %v431_v35 = vadd.f32 %v427_v25, %v422_v17  ;;  %v436_v44 = vmax.f32 %v432_v24, 0.0  ;;  %v4763_v31 = vld [vmem:[#allocation25_spill] sm:$0xff] }
 0x513   :  { %v433_v34 = vmax.f32 %v429_v23, 0.0  ;;  %v435_v22 = vmax.f32 %v431_v35, 0.0 }
 0x517   :  { %v1566_v58 = vpop.permute.xlu0 %1565 }
 0x518   :  { %v1568_v38 = vadd.f32 %v1566_v58, %v1559_v29  ;;  %v1569_v57 = vadd.f32 %v1566_v58, %v1560_v9  ;;  %v1570_v6 = vadd.f32 %v1566_v58, %v1561_v26  ;;  %v1571_v62 = vadd.f32 %v1566_v58, %v1562_v45 }
 0x519   :  { %v990_v9 = vsel %vm86_vm13, %v3882_v18, %v3869_v41  ;;  %v993_v26 = vsel %vm86_vm13, %v3869_v41, %v983_v40  ;;  %v1056_v41 = vmul.f32 %v3918_v13, %v3672_v51 }
 0x51a   :  { %v1572_v43 = vmax.f32 %v1568_v38, 0.0  ;;  %v1573_v49 = vmax.f32 %v1569_v57, 0.0  ;;  %v1574_v16 = vmax.f32 %v1570_v6, 0.0  ;;  %v1575_v33 = vmax.f32 %v1571_v62, 0.0  ;;  %v4764_v57 = vld [vmem:[#allocation24_spill] sm:$0xff] }
 0x51b   :  { %v997_v50 = vmul.f32 %v990_v9, %v4763_v31  ;;  %v994_v58 = vmul.f32 %v993_v26, %v3629_v1 }
 0x51c   :  { %1595 = vmatpush.msrb.mxu0 %v1572_v43  ;;  %1615 = vmatpush.msrb.mxu1 %v1573_v49 }
 0x51d   :  { %1635 = vmatpush.msrb.mxu2 %v1574_v16  ;;  %1655 = vmatpush.msrb.mxu3 %v1575_v33 }
 0x51e   :  { %2347 = vmatmul.msk.f32.vlgmr.msrb.gmra.mxu0 %vm852_vm11, %v1576_v28  ;;  %2348 = vmatmul.msk.f32.vlgmr.msrb.gmra.mxu1 %vm852_vm11, %v1576_v28 }
 0x51f   :  { %2349 = vmatmul.msk.f32.vlgmr.msrb.gmra.mxu2 %vm852_vm11, %v1576_v28  ;;  %2350 = vmatmul.msk.f32.vlgmr.msrb.gmra.mxu3 %vm852_vm11, %v1576_v28  ;;  %v985_v25 = vpop.permute.xlu0 %984 }
 0x520   :  { %2005 = vmatpush.msra.mxu0 %v433_v34  ;;  %2028 = vmatpush.msra.mxu1 %v434_v56  ;;  %v992_v29 = vsel %vm86_vm13, %v983_v40, %v985_v25  ;;  %v991_v45 = vsel %vm86_vm13, %v985_v25, %v3882_v18  ;;  %v1065_v40 = vpop.permute.xlu1 %1064  ;;  %v4766_v56 = vld [vmem:[#allocation26_spill] sm:$0xff] }
 0x521   :  { %2051 = vmatpush.msra.mxu2 %v435_v22  ;;  %2074 = vmatpush.msra.mxu3 %v436_v44  ;;  %v995_v38 = vmul.f32 %v992_v29, %v3641_v8  ;;  %v996_v6 = vmul.f32 %v991_v45, %v4764_v57  ;;  %v1067_v33 = vmul.f32 %v1065_v40, %v1056_v41  ;;  %v4773_v57 = vld [vmem:[#allocation34_spill] sm:$0xff] }
 0x527   :  { %v1003_v62 = vpop.permute.xlu0 %1002 }
 0x528   :  { %v1005_v17 = vmul.f32 %v1003_v62, %v994_v58  ;;  %v1006_v55 = vmul.f32 %v1003_v62, %v995_v38  ;;  %v1007_v23 = vmul.f32 %v1003_v62, %v996_v6  ;;  %v1008_v2 = vmul.f32 %v1003_v62, %v997_v50  ;;  %v4767_v50 = vld [vmem:[#allocation29_spill] sm:$0xff]  ;;  %v4768_v38 = vld [vmem:[#allocation30_spill] sm:$0xff] }
 0x52a   :  { %v1009_v43 = vadd.f32 %v1005_v17, %v3975_v4  ;;  %v1010_v18 = vadd.f32 %v1006_v55, %v3977_v30  ;;  %v1011_v49 = vadd.f32 %v1007_v23, %v3979_v27  ;;  %v1012_v16 = vadd.f32 %v1008_v2, %v3981_v20  ;;  %v4765_v30 = vld [vmem:[#allocation27_spill] sm:$0xff]  ;;  %v4058_v23 = vpop.permute.xlu2 %1077 }
 0x52c   :  { %v1040_v35 = vadd.f32 %v3908_v61, %v1009_v43  ;;  %v1041_v24 = vadd.f32 %v3896_v14, %v1010_v18 }
 0x52e   :  { %v4029_v28 = vadd.f32 %v1067_v33, %v1040_v35 }
 0x52f   :  { %v1018_v34 = vpop.permute.xlu0 %1017 }
 0x530   :  { %v1021_v13 = vsel %vm129_vm14, %v1018_v34, %v3901_v19  ;;  %v1022_v4 = vsel %vm129_vm14, %v3877_v46, %v1018_v34 }
 0x531   :  { %v1027_v27 = vmul.f32 %v1022_v4, %v4765_v30  ;;  %v1028_v20 = vmul.f32 %v1021_v13, %v4766_v56  ;;  %v1109_v13 = vpop.permute.xlu1 %1108  ;;  %v4772_v30 = vld [vmem:[#allocation37_spill] sm:$0xff] }
 0x533   :  { %v1038_v22 = vmul.f32 %v3893_v21, %v1027_v27  ;;  %v1039_v61 = vmul.f32 %v3893_v21, %v1028_v20 }
 0x535   :  { %v1042_v14 = vadd.f32 %v1038_v22, %v1011_v49  ;;  %v1043_v44 = vadd.f32 %v1039_v61, %v1012_v16 }
 0x537   :  { %v1047_v25 = vpop.permute.xlu0 %1046 }
 0x538   :  { %v1054_v29 = vsel %vm172_vm15, %v3884_v7, %v1047_v25 }
 0x539   :  { %v1057_v19 = vmul.f32 %v1054_v29, %v3684_v0  ;;  %v4112_v22 = vpop.permute.xlu1 %1095 }
 0x53b   :  { %v1068_v9 = vmul.f32 %v1065_v40, %v1057_v19 }
 0x53d   :  { %v4045_v26 = vadd.f32 %v1068_v9, %v1041_v24 }
 0x53f   :  { %v1049_v46 = vpop.permute.xlu0 %1048 }
 0x540   :  { %v1052_v45 = vsel %vm172_vm15, %v1049_v46, %v3912_v52  ;;  %v1053_v21 = vsel %vm172_vm15, %v1047_v25, %v1049_v46 }
 0x541   :  { %v1058_v58 = vmul.f32 %v1053_v21, %v4767_v50  ;;  %v1059_v6 = vmul.f32 %v1052_v45, %v4768_v38  ;;  %v2359_v21 = vld [vmem:[%s4541_s2 + $0x160] sm:$0xff] }
 0x543   :  { %v1069_v62 = vmul.f32 %v1065_v40, %v1058_v58  ;;  %v1070_v17 = vmul.f32 %v1065_v40, %v1059_v6  ;;  %v4070_v40 = vpop.permute.xlu2 %1081 }
 0x545   :  { %v4054_v7 = vadd.f32 %v1069_v62, %v1042_v14  ;;  %v4056_v55 = vadd.f32 %v1070_v17, %v1043_v44  ;;  %v1113_v44 = vpop.permute.xlu1 %1112  ;;  %v2358_v62 = vld [vmem:[%s4541_s2 + $0x158] sm:$0xff] }
 0x547   :  { %v1080_v24 = vpop.permute.xlu0 %1079 }
 0x54b   :  { %v1111_v18 = vpop.permute.xlu2 %1110 }
 0x54c   :  { %v1115_v50 = vsel %vm258_vm9, %v1109_v13, %v1111_v18  ;;  %v1114_v38 = vsel %vm258_vm9, %v1111_v18, %v1113_v44 }
 0x54d   :  { %v1142_v19 = vpop.permute.xlu1 %1141  ;;  %v1119_v31 = vmul.f32 %v1115_v50, %v4772_v30  ;;  %v1120_v18 = vmul.f32 %v1114_v38, %v4773_v57 }
 0x54f   :  { %v1107_v20 = vpop.permute.xlu0 %1106 }
 0x553   :  { %v4084_v49 = vpop.permute.xlu2 %1668 }
 0x555   :  { %v4144_v45 = vpop.permute.xlu1 %1726 }
 0x557   :  { %v4120_v14 = vpop.permute.xlu0 %1695 }
 0x55b   :  { %v4094_v35 = vpop.permute.xlu2 %1137 }
 0x55d   :  { %v1171_v17 = vpop.permute.xlu1 %1170 }
 0x55f   :  { %v1140_v29 = vpop.permute.xlu0 %1139 }
 0x563   :  { %v4110_v27 = vpop.permute.xlu2 %1143 }
 0x567   :  { %v1127_v46 = vpop.permute.xlu0 %1126 }
 0x56b   :  { %v1173_v61 = vpop.permute.xlu2 %1172 }
 0x56c   :  { %v1177_v38 = vsel %vm344_vm1, %v1171_v17, %v1173_v61 }
 0x56f   :  { %v1169_v6 = vpop.permute.xlu0 %1168 }
 0x570   :  { %v1178_v50 = vsel %vm344_vm1, %v1169_v6, %v1171_v17 }
 0x573   :  { %v4128_v25 = vpop.permute.xlu2 %1757 }
 0x57b   :  { %v4136_v9 = vpop.permute.xlu2 %1188 }
 0x583   :  { %v4153_v58 = vpop.permute.xlu2 %1819 }
 0x59b   :  { %v1597_v2 = vpop.f32.mrf.mxu0  ;;  %v1617_v41 = vpop.f32.mrf.mxu1 }
 0x59c   :  { %v4060_v43 = vmax.f32 %v1597_v2, 0.0  ;;  %v4062_v52 = vmax.f32 %v1617_v41, 0.0  ;;  %v1084_v2 = vsel %vm215_vm8, %v4058_v23, %v1080_v24  ;;  %v1085_v41 = vsel %vm215_vm8, %v4001_v54, %v4058_v23  ;;  %v4771_v23 = vld [vmem:[#allocation32_spill] sm:$0xff] }
 0x59e   :  { %1677 = vrot.lane.b32.xlu2 %v4062_v52, %s2421_s6  ;;  %1737 = vrot.lane.b32.xlu0 %v4060_v43, %s2423_s17 }
 0x59f   :  { %1675 = vrot.lane.b32.xlu1 %v4060_v43, %s2421_s6 }
 0x5a2   :  { %v1657_v16 = vpop.f32.mrf.mxu3  ;;  %v1637_v34 = vpop.f32.mrf.mxu2 }
 0x5a3   :  { %v4092_v33 = vmax.f32 %v1657_v16, 0.0  ;;  %v4102_v4 = vmax.f32 %v1637_v34, 0.0  ;;  %v1083_v16 = vsel %vm215_vm8, %v1080_v24, %v4070_v40  ;;  %v1088_v34 = vmul.f32 %v1084_v2, %v3698_v10 }
 0x5a4   :  { %v1089_v56 = vmul.f32 %v1083_v16, %v4771_v23  ;;  %v1086_v24 = vsel %vm215_vm8, %v4070_v40, %v4001_v54  ;;  %v1146_v16 = vsel %vm301_vm0, %v1140_v29, %v1142_v19  ;;  %v1147_v54 = vsel %vm301_vm0, %v4094_v35, %v1140_v29  ;;  %v1158_v40 = vpop.permute.xlu1 %1157 }
 0x5a5   :  { %4769 = vst [vmem:[#allocation22_spill] sm:$0xff] %v4092_v33  ;;  %v1099_v2 = vmul.f32 %v4112_v22, %v1088_v34  ;;  %v1150_v17 = vmul.f32 %v1146_v16, %v3728_v48 }
 0x5a6   :  { %1708 = vrot.lane.b32.xlu2 %v4062_v52, %s2422_s8  ;;  %1801 = vrot.lane.b32.xlu0 %v4062_v52, %s2425_s25  ;;  %4770 = vst [vmem:[#allocation6_spill] sm:$0xff] %v4102_v4 }
 0x5a7   :  { %1706 = vrot.lane.b32.xlu1 %v4060_v43, %s2422_s8  ;;  %v1103_v57 = vadd.f32 %v1099_v2, %v4045_v26  ;;  %v4776_v2 = vld [vmem:[#allocation35_spill] sm:$0xff] }
 0x5ae   :  { %1770 = vrot.lane.b32.xlu2 %v4062_v52, %s2424_s18  ;;  %1832 = vrot.lane.b32.xlu0 %v4062_v52, %s2426_s28 }
 0x5af   :  { %1739 = vrot.lane.b32.xlu1 %v4062_v52, %s2423_s17 }
 0x5b6   :  { %1799 = vrot.lane.b32.xlu2 %v4060_v43, %s2425_s25  ;;  %1892 = vrot.lane.b32.xlu0 %v4060_v43, %s2428_s24 }
 0x5b7   :  { %1768 = vrot.lane.b32.xlu1 %v4060_v43, %s2424_s18 }
 0x5be   :  { %1830 = vrot.lane.b32.xlu2 %v4060_v43, %s2426_s28  ;;  %1681 = vrot.lane.b32.xlu0 %v4092_v33, %s2421_s6 }
 0x5bf   :  { %1861 = vrot.lane.b32.xlu1 %v4060_v43, %s2427_s20 }
 0x5c6   :  { %1863 = vrot.lane.b32.xlu2 %v4062_v52, %s2427_s20  ;;  %1679 = vrot.lane.b32.xlu0 %v4102_v4, %s2421_s6 }
 0x5c7   :  { %1894 = vrot.lane.b32.xlu1 %v4062_v52, %s2428_s24 }
 0x5ce   :  { %1710 = vrot.lane.b32.xlu2 %v4102_v4, %s2422_s8  ;;  %1712 = vrot.lane.b32.xlu0 %v4092_v33, %s2422_s8 }
 0x5cf   :  { %1772 = vrot.lane.b32.xlu1 %v4102_v4, %s2424_s18 }
 0x5d6   :  { %1743 = vrot.lane.b32.xlu2 %v4092_v33, %s2423_s17  ;;  %1741 = vrot.lane.b32.xlu0 %v4102_v4, %s2423_s17 }
 0x5d7   :  { %1803 = vrot.lane.b32.xlu1 %v4102_v4, %s2425_s25 }
 0x5de   :  { %1867 = vrot.lane.b32.xlu2 %v4092_v33, %s2427_s20  ;;  %1774 = vrot.lane.b32.xlu0 %v4092_v33, %s2424_s18 }
 0x5df   :  { %1805 = vrot.lane.b32.xlu1 %v4092_v33, %s2425_s25 }
 0x5e6   :  { %1896 = vrot.lane.b32.xlu2 %v4102_v4, %s2428_s24  ;;  %1836 = vrot.lane.b32.xlu0 %v4092_v33, %s2426_s28 }
 0x5e7   :  { %1834 = vrot.lane.b32.xlu1 %v4102_v4, %s2426_s28 }
 0x5ee   :  { %1912 = vperm.xlu2 %2396, %v2359_v21   ;;  %1865 = vrot.lane.b32.xlu0 %v4102_v4, %s2427_s20 }
 0x5ef   :  { %1898 = vrot.lane.b32.xlu1 %v4092_v33, %s2428_s24  ;;  %v1087_v33 = vmul.f32 %v1085_v41, %v3681_v37  ;;  %v1145_v41 = vsel %vm301_vm0, %v1142_v19, %v4110_v27  ;;  %v1117_v19 = vsel %vm258_vm9, %v1113_v44, %v1107_v20  ;;  %v1131_v37 = vmul.f32 %v1127_v46, %v1120_v18  ;;  %v4775_v44 = vld [vmem:[#allocation33_spill] sm:$0xff] }
 0x5f0   :  { %v1121_v36 = vmul.f32 %v1117_v19, %v4776_v2 }
 0x5f1   :  { %v1098_v4 = vmul.f32 %v4112_v22, %v1087_v33  ;;  %v1100_v33 = vmul.f32 %v4112_v22, %v1089_v56 }
 0x5f3   :  { %v1102_v23 = vadd.f32 %v1098_v4, %v4029_v28  ;;  %v1090_v28 = vmul.f32 %v1086_v24, %v4775_v44  ;;  %v1151_v4 = vmul.f32 %v1145_v41, %v3743_v12 }
 0x5f6   :  { %1881 = vperm.xlu0 %2397, %v2358_v62   ;;  %v1116_v62 = vsel %vm258_vm9, %v1107_v20, %v1109_v13  ;;  %v1175_v13 = vpop.permute.xlu0 %1174 }
 0x5f7   :  { %v1118_v51 = vmul.f32 %v1116_v62, %v4774_v3  ;;  %v1130_v62 = vmul.f32 %v1127_v46, %v1119_v31  ;;  %v1176_v29 = vsel %vm344_vm1, %v1173_v61, %v1175_v13  ;;  %v1149_v3 = vmul.f32 %v1147_v54, %v3726_v53 }
 0x5f8   :  { %v4169_v21 = vpop.permute.xlu2 %1677  ;;  %v1104_v31 = vadd.f32 %v1100_v33, %v4054_v7  ;;  %v1182_v20 = vmul.f32 %v1176_v29, %v3737_v63  ;;  %v1181_v61 = vmul.f32 %v1177_v38, %v3735_v32  ;;  %v1161_v53 = vmul.f32 %v1158_v40, %v1150_v17 }
 0x5f9   :  { %v1129_v34 = vmul.f32 %v1127_v46, %v1118_v51  ;;  %v1180_v51 = vmul.f32 %v1178_v50, %v3730_v47  ;;  %v1134_v26 = vadd.f32 %v1130_v62, %v1103_v57  ;;  %v1160_v54 = vmul.f32 %v1158_v40, %v1149_v3 }
 0x5fa   :  { %v1135_v16 = vadd.f32 %v1131_v37, %v1104_v31  ;;  %v1101_v50 = vmul.f32 %v4112_v22, %v1090_v28  ;;  %v1162_v7 = vmul.f32 %v1158_v40, %v1151_v4  ;;  %v1179_v57 = vsel %vm344_vm1, %v1175_v13, %v1169_v6 }
 0x5fb   :  { %v1133_v56 = vadd.f32 %v1129_v34, %v1102_v23  ;;  %v1191_v18 = vmul.f32 %v4136_v9, %v1180_v51  ;;  %v1132_v23 = vmul.f32 %v1127_v46, %v1121_v36  ;;  %v1165_v33 = vadd.f32 %v1161_v53, %v1134_v26  ;;  %v4230_v34 = vpop.permute.xlu1 %1850 }
 0x5fc   :  { %v1193_v41 = vmul.f32 %v4136_v9, %v1182_v20  ;;  %v1148_v3 = vsel %vm301_vm0, %v4110_v27, %v4094_v35  ;;  %v1192_v37 = vmul.f32 %v4136_v9, %v1181_v61  ;;  %v1105_v22 = vadd.f32 %v1101_v50, %v4056_v55 }
 0x5fd   :  { %v1164_v24 = vadd.f32 %v1160_v54, %v1133_v56  ;;  %v1166_v36 = vadd.f32 %v1162_v7, %v1135_v16  ;;  %v1183_v53 = vmul.f32 %v1179_v57, %v3757_v60  ;;  %v1152_v6 = vmul.f32 %v1148_v3, %v3720_v15 }
 0x5fe   :  { %v4228_v38 = vpop.permute.xlu0 %1788  ;;  %v1136_v13 = vadd.f32 %v1132_v23, %v1105_v22  ;;  %v4239_v19 = vadd.f32 %v1192_v37, %v1165_v33  ;;  %v1672_v54 = vmul.f32 %v4084_v49, %v4062_v52 }
 0x5ff   :  { %v4233_v62 = vadd.f32 %v1191_v18, %v1164_v24  ;;  %v4241_v35 = vadd.f32 %v1193_v41, %v1166_v36  ;;  %v1163_v27 = vmul.f32 %v1158_v40, %v1152_v6  ;;  %v1194_v29 = vmul.f32 %v4136_v9, %v1183_v53 }
 0x600   :  { %v4207_v30 = vpop.permute.xlu2 %1708  ;;  %v1205_v51 = vmul.f32 %v4239_v19, %v4239_v19 }
 0x601   :  { %v1204_v55 = vmul.f32 %v4233_v62, %v4233_v62  ;;  %v1167_v17 = vadd.f32 %v1163_v27, %v1136_v13  ;;  %v1206_v31 = vmul.f32 %v4241_v35, %v4241_v35  ;;  %v1199_v23 = vadd.f32 %v4239_v19, %v4233_v62 }
 0x603   :  { %v4250_v26 = vadd.f32 %v1194_v29, %v1167_v17  ;;  %v1208_v28 = vadd.f32 %v1205_v51, %v1204_v55  ;;  %v1200_v24 = vadd.f32 %v1199_v23, %v4241_v35 }
 0x605   :  { %v1209_v4 = vadd.f32 %v1208_v28, %v1206_v31  ;;  %v1207_v18 = vmul.f32 %v4250_v26, %v4250_v26  ;;  %v1201_v3 = vadd.f32 %v1200_v24, %v4250_v26 }
 0x607   :  { %v1210_v7 = vadd.f32 %v1209_v4, %v1207_v18 }
 0x608   :  { %v4236_v46 = vpop.permute.xlu2 %1770 }
 0x610   :  { %v1738_v56 = vpop.permute.xlu0 %1737  ;;  %v4256_v61 = vpop.permute.xlu2 %1799 }
 0x611   :  { %v1676_v20 = vpop.permute.xlu1 %1675 }
 0x612   :  { %v1685_v40 = vsel %vm45_vm12, %v1676_v20, %v4169_v21 }
 0x613   :  { %v1688_v9 = vmul.f32 %v1685_v40, %v3615_v59 }
 0x615   :  { %v1699_v16 = vmul.f32 %v4120_v14, %v1688_v9 }
 0x617   :  { %v1703_v50 = vadd.f32 %v1699_v16, %v1672_v54 }
 0x618   :  { %v1802_v57 = vpop.permute.xlu0 %1801  ;;  %v4270_v41 = vpop.permute.xlu2 %1830 }
 0x619   :  { %1211 = vadd.xlane.f32.xlu1 %v1210_v7  ;;  %v1707_v33 = vpop.permute.xlu1 %1706 }
 0x61a   :  { %v1716_v59 = vsel %vm86_vm13, %v1707_v33, %v4207_v30 }
 0x61b   :  { %v1719_v52 = vmul.f32 %v1716_v59, %v3641_v8 }
 0x61d   :  { %v1730_v22 = vmul.f32 %v4144_v45, %v1719_v52 }
 0x61f   :  { %v1734_v13 = vadd.f32 %v1730_v22, %v1703_v50 }
 0x620   :  { %v4273_v37 = vpop.permute.xlu0 %1832  ;;  %1202 = vadd.xlane.f32.xlu0 %v1201_v3  ;;  %v4280_v8 = vpop.permute.xlu2 %1863 }
 0x621   :  { %v1740_v36 = vpop.permute.xlu1 %1739 }
 0x622   :  { %v1747_v53 = vsel %vm129_vm14, %v1738_v56, %v1740_v36 }
 0x623   :  { %v1750_v6 = vmul.f32 %v1747_v53, %v3655_v42  ;;  %v1671_v42 = vmul.f32 %v4084_v49, %v4060_v43 }
 0x625   :  { %v1761_v27 = vmul.f32 %v4128_v25, %v1750_v6 }
 0x627   :  { %v1765_v29 = vadd.f32 %v1761_v27, %v1734_v13 }
 0x628   :  { %v4282_v55 = vpop.permute.xlu0 %1892  ;;  %v1711_v40 = vpop.permute.xlu2 %1710 }
 0x629   :  { %v1769_v17 = vpop.permute.xlu1 %1768 }
 0x630   :  { %v1682_v51 = vpop.permute.xlu0 %1681  ;;  %v1744_v50 = vpop.permute.xlu2 %1743 }
 0x631   :  { %v1686_v31 = vsel %vm45_vm12, %v1682_v51, %v1676_v20  ;;  %v4286_v28 = vpop.permute.xlu1 %1861  ;;  %v1748_v7 = vsel %vm129_vm14, %v1744_v50, %v1738_v56 }
 0x632   :  { %v1687_v9 = vmul.f32 %v1686_v31, %v3618_v11  ;;  %v1778_v11 = vsel %vm172_vm15, %v1769_v17, %v4236_v46  ;;  %v1749_v43 = vmul.f32 %v1748_v7, %v3638_v5 }
 0x633   :  { %v1781_v3 = vmul.f32 %v1778_v11, %v3684_v0  ;;  %v4778_v11 = vld [vmem:[#allocation3_spill] sm:$0xff] }
 0x634   :  { %v1698_v4 = vmul.f32 %v4120_v14, %v1687_v9  ;;  %v1760_v22 = vmul.f32 %v4128_v25, %v1749_v43  ;;  %v1809_v9 = vsel %vm215_vm8, %v4256_v61, %v1802_v57 }
 0x635   :  { %v1811_v43 = vmul.f32 %v1809_v9, %v4778_v11  ;;  %v4783_v9 = vld [vmem:[#allocation6_spill] sm:$0xff] }
 0x636   :  { %v1702_v54 = vadd.f32 %v1698_v4, %v1671_v42  ;;  %v1840_v4 = vsel %vm258_vm9, %v4270_v41, %v4273_v37 }
 0x638   :  { %v1680_v16 = vpop.permute.xlu0 %1679 }
 0x639   :  { %v4292_v18 = vpop.permute.xlu1 %1894 }
 0x640   :  { %v1713_v23 = vpop.permute.xlu0 %1712 }
 0x641   :  { %v1717_v20 = vsel %vm86_vm13, %v1713_v23, %v1707_v33  ;;  %v1773_v59 = vpop.permute.xlu1 %1772  ;;  %v1792_v33 = vmul.f32 %v4228_v38, %v1781_v3  ;;  %v4780_v3 = vld [vmem:[#allocation36_spill] sm:$0xff] }
 0x642   :  { %v1718_v24 = vmul.f32 %v1717_v20, %v3629_v1  ;;  %v1684_v1 = vsel %vm45_vm12, %v4169_v21, %v1680_v16 }
 0x643   :  { %v1796_v5 = vadd.f32 %v1792_v33, %v1765_v29  ;;  %v1683_v29 = vsel %vm45_vm12, %v1680_v16, %v1682_v51  ;;  %v1714_v33 = vsel %vm86_vm13, %v1711_v40, %v1713_v23  ;;  %v4781_v51 = vld [vmem:[#allocation20_spill] sm:$0xff] }
 0x644   :  { %v1729_v52 = vmul.f32 %v4144_v45, %v1718_v24  ;;  %v4779_v24 = vld [vmem:[#allocation21_spill] sm:$0xff]  ;;  %v1690_v16 = vmul.f32 %v1683_v29, %v4781_v51  ;;  %v4785_v29 = vld [vmem:[#allocation27_spill] sm:$0xff] }
 0x646   :  { %v1733_v56 = vadd.f32 %v1729_v52, %v1702_v54  ;;  %v4777_v54 = vld [vmem:[#allocation19_spill] sm:$0xff]  ;;  %v1701_v11 = vmul.f32 %v4120_v14, %v1690_v16 }
 0x647   :  { %v1689_v7 = vmul.f32 %v1684_v1, %v4777_v54 }
 0x648   :  { %v1742_v53 = vpop.permute.xlu0 %1741  ;;  %v1764_v6 = vadd.f32 %v1760_v22, %v1733_v56  ;;  %v1842_v22 = vmul.f32 %v1840_v4, %v4780_v3  ;;  %v4332_v56 = vpop.permute.xlu2 %1867  ;;  %v1673_v4 = vmul.f32 %v4084_v49, %v4783_v9  ;;  %v4787_v3 = vld [vmem:[#allocation22_spill] sm:$0xff] }
 0x649   :  { %v1804_v13 = vpop.permute.xlu1 %1803  ;;  %v1745_v1 = vsel %vm129_vm14, %v1742_v53, %v1744_v50 }
 0x64a   :  { %v1808_v27 = vsel %vm215_vm8, %v1802_v57, %v1804_v13  ;;  %v1715_v57 = vsel %vm86_vm13, %v4207_v30, %v1711_v40  ;;  %v4784_v40 = vld [vmem:[#allocation25_spill] sm:$0xff] }
 0x64b   :  { %v1812_v31 = vmul.f32 %v1808_v27, %v3698_v10  ;;  %v1746_v27 = vsel %vm129_vm14, %v1740_v36, %v1742_v53  ;;  %v1721_v23 = vmul.f32 %v1714_v33, %v4784_v40  ;;  %v1674_v33 = vmul.f32 %v4084_v49, %v4787_v3  ;;  %v4789_v49 = vld [vmem:[#allocation37_spill] sm:$0xff] }
 0x64d   :  { %v1823_v0 = vmul.f32 %v4153_v58, %v1812_v31  ;;  %v1732_v51 = vmul.f32 %v4144_v45, %v1721_v23 }
 0x64f   :  { %v1827_v42 = vadd.f32 %v1823_v0, %v1796_v5  ;;  %v4782_v5 = vld [vmem:[#allocation24_spill] sm:$0xff]  ;;  %v1822_v0 = vmul.f32 %v4153_v58, %v1811_v43 }
 0x650   :  { %v1775_v10 = vpop.permute.xlu0 %1774  ;;  %v1720_v30 = vmul.f32 %v1715_v57, %v4782_v5 }
 0x651   :  { %v1779_v21 = vsel %vm172_vm15, %v1775_v10, %v1769_v17  ;;  %v1806_v20 = vpop.permute.xlu1 %1805  ;;  %v1700_v17 = vmul.f32 %v4120_v14, %v1689_v7  ;;  %v1853_v7 = vmul.f32 %v4230_v34, %v1842_v22  ;;  %v1776_v36 = vsel %vm172_vm15, %v1773_v59, %v1775_v10  ;;  %v4788_v10 = vld [vmem:[#allocation30_spill] sm:$0xff] }
 0x652   :  { %v1780_v52 = vmul.f32 %v1779_v21, %v4779_v24  ;;  %v1751_v21 = vmul.f32 %v1746_v27, %v4785_v29  ;;  %v4786_v24 = vld [vmem:[#allocation26_spill] sm:$0xff]  ;;  %v1783_v27 = vmul.f32 %v1776_v36, %v4788_v10 }
 0x653   :  { %v1704_v57 = vadd.f32 %v1700_v17, %v1673_v4  ;;  %v1752_v50 = vmul.f32 %v1745_v1, %v4786_v24  ;;  %v4792_v36 = vld [vmem:[#allocation34_spill] sm:$0xff] }
 0x654   :  { %v1791_v31 = vmul.f32 %v4228_v38, %v1780_v52  ;;  %v1731_v52 = vmul.f32 %v4144_v45, %v1720_v30  ;;  %v1762_v17 = vmul.f32 %v4128_v25, %v1751_v21  ;;  %v1705_v30 = vadd.f32 %v1701_v11, %v1674_v33 }
 0x655   :  { %v1810_v45 = vsel %vm215_vm8, %v1806_v20, %v4256_v61  ;;  %v1794_v23 = vmul.f32 %v4228_v38, %v1783_v27 }
 0x656   :  { %v1795_v54 = vadd.f32 %v1791_v31, %v1764_v6  ;;  %v1777_v6 = vsel %vm172_vm15, %v4236_v46, %v1773_v59  ;;  %v1807_v31 = vsel %vm215_vm8, %v1804_v13, %v1806_v20  ;;  %v1735_v1 = vadd.f32 %v1731_v52, %v1704_v57  ;;  %v1897_v59 = vpop.permute.xlu2 %1896 }
 0x657   :  { %v1763_v46 = vmul.f32 %v4128_v25, %v1752_v50  ;;  %v1736_v40 = vadd.f32 %v1732_v51, %v1705_v30  ;;  %v4791_v25 = vld [vmem:[#allocation32_spill] sm:$0xff]  ;;  %v1814_v61 = vmul.f32 %v1810_v45, %v4775_v44  ;;  %v1871_v50 = vsel %vm301_vm0, %v4286_v28, %v4280_v8  ;;  %v4793_v51 = vld [vmem:[#allocation9_spill] sm:$0xff] }
 0x658   :  { %v1826_v53 = vadd.f32 %v1822_v0, %v1795_v54  ;;  %v1837_v43 = vpop.permute.xlu0 %1836  ;;  %v4790_v0 = vld [vmem:[#allocation29_spill] sm:$0xff]  ;;  %v1813_v54 = vmul.f32 %v1807_v31, %v4791_v25  ;;  %v1872_v44 = vsel %vm301_vm0, %v4332_v56, %v4286_v28  ;;  %v1873_v10 = vmul.f32 %v1871_v50, %v4793_v51 }
 0x659   :  { %v1835_v22 = vpop.permute.xlu1 %1834  ;;  %v1782_v9 = vmul.f32 %v1777_v6, %v4790_v0  ;;  %v1767_v29 = vadd.f32 %v1763_v46, %v1736_v40 }
 0x65a   :  { %v1839_v14 = vsel %vm258_vm9, %v4273_v37, %v1835_v22  ;;  %v1857_v16 = vadd.f32 %v1853_v7, %v1826_v53  ;;  %v1841_v37 = vsel %vm258_vm9, %v1837_v43, %v4270_v41  ;;  %v1838_v13 = vsel %vm258_vm9, %v1835_v22, %v1837_v43 }
 0x65b   :  { %v1843_v5 = vmul.f32 %v1839_v14, %v4789_v49  ;;  %v1766_v7 = vadd.f32 %v1762_v17, %v1735_v1  ;;  %v1845_v21 = vmul.f32 %v1841_v37, %v4776_v2  ;;  %v1844_v11 = vmul.f32 %v1838_v13, %v4792_v36 }
 0x65c   :  { %v1793_v57 = vmul.f32 %v4228_v38, %v1782_v9  ;;  %v1824_v53 = vmul.f32 %v4153_v58, %v1813_v54  ;;  %v1902_v2 = vsel %vm344_vm1, %v4282_v55, %v4292_v18  ;;  %v1825_v43 = vmul.f32 %v4153_v58, %v1814_v61 }
 0x65d   :  { %v1854_v4 = vmul.f32 %v4230_v34, %v1843_v5  ;;  %v1856_v3 = vmul.f32 %v4230_v34, %v1845_v21  ;;  %v1855_v33 = vmul.f32 %v4230_v34, %v1844_v11  ;;  %v1901_v22 = vsel %vm344_vm1, %v4292_v18, %v1897_v59 }
 0x65e   :  { %v1797_v38 = vadd.f32 %v1793_v57, %v1766_v7  ;;  %v1904_v17 = vmul.f32 %v1902_v2, %v3730_v47  ;;  %v1913_v31 = vpop.permute.xlu2 %1912  ;;  %v1905_v18 = vmul.f32 %v1901_v22, %v3735_v32  ;;  %v2335_v22 = vld [vmem:[%s4543_s3 + $0x28] sm:$0xff] }
 0x65f   :  { %v1858_v20 = vadd.f32 %v1854_v4, %v1827_v42  ;;  %v1798_v42 = vadd.f32 %v1794_v23, %v1767_v29 }
 0x660   :  { %v1866_v41 = vpop.permute.xlu0 %1865  ;;  %v1828_v27 = vadd.f32 %v1824_v53, %v1797_v38 }
 0x661   :  { %v1899_v24 = vpop.permute.xlu1 %1898  ;;  %v1869_v28 = vsel %vm301_vm0, %v1866_v41, %v4332_v56  ;;  %v1870_v6 = vsel %vm301_vm0, %v4280_v8, %v1866_v41  ;;  %v1829_v34 = vadd.f32 %v1825_v43, %v1798_v42  ;;  %v1876_v56 = vmul.f32 %v1872_v44, %v3720_v15 }
 0x662   :  { %v1900_v52 = vsel %vm344_vm1, %v1897_v59, %v1899_v24  ;;  %v1903_v58 = vsel %vm344_vm1, %v1899_v24, %v4282_v55  ;;  %v1874_v8 = vmul.f32 %v1870_v6, %v3728_v48  ;;  %v1875_v49 = vmul.f32 %v1869_v28, %v3743_v12 }
 0x663   :  { %v1906_v14 = vmul.f32 %v1900_v52, %v3737_v63  ;;  %v1860_v5 = vadd.f32 %v1856_v3, %v1829_v34  ;;  %v1859_v39 = vadd.f32 %v1855_v33, %v1828_v27  ;;  %v1907_v55 = vmul.f32 %v1903_v58, %v3757_v60  ;;  %v2334_v3 = vld [vmem:[%s4543_s3 + $0x20] sm:$0xff] }
 0x664   :  { %v1915_v59 = vmul.f32 %v1913_v31, %v1904_v17  ;;  %v1916_v15 = vmul.f32 %v1913_v31, %v1905_v18 }
 0x665   :  { %v1917_v0 = vmul.f32 %v1913_v31, %v1906_v14  ;;  %v1918_v13 = vmul.f32 %v1913_v31, %v1907_v55 }
 0x668   :  { %v1882_v30 = vpop.permute.xlu0 %1881 }
 0x669   :  { %v1884_v1 = vmul.f32 %v1882_v30, %v1873_v10  ;;  %v1885_v46 = vmul.f32 %v1882_v30, %v1874_v8  ;;  %v1886_v45 = vmul.f32 %v1882_v30, %v1875_v49  ;;  %v1887_v63 = vmul.f32 %v1882_v30, %v1876_v56  ;;  %v2360_v30 = vld [vmem:[%s4543_s3 + $0x40] sm:$0xff] }
 0x66b   :  { %v1888_v47 = vadd.f32 %v1884_v1, %v1857_v16  ;;  %v1889_v9 = vadd.f32 %v1885_v46, %v1858_v20  ;;  %v1890_v37 = vadd.f32 %v1886_v45, %v1859_v39  ;;  %v1891_v48 = vadd.f32 %v1887_v63, %v1860_v5  ;;  %v2361_v63 = vld [vmem:[%s4543_s3 + $0x48] sm:$0xff] }
 0x66d   :  { %v4424_v12 = vadd.f32 %v1915_v59, %v1888_v47  ;;  %v4426_v32 = vadd.f32 %v1916_v15, %v1889_v9  ;;  %v4428_v4 = vadd.f32 %v1917_v0, %v1890_v37  ;;  %v4430_v60 = vadd.f32 %v1918_v13, %v1891_v48 }
 0x66f   :  { %v1923_v40 = vadd.f32 %v4426_v32, %v4424_v12  ;;  %v1928_v23 = vmul.f32 %v4424_v12, %v4424_v12  ;;  %v1929_v16 = vmul.f32 %v4426_v32, %v4426_v32  ;;  %v1930_v54 = vmul.f32 %v4428_v4, %v4428_v4 }
 0x670   :  { %v1931_v20 = vmul.f32 %v4430_v60, %v4430_v60 }
 0x671   :  { %v1924_v25 = vadd.f32 %v1923_v40, %v4428_v4  ;;  %v1932_v7 = vadd.f32 %v1929_v16, %v1928_v23 }
 0x673   :  { %v1925_v61 = vadd.f32 %v1924_v25, %v4430_v60  ;;  %v1933_v29 = vadd.f32 %v1932_v7, %v1930_v54 }
 0x675   :  { %1926 = vadd.xlane.f32.xlu2 %v1925_v61  ;;  %v1934_v21 = vadd.f32 %v1933_v29, %v1931_v20 }
 0x677   :  { %1935 = vadd.xlane.f32.xlu0 %v1934_v21 }
 0x68c   :  { %v1212_v36 = vpop.xlane.xlu1 %1211 }
 0x68d   :  { %v1214_v57 = vmul.f32 0.001953125, %v1212_v36 }
 0x693   :  { %v1203_v11 = vpop.xlane.xlu0 %1202 }
 0x694   :  { %v1213_v41 = vmul.f32 0.001953125, %v1203_v11 }
 0x696   :  { %v1215_v24 = vmul.f32 %v1213_v41, %v1213_v41 }
 0x698   :  { %v1216_v50 = vsub.f32 %v1214_v57, %v1215_v24 }
 0x69a   :  { %v1217_v44 = vmax.f32 %v1216_v50, 0.0 }
 0x69c   :  { %v1222_v42 = vadd.f32 1e-05, %v1217_v44 }
 0x69e   :  { %2404 = vrsqrt.f32 %v1222_v42  ;;  %vm1229_vm12 = vweird.f32 %v1222_v42 }
 0x6a4   :  { %v2405_v53 = vpop.eup %2404 }
 0x6a5   :  { %v1224_v2 = vmul.f32 %v2405_v53, %v1222_v42  ;;  %vm1230_vm10 = vweird.f32 %v2405_v53 }
 0x6a6   :  { %vm1231_vm13 = vmor %vm1229_vm12, %vm1230_vm10 }
 0x6a7   :  { %v1225_v38 = vmul.f32 %v2405_v53, %v1224_v2 }
 0x6a9   :  { %v1226_v43 = vmul.f32 0.5, %v1225_v38 }
 0x6ab   :  { %v1227_v52 = vsub.f32 1.5, %v1226_v43  ;;  %v2190_v43 = vld [vmem:[%s4544_s4 + $0x28] sm:$0xff] }
 0x6ad   :  { %v1228_v33 = vmul.f32 %v2405_v53, %v1227_v52 }
 0x6af   :  { %v1232_v28 = vsel %vm1231_vm13, %v2405_v53, %v1228_v33 }
 0x6b0   :  { %v1233_v6 = vmul.f32 %v2334_v3, %v1232_v28 }
 0x6b2   :  { %v1234_v58 = vmul.f32 %v1233_v6, %v1213_v41  ;;  %1238 = vperm.xlu1 %2395, %v1233_v6  }
 0x6b4   :  { %v1235_v51 = vsub.f32 %v2335_v22, %v1234_v58 }
 0x6b6   :  { %1247 = vperm.xlu2 %2396, %v1235_v51  }
 0x6e8   :  { %v1927_v10 = vpop.xlane.xlu2 %1926 }
 0x6e9   :  { %v1937_v27 = vmul.f32 0.001953125, %v1927_v10 }
 0x6ea   :  { %v1936_v34 = vpop.xlane.xlu0 %1935 }
 0x6eb   :  { %v1939_v14 = vmul.f32 %v1937_v27, %v1937_v27  ;;  %v1938_v56 = vmul.f32 0.001953125, %v1936_v34 }
 0x6ed   :  { %v1940_v17 = vsub.f32 %v1938_v56, %v1939_v14 }
 0x6ef   :  { %v1941_v31 = vmax.f32 %v1940_v17, 0.0 }
 0x6f1   :  { %v1946_v8 = vadd.f32 1e-05, %v1941_v31 }
 0x6f3   :  { %2406 = vrsqrt.f32 %v1946_v8  ;;  %vm1953_vm15 = vweird.f32 %v1946_v8 }
 0x6f9   :  { %v2407_v49 = vpop.eup %2406 }
 0x6fa   :  { %v1948_v18 = vmul.f32 %v2407_v49, %v1946_v8  ;;  %vm1954_vm14 = vweird.f32 %v2407_v49 }
 0x6fb   :  { %vm1955_vm8 = vmor %vm1953_vm15, %vm1954_vm14 }
 0x6fc   :  { %v1949_v5 = vmul.f32 %v2407_v49, %v1948_v18 }
 0x6fe   :  { %v1950_v39 = vmul.f32 0.5, %v1949_v5 }
 0x700   :  { %v1951_v55 = vsub.f32 1.5, %v1950_v39 }
 0x702   :  { %v1952_v1 = vmul.f32 %v2407_v49, %v1951_v55 }
 0x704   :  { %v1956_v46 = vsel %vm1955_vm8, %v2407_v49, %v1952_v1 }
 0x705   :  { %v1957_v45 = vmul.f32 %v2360_v30, %v1956_v46 }
 0x707   :  { %1962 = vperm.xlu0 %2397, %v1957_v45   ;;  %v1958_v59 = vmul.f32 %v1957_v45, %v1937_v27 }
 0x709   :  { %v1959_v15 = vsub.f32 %v2361_v63, %v1958_v59 }
 0x70b   :  { %1971 = vperm.xlu2 %2396, %v1959_v15  }
 0x710   :  { %v1248_v13 = vpop.permute.xlu2 %1247 }
 0x724   :  { %v1239_v0 = vpop.permute.xlu1 %1238 }
 0x725   :  { %v1241_v47 = vmul.f32 %v1239_v0, %v4233_v62  ;;  %v1242_v9 = vmul.f32 %v1239_v0, %v4239_v19  ;;  %v1243_v37 = vmul.f32 %v1239_v0, %v4241_v35  ;;  %v1244_v48 = vmul.f32 %v1239_v0, %v4250_v26  ;;  %v1982_v62 = vld [vmem:[%s4544_s4] sm:$0xff]  ;;  %v1983_v19 = vld [vmem:[%s4544_s4 + $0x8] sm:$0xff]  ;;  %v2098_v35 = vld [vmem:[%s4544_s4 + $0x18] sm:$0xff] }
 0x726   :  { %2366 = vmatmul.msk.f32.vlgmr.msra.gmra.mxu2 %vm852_vm11, %v1982_v62  ;;  %2368 = vmatmul.msk.f32.vlgmr.msra.gmra.mxu3 %vm852_vm11, %v1982_v62 }
 0x727   :  { %v1250_v40 = vadd.f32 %v1248_v13, %v1241_v47  ;;  %v1251_v23 = vadd.f32 %v1248_v13, %v1242_v9  ;;  %v1252_v16 = vadd.f32 %v1248_v13, %v1243_v37  ;;  %v1253_v25 = vadd.f32 %v1248_v13, %v1244_v48  ;;  %2362 = vmatmul.msk.f32.vlgmr.msra.gmra.mxu0 %vm852_vm11, %v1982_v62 }
 0x728   :  { %2364 = vmatmul.msk.f32.vlgmr.msra.gmra.mxu1 %vm852_vm11, %v1982_v62 }
 0x729   :  { %v1254_v54 = vmax.f32 %v1250_v40, 0.0  ;;  %v1255_v7 = vmax.f32 %v1251_v23, 0.0  ;;  %v1256_v61 = vmax.f32 %v1252_v16, 0.0  ;;  %v1257_v20 = vmax.f32 %v1253_v25, 0.0 }
 0x72b   :  { %2117 = vmatpush.msrb.mxu0 %v1254_v54  ;;  %2137 = vmatpush.msrb.mxu1 %v1255_v7 }
 0x72c   :  { %2157 = vmatpush.msrb.mxu2 %v1256_v61  ;;  %2177 = vmatpush.msrb.mxu3 %v1257_v20 }
 0x72e   :  { %2367 = vmatmul.msk.f32.gmra.mxu2 %vm852_vm11, %v1983_v19  ;;  %2369 = vmatmul.msk.f32.gmra.mxu3 %vm852_vm11, %v1983_v19 }
 0x72f   :  { %2363 = vmatmul.msk.f32.gmra.mxu0 %vm852_vm11, %v1983_v19 }
 0x730   :  { %2365 = vmatmul.msk.f32.gmra.mxu1 %vm852_vm11, %v1983_v19 }
 0x736   :  { %2372 = vmatmul.msk.f32.vlgmr.msrb.gmra.mxu2 %vm852_vm11, %v2098_v35  ;;  %2373 = vmatmul.msk.f32.vlgmr.msrb.gmra.mxu3 %vm852_vm11, %v2098_v35 }
 0x737   :  { %2370 = vmatmul.msk.f32.vlgmr.msrb.gmra.mxu0 %vm852_vm11, %v2098_v35 }
 0x738   :  { %2371 = vmatmul.msk.f32.vlgmr.msrb.gmra.mxu1 %vm852_vm11, %v2098_v35 }
 0x765   :  { %v1972_v41 = vpop.permute.xlu2 %1971 }
 0x779   :  { %v1963_v26 = vpop.permute.xlu0 %1962 }
 0x77a   :  { %v1965_v29 = vmul.f32 %v1963_v26, %v4424_v12  ;;  %v1966_v21 = vmul.f32 %v1963_v26, %v4426_v32  ;;  %v1967_v36 = vmul.f32 %v1963_v26, %v4428_v4  ;;  %v1968_v11 = vmul.f32 %v1963_v26, %v4430_v60 }
 0x77c   :  { %v1974_v57 = vadd.f32 %v1972_v41, %v1965_v29  ;;  %v1975_v24 = vadd.f32 %v1972_v41, %v1966_v21  ;;  %v1976_v50 = vadd.f32 %v1972_v41, %v1967_v36  ;;  %v1977_v44 = vadd.f32 %v1972_v41, %v1968_v11 }
 0x77e   :  { %v1978_v42 = vmax.f32 %v1974_v57, 0.0  ;;  %v1979_v53 = vmax.f32 %v1975_v24, 0.0  ;;  %v1980_v2 = vmax.f32 %v1976_v50, 0.0  ;;  %v1981_v38 = vmax.f32 %v1977_v44, 0.0 }
 0x780   :  { %2209 = vmatpush.msra.mxu0 %v1978_v42  ;;  %2229 = vmatpush.msra.mxu1 %v1979_v53 }
 0x781   :  { %2249 = vmatpush.msra.mxu2 %v1980_v2  ;;  %2269 = vmatpush.msra.mxu3 %v1981_v38 }
 0x782   :  { %2376 = vmatmul.msk.f32.vlgmr.msra.gmra.mxu2 %vm852_vm11, %v2190_v43  ;;  %2377 = vmatmul.msk.f32.vlgmr.msra.gmra.mxu3 %vm852_vm11, %v2190_v43 }
 0x783   :  { %2374 = vmatmul.msk.f32.vlgmr.msra.gmra.mxu0 %vm852_vm11, %v2190_v43  ;;  %2375 = vmatmul.msk.f32.vlgmr.msra.gmra.mxu1 %vm852_vm11, %v2190_v43 }
 0x7a4   :  { %v2007_v12 = vpop.f32.mrf.mxu0 }
 0x7a5   :  { %v2030_v32 = vpop.f32.mrf.mxu1  ;;  %v2082_v4 = vmax.f32 %v2007_v12, 0.0 }
 0x7a6   :  { %v2083_v60 = vmax.f32 %v2030_v32, 0.0 }
 0x7a7   :  { %2090 = vst [vmem:[%s4545_s5] sm:$0xff] %v2082_v4 }
 0x7a8   :  { %2091 = vst [vmem:[%s4545_s5 + $0x8] sm:$0xff] %v2083_v60 }
 0x7a9   :  { %v2053_v52 = vpop.f32.mrf.mxu2  ;;  %v2076_v3 = vpop.f32.mrf.mxu3 }
 0x7aa   :  { %v2084_v33 = vmax.f32 %v2053_v52, 0.0  ;;  %v2085_v28 = vmax.f32 %v2076_v3, 0.0 }
 0x7ac   :  { %2092 = vst [vmem:[%s4545_s5 + $0x10] sm:$0xff] %v2084_v33  ;;  %v2010_v6 = vpop.f32.mrf.mxu0 }
 0x7ad   :  { %v2033_v22 = vpop.f32.mrf.mxu1  ;;  %2093 = vst [vmem:[%s4545_s5 + $0x18] sm:$0xff] %v2085_v28  ;;  %v2086_v58 = vmax.f32 %v2010_v6, 0.0 }
 0x7ae   :  { %v2087_v51 = vmax.f32 %v2033_v22, 0.0 }
 0x7af   :  { %2094 = vst [vmem:[%s4545_s5 + $0x20] sm:$0xff] %v2086_v58 }
 0x7b0   :  { %2095 = vst [vmem:[%s4545_s5 + $0x28] sm:$0xff] %v2087_v51 }
 0x7b1   :  { %v2056_v10 = vpop.f32.mrf.mxu2  ;;  %v2079_v27 = vpop.f32.mrf.mxu3 }
 0x7b2   :  { %v2088_v34 = vmax.f32 %v2056_v10, 0.0  ;;  %v2089_v14 = vmax.f32 %v2079_v27, 0.0 }
 0x7b4   :  { %2096 = vst [vmem:[%s4545_s5 + $0x30] sm:$0xff] %v2088_v34  ;;  %v2119_v56 = vpop.f32.mrf.mxu0 }
 0x7b5   :  { %2097 = vst [vmem:[%s4545_s5 + $0x38] sm:$0xff] %v2089_v14  ;;  %v2139_v17 = vpop.f32.mrf.mxu1  ;;  %v2182_v31 = vmax.f32 %v2119_v56, 0.0 }
 0x7b6   :  { %v2183_v8 = vmax.f32 %v2139_v17, 0.0 }
 0x7b7   :  { %2186 = vst [vmem:[%s4545_s5 + $0x40] sm:$0xff] %v2182_v31 }
 0x7b8   :  { %2187 = vst [vmem:[%s4545_s5 + $0x48] sm:$0xff] %v2183_v8 }
 0x7b9   :  { %v2159_v49 = vpop.f32.mrf.mxu2  ;;  %v2179_v18 = vpop.f32.mrf.mxu3 }
 0x7ba   :  { %v2184_v5 = vmax.f32 %v2159_v49, 0.0  ;;  %v2185_v39 = vmax.f32 %v2179_v18, 0.0 }
 0x7bc   :  { %2188 = vst [vmem:[%s4545_s5 + $0x50] sm:$0xff] %v2184_v5 }
 0x7bd   :  { %2189 = vst [vmem:[%s4545_s5 + $0x58] sm:$0xff] %v2185_v39 }
 0x800   :  { %v2211_v55 = vpop.f32.mrf.mxu0  ;;  %v2231_v30 = vpop.f32.mrf.mxu1 }
 0x801   :  { %v2274_v1 = vmax.f32 %v2211_v55, 0.0  ;;  %v2275_v46 = vmax.f32 %v2231_v30, 0.0 }
 0x803   :  { %2278 = vst [vmem:[%s4545_s5 + $0x60] sm:$0xff] %v2274_v1 }
 0x804   :  { %2279 = vst [vmem:[%s4545_s5 + $0x68] sm:$0xff] %v2275_v46 }
 0x805   :  { %v2251_v45 = vpop.f32.mrf.mxu2  ;;  %v2271_v63 = vpop.f32.mrf.mxu3 }
 0x806   :  { %v2276_v59 = vmax.f32 %v2251_v45, 0.0  ;;  %v2277_v15 = vmax.f32 %v2271_v63, 0.0 }
 0x808   :  { %2280 = vst [vmem:[%s4545_s5 + $0x70] sm:$0xff] %v2276_v59 }
 0x809   :  { %2281 = vst [vmem:[%s4545_s5 + $0x78] sm:$0xff] %v2277_v15 }

</bundles_post_ra>
